<compile_context>
chip_gen: v7x
topology: tpu7x:2x2x1
jax: 0.10.0
libtpu: 0.0.40
codegen_flags: <defaults>
</compile_context>

<pallas_src>
import math

import jax
import jax.numpy as jnp
from jax.experimental import pallas as pl
from jax.experimental.pallas import tpu as pltpu

# ----------------------------- config (small synthetic LayoutLMv3) ----------
B = 2                 # batch
L = 8                 # text sequence length
H = 48                # hidden size
NUM_HEADS = 4
HEAD_DIM = H // NUM_HEADS          # 12
INTER = 4 * H                      # 192
NUM_LAYERS = 2
VOCAB = 64            # after resize_token_embeddings(embedding_size)
MAX_POS = 32
MAX_2D = 128
COORD = 8             # coordinate_size  (4*COORD + 2*SHAPE == H)
SHAPE = 8             # shape_size
C = 3                 # image channels
IMG = 16              # image size
PATCH = 8             # patch size
GRID = IMG // PATCH
NUM_PATCHES = GRID * GRID          # 4
V = 1 + NUM_PATCHES                # visual tokens (cls + patches) = 5
S = L + V                          # full sequence length = 13
PAD_ID = 1
REL_POS_BINS, MAX_REL_POS = 32, 128
REL_2D_BINS, MAX_REL_2D = 64, 256
LN_EPS = 1e-5
CPP = C * PATCH * PATCH            # 192 im2col width

# ----------------------------- lane-padded compute dims ----------------------
HP = 128                           # hidden padded to one full vreg of lanes
HD_PAD = HP // NUM_HEADS           # 32 lanes per head (12 real + 20 zero)
IP = 256                           # FFN intermediate padded to 2*128


# ----------------------------- in-kernel helpers -----------------------------
def _gelu(x):
    # TODO(synk): HF LayoutLMv3 uses exact-erf GELU; erf lowering inside Mosaic
    # is not guaranteed, so the (numerically near-identical) tanh approximation
    # is used; tanh goes to the otherwise-idle EUP slot.
    c = math.sqrt(2.0 / math.pi)
    return 0.5 * x * (1.0 + jnp.tanh(c * (x + 0.044715 * x * x * x)))


# ----------------------------- the fused encoder kernel ----------------------
def _encoder_kernel(text_ref, patch_ref, bias_ref,
                    patch_w_ref, patch_b_ref, cls_ref, vis_pos_ref,
                    emb_g_ref, emb_b_ref, vis_g_ref, vis_b_ref,
                    fin_g_ref, fin_b_ref,
                    qkv_w_ref, qkv_b_ref, ao_w_ref, ao_b_ref,
                    ln1_g_ref, ln1_b_ref, i_w_ref, i_b_ref,
                    o_w_ref, o_b_ref, ln2_g_ref, ln2_b_ref,
                    pool_w_ref, pool_b_ref,
                    hidden_ref, pooled_ref,
                    x_scr):
    f32 = jnp.float32
    # Real hidden lanes are [0, H); padded lanes [H, HP) stay exactly zero
    # everywhere (weights/biases/gamma are zero-padded), so LayerNorm stats only
    # need a lane mask for the centering term.
    lane_ok = (jax.lax.broadcasted_iota(jnp.int32, (1, HP), 1) < H).astype(f32)
    inv_h = 1.0 / H

    def ln(x, g, b):
        mu = jnp.sum(x, axis=-1, keepdims=True) * inv_h
        xc = (x - mu) * lane_ok
        var = jnp.sum(xc * xc, axis=-1, keepdims=True) * inv_h
        return xc * jax.lax.rsqrt(var + LN_EPS) * g + b

    # ---- text embeddings (pre-summed in wrapper): LayerNorm ----------------
    text = ln(text_ref[0].astype(f32), emb_g_ref[...], emb_b_ref[...])        # (L, HP)

    # ---- visual embeddings: patch conv as matmul, cls token, pos, LN -------
    vp = vis_pos_ref[...]                                                     # (V, HP)
    patches = jnp.dot(patch_ref[0].astype(f32), patch_w_ref[...],
                      preferred_element_type=f32) + patch_b_ref[...]          # (NP, HP)
    cls_row = ln(cls_ref[...] + vp[0:1, :], vis_g_ref[...], vis_b_ref[...])   # (1, HP)
    pat_rows = ln(patches + vp[1:V, :], vis_g_ref[...], vis_b_ref[...])       # (NP, HP)

    # ---- assemble [text ; cls ; patches] via static ref stores (no concat) -
    x_scr[0:L, :] = text
    x_scr[L:L + 1, :] = cls_row
    x_scr[L + 1:S, :] = pat_rows

    # ---- model-level LayerNorm ----------------------------------------------
    x = ln(x_scr[...], fin_g_ref[...], fin_b_ref[...])                        # (S, HP)

    # ---- transformer layers (unrolled; stacked weights, static indexing) ----
    for l in range(NUM_LAYERS):
        # Fused QKV; 1/sqrt(head_dim) folded into q weights. Section boundaries
        # (0 / HP / 2*HP) and per-head 32-lane blocks are all vreg-aligned.
        qkv = jnp.dot(x, qkv_w_ref[l], preferred_element_type=f32) + qkv_b_ref[l]

        attn = None
        for hh in range(NUM_HEADS):
            lo = hh * HD_PAD
            qh = qkv[:, lo:lo + HD_PAD]                                       # (S, 32)
            kh = qkv[:, HP + lo:HP + lo + HD_PAD]
            vh = qkv[:, 2 * HP + lo:2 * HP + lo + HD_PAD]
            s = jax.lax.dot_general(qh, kh, (((1,), (1,)), ((), ())),
                                    preferred_element_type=f32)               # (S, S)
            s = s + bias_ref[0, hh]
            # numerically stable softmax; reciprocal on the EUP slot
            m = jnp.max(s, axis=-1, keepdims=True)
            p = jnp.exp(s - m)
            p = p * pl.reciprocal(jnp.sum(p, axis=-1, keepdims=True), approx=True)
            ctx = jnp.dot(p, vh, preferred_element_type=f32)                  # (S, 32)
            # fold head directly into the output projection — no head concat
            contrib = jnp.dot(ctx, ao_w_ref[l, lo:lo + HD_PAD, :],
                              preferred_element_type=f32)                     # (S, HP)
            attn = contrib if attn is None else attn + contrib
        attn = attn + ao_b_ref[l]
        h1 = ln(attn + x, ln1_g_ref[l], ln1_b_ref[l])                         # residual+LN

        inter = _gelu(jnp.dot(h1, i_w_ref[l], preferred_element_type=f32) + i_b_ref[l])
        ffn = jnp.dot(inter, o_w_ref[l], preferred_element_type=f32) + o_b_ref[l]
        x = ln(ffn + h1, ln2_g_ref[l], ln2_b_ref[l])                          # residual+LN

    hidden_ref[0, :, :] = x.astype(hidden_ref.dtype)

    # ---- pooler: first token of this batch element, dense + tanh ------------
    pooled = jnp.tanh(jnp.dot(x[0:1, :], pool_w_ref[...],
                              preferred_element_type=f32) + pool_b_ref[...])
    pooled_ref[0, :, :] = pooled.astype(pooled_ref.dtype)


# ----------------------------- pallas_call wrapper ---------------------------
def fused_encoder_call(text_emb, patches, attn_bias, fw):
    """Single pallas_call over grid=(B,); weights VMEM-resident, fetched once."""
    weight_names = ["patch_w", "patch_b", "cls", "vis_pos",
                    "emb_g", "emb_b", "vis_g", "vis_b", "fin_g", "fin_b",
                    "qkv_w", "qkv_b", "ao_w", "ao_b",
                    "ln1_g", "ln1_b", "i_w", "i_b", "o_w", "o_b",
                    "ln2_g", "ln2_b", "pool_w", "pool_b"]
    weights = [fw[n] for n in weight_names]

    batched_specs = [
        pl.BlockSpec((1, L, HP), lambda b: (b, 0, 0)),
        pl.BlockSpec((1, NUM_PATCHES, CPP), lambda b: (b, 0, 0)),
        pl.BlockSpec((1, NUM_HEADS, S, S), lambda b: (b, 0, 0, 0)),
    ]
    # Whole-array weight blocks; constant index_map -> no re-DMA across steps.
    # TODO(synk): at real size, add a per-layer "arbitrary" grid axis with
    # index_map (lambda b, l: (l, 0, 0)) + bf16 weights instead of a fully
    # resident stack (v7x has half the VMEM of v5e/v6e).
    weight_specs = [pl.BlockSpec(w.shape, lambda b, nd=w.ndim: (0,) * nd)
                    for w in weights]

    inputs = [text_emb, patches, attn_bias] + weights

    flops = 2 * B * (
        NUM_PATCHES * CPP * HP
        + NUM_LAYERS * (S * HP * 3 * HP
                        + NUM_HEADS * (2 * S * S * HD_PAD + S * HD_PAD * HP)
                        + 2 * S * HP * IP)
        + HP * HP)
    transcendentals = B * (NUM_LAYERS * (NUM_HEADS * S * S + S * IP) + HP)
    bytes_accessed = (sum(int(a.size) * 4 for a in inputs)
                      + (B * S * HP + B * HP) * 4)

    hidden, pooled = pl.pallas_call(
        _encoder_kernel,
        grid=(B,),
        in_specs=batched_specs + weight_specs,
        out_specs=(pl.BlockSpec((1, S, HP), lambda b: (b, 0, 0)),
                   pl.BlockSpec((1, 1, HP), lambda b: (b, 0, 0))),
        out_shape=(jax.ShapeDtypeStruct((B, S, HP), jnp.float32),
                   jax.ShapeDtypeStruct((B, 1, HP), jnp.float32)),
        scratch_shapes=[pltpu.VMEM((S, HP), jnp.float32)],
        compiler_params=pltpu.CompilerParams(
            dimension_semantics=("parallel",),
            vmem_limit_bytes=32 * 1024 * 1024),
        cost_estimate=pl.CostEstimate(flops=flops,
                                      transcendentals=transcendentals,
                                      bytes_accessed=bytes_accessed),
    )(*inputs)
    return hidden, pooled


# ----------------------------- glue: relative position bias ------------------
def relative_position_bucket(rel_pos, num_buckets, max_distance):
    num_buckets //= 2
    ret = jnp.where(rel_pos > 0, num_buckets, 0).astype(jnp.int32)
    n = jnp.abs(rel_pos)
    max_exact = num_buckets // 2
    is_small = n < max_exact
    val_if_large = max_exact + (
        jnp.log(jnp.maximum(n, 1).astype(jnp.float32) / max_exact)
        / math.log(max_distance / max_exact)
        * (num_buckets - max_exact)
    ).astype(jnp.int32)
    val_if_large = jnp.minimum(val_if_large, num_buckets - 1)
    return ret + jnp.where(is_small, n, val_if_large)


# ----------------------------- parameters ------------------------------------
def init_params(key):
    ks = iter(jax.random.split(key, 128))

    def w(shape, scale=0.02):
        return (scale * jax.random.normal(next(ks), shape)).astype(jnp.float32)

    p = {
        "word_emb": w((VOCAB, H)).at[PAD_ID].set(0.0),
        "tok_type_emb": w((2, H)),
        "pos_emb": w((MAX_POS, H)),
        "x_emb": w((MAX_2D, COORD)), "y_emb": w((MAX_2D, COORD)),
        "h_emb": w((MAX_2D, SHAPE)), "w_emb": w((MAX_2D, SHAPE)),
        "emb_ln_g": jnp.ones((H,), jnp.float32), "emb_ln_b": jnp.zeros((H,), jnp.float32),
        "patch_w": w((CPP, H)), "patch_b": jnp.zeros((H,), jnp.float32),
        "cls_token": w((1, 1, H)),
        "vis_pos_emb": w((1, V, H)),
        "vis_ln_g": jnp.ones((H,), jnp.float32), "vis_ln_b": jnp.zeros((H,), jnp.float32),
        "final_ln_g": jnp.ones((H,), jnp.float32), "final_ln_b": jnp.zeros((H,), jnp.float32),
        "rel_pos_bias": w((REL_POS_BINS, NUM_HEADS)),
        "rel_pos_x_bias": w((REL_2D_BINS, NUM_HEADS)),
        "rel_pos_y_bias": w((REL_2D_BINS, NUM_HEADS)),
        "pool_w": w((H, H)), "pool_b": jnp.zeros((H,), jnp.float32),
        "layers": [],
    }
    for _ in range(NUM_LAYERS):
        p["layers"].append({
            "q_w": w((H, H)), "q_b": jnp.zeros((H,), jnp.float32),
            "k_w": w((H, H)), "k_b": jnp.zeros((H,), jnp.float32),
            "v_w": w((H, H)), "v_b": jnp.zeros((H,), jnp.float32),
            "ao_w": w((H, H)), "ao_b": jnp.zeros((H,), jnp.float32),
            "ln1_g": jnp.ones((H,), jnp.float32), "ln1_b": jnp.zeros((H,), jnp.float32),
            "i_w": w((H, INTER)), "i_b": jnp.zeros((INTER,), jnp.float32),
            "o_w": w((INTER, H)), "o_b": jnp.zeros((H,), jnp.float32),
            "ln2_g": jnp.ones((H,), jnp.float32), "ln2_b": jnp.zeros((H,), jnp.float32),
        })
    return p


def prep_fused_weights(params):
    """Fold q-scale into fused QKV; zero-pad to lane-dense (HP/HD_PAD/IP) layouts;
    stack per-layer weights along a leading NUM_LAYERS axis."""
    scale = 1.0 / math.sqrt(HEAD_DIM)

    def pad2(w, rows, cols):
        return jnp.pad(w, ((0, rows - w.shape[0]), (0, cols - w.shape[1])))

    def pad_row(v, cols):
        v = v.reshape(1, -1)
        return jnp.pad(v, ((0, 0), (0, cols - v.shape[1])))

    def head_cols(w):       # (H,H): per-head padded output cols, rows -> HP
        w = w.reshape(H, NUM_HEADS, HEAD_DIM)
        w = jnp.pad(w, ((0, HP - H), (0, 0), (0, HD_PAD - HEAD_DIM)))
        return w.reshape(HP, HP)

    def head_vec(v):        # (H,) -> (HP,) per-head padded
        v = v.reshape(NUM_HEADS, HEAD_DIM)
        return jnp.pad(v, ((0, 0), (0, HD_PAD - HEAD_DIM))).reshape(HP)

    def head_rows(w):       # (H,H): per-head padded input rows, cols -> HP
        w = w.reshape(NUM_HEADS, HEAD_DIM, H)
        w = jnp.pad(w, ((0, 0), (0, HD_PAD - HEAD_DIM), (0, HP - H)))
        return w.reshape(HP, HP)

    lw = params["layers"]
    return {
        "patch_w": pad2(params["patch_w"], CPP, HP),
        "patch_b": pad_row(params["patch_b"], HP),
        "cls": pad2(params["cls_token"].reshape(1, H), 1, HP),
        "vis_pos": pad2(params["vis_pos_emb"].reshape(V, H), V, HP),
        "emb_g": pad_row(params["emb_ln_g"], HP), "emb_b": pad_row(params["emb_ln_b"], HP),
        "vis_g": pad_row(params["vis_ln_g"], HP), "vis_b": pad_row(params["vis_ln_b"], HP),
        "fin_g": pad_row(params["final_ln_g"], HP), "fin_b": pad_row(params["final_ln_b"], HP),
        "qkv_w": jnp.stack([jnp.concatenate(
            [head_cols(lp["q_w"] * scale), head_cols(lp["k_w"]), head_cols(lp["v_w"])],
            axis=1) for lp in lw]),
        "qkv_b": jnp.stack([jnp.concatenate(
            [head_vec(lp["q_b"] * scale), head_vec(lp["k_b"]), head_vec(lp["v_b"])]
        ).reshape(1, 3 * HP) for lp in lw]),
        "ao_w": jnp.stack([head_rows(lp["ao_w"]) for lp in lw]),
        "ao_b": jnp.stack([pad_row(lp["ao_b"], HP) for lp in lw]),
        "ln1_g": jnp.stack([pad_row(lp["ln1_g"], HP) for lp in lw]),
        "ln1_b": jnp.stack([pad_row(lp["ln1_b"], HP) for lp in lw]),
        "i_w": jnp.stack([pad2(lp["i_w"], HP, IP) for lp in lw]),
        "i_b": jnp.stack([pad_row(lp["i_b"], IP) for lp in lw]),
        "o_w": jnp.stack([pad2(lp["o_w"], IP, HP) for lp in lw]),
        "o_b": jnp.stack([pad_row(lp["o_b"], HP) for lp in lw]),
        "ln2_g": jnp.stack([pad_row(lp["ln2_g"], HP) for lp in lw]),
        "ln2_b": jnp.stack([pad_row(lp["ln2_b"], HP) for lp in lw]),
        "pool_w": pad2(params["pool_w"], HP, HP),
        "pool_b": pad_row(params["pool_b"], HP),
    }


# ----------------------------- full forward ----------------------------------
def encoder_forward(params, input_ids, bbox, attention_mask, pixel_values):
    Bb, Ll = input_ids.shape

    # ---- text embedding gathers (glue; no cheap Pallas gather) -------------
    tok_mask = (input_ids != PAD_ID).astype(jnp.int32)
    position_ids = jnp.cumsum(tok_mask, axis=1) * tok_mask + PAD_ID
    emb = params["word_emb"][input_ids] + params["tok_type_emb"][jnp.zeros_like(input_ids)]
    emb = emb + params["pos_emb"][position_ids]
    spatial = jnp.concatenate([
        params["x_emb"][bbox[:, :, 0]],
        params["y_emb"][bbox[:, :, 1]],
        params["x_emb"][bbox[:, :, 2]],
        params["y_emb"][bbox[:, :, 3]],
        params["h_emb"][bbox[:, :, 3] - bbox[:, :, 1]],
        params["w_emb"][bbox[:, :, 2] - bbox[:, :, 0]],
    ], axis=-1)
    text_emb = emb + spatial                                     # (B, L, H), pre-LN
    text_emb = jnp.pad(text_emb, ((0, 0), (0, 0), (0, HP - H)))  # lane-pad to 128

    # ---- im2col patches (Conv2d stride==kernel lowered to a matmul) --------
    patches = pixel_values.reshape(Bb, C, GRID, PATCH, GRID, PATCH)
    patches = patches.transpose(0, 2, 4, 1, 3, 5).reshape(Bb, NUM_PATCHES, CPP)

    # ---- extended attention mask -------------------------------------------
    full_mask = jnp.concatenate([attention_mask.astype(jnp.float32),
                                 jnp.ones((Bb, V), jnp.float32)], axis=1)
    ext_mask = (1.0 - full_mask)[:, None, None, :] * jnp.finfo(jnp.float32).min

    # ---- relative position biases (1D + 2D spatial), shared by all layers --
    vx = (jnp.arange(0, 1000 * GRID + 1, 1000) // GRID).astype(jnp.int32)
    vb = jnp.stack([
        jnp.tile(vx[:-1][None, :], (GRID, 1)),
        jnp.tile(vx[:-1][:, None], (1, GRID)),
        jnp.tile(vx[1:][None, :], (GRID, 1)),
        jnp.tile(vx[1:][:, None], (1, GRID)),
    ], axis=-1).reshape(-1, 4)
    cls_box = jnp.array([[1, 1, 999, 999]], dtype=jnp.int32)
    visual_bbox = jnp.concatenate([cls_box, vb], axis=0)          # (V, 4)
    final_bbox = jnp.concatenate(
        [bbox, jnp.broadcast_to(visual_bbox[None], (Bb, V, 4))], axis=1)
    final_pos = jnp.concatenate(
        [jnp.broadcast_to(jnp.arange(Ll)[None, :], (Bb, Ll)),
         jnp.broadcast_to(jnp.arange(V)[None, :], (Bb, V))], axis=1)

    rp = relative_position_bucket(final_pos[:, None, :] - final_pos[:, :, None],
                                  REL_POS_BINS, MAX_REL_POS)
    rel_pos = params["rel_pos_bias"][rp].transpose(0, 3, 1, 2)    # (B, nH, S, S)
    cx = final_bbox[:, :, 0]
    cy = final_bbox[:, :, 3]
    rpx = relative_position_bucket(cx[:, None, :] - cx[:, :, None], REL_2D_BINS, MAX_REL_2D)
    rpy = relative_position_bucket(cy[:, None, :] - cy[:, :, None], REL_2D_BINS, MAX_REL_2D)
    rel_2d = (params["rel_pos_x_bias"][rpx].transpose(0, 3, 1, 2)
              + params["rel_pos_y_bias"][rpy].transpose(0, 3, 1, 2))

    attn_bias = ext_mask + (rel_pos + rel_2d) / math.sqrt(HEAD_DIM)    # (B, nH, S, S)
    attn_bias = jnp.broadcast_to(attn_bias, (Bb, NUM_HEADS, S, S))

    # ---- single fused Pallas kernel: encoder layers + pooler ---------------
    fw = prep_fused_weights(params)
    hidden, pooled = fused_encoder_call(text_emb, patches, attn_bias, fw)
    last_hidden_state = hidden[:, :, :H]
    pooled_output = pooled.reshape(Bb, HP)[:, :H]
    return pooled_output, last_hidden_state


# ----------------------------- main -------------------------------------------
if __name__ == "__main__":
    key = jax.random.PRNGKey(0)
    pkey, k1, k2, k3, k4, k5 = jax.random.split(key, 6)
    params = init_params(pkey)

    input_ids = jax.random.randint(k1, (B, L), 2, VOCAB).astype(jnp.int32)
    input_ids = input_ids.at[:, -1].set(PAD_ID)            # last token is padding
    attention_mask = jnp.ones((B, L), jnp.int32).at[:, -1].set(0)

    x0 = jax.random.randint(k2, (B, L), 0, 60)
    y0 = jax.random.randint(k3, (B, L), 0, 60)
    wh = jax.random.randint(k4, (B, L, 2), 0, 60)
    bbox = jnp.stack([x0, y0, x0 + wh[..., 0], y0 + wh[..., 1]], axis=-1).astype(jnp.int32)

    pixel_values = jax.random.normal(k5, (B, C, IMG, IMG), jnp.float32)  # NCHW

    pooled, last_hidden = jax.jit(encoder_forward)(
        params, input_ids, bbox, attention_mask, pixel_values)
    jax.block_until_ready((pooled, last_hidden))

    assert pooled.shape == (B, H)
    assert last_hidden.shape == (B, S, H)
    assert bool(jnp.all(jnp.isfinite(pooled))) and bool(jnp.all(jnp.isfinite(last_hidden)))
    print("KERNEL_OK")
</pallas_src>

<mosaic_0001>
module attributes {stable_mosaic.version = 11 : i64} {
  func.func @_encoder_kernel(%arg0: i32, %arg1: memref<1x8x128xf32, #tpu.memory_space<vmem>>, %arg2: memref<1x4x192xf32, #tpu.memory_space<vmem>>, %arg3: memref<1x4x13x13xf32, #tpu.memory_space<vmem>>, %arg4: memref<192x128xf32, #tpu.memory_space<vmem>>, %arg5: memref<1x128xf32, #tpu.memory_space<vmem>>, %arg6: memref<1x128xf32, #tpu.memory_space<vmem>>, %arg7: memref<5x128xf32, #tpu.memory_space<vmem>>, %arg8: memref<1x128xf32, #tpu.memory_space<vmem>>, %arg9: memref<1x128xf32, #tpu.memory_space<vmem>>, %arg10: memref<1x128xf32, #tpu.memory_space<vmem>>, %arg11: memref<1x128xf32, #tpu.memory_space<vmem>>, %arg12: memref<1x128xf32, #tpu.memory_space<vmem>>, %arg13: memref<1x128xf32, #tpu.memory_space<vmem>>, %arg14: memref<2x128x384xf32, #tpu.memory_space<vmem>>, %arg15: memref<2x1x384xf32, #tpu.memory_space<vmem>>, %arg16: memref<2x128x128xf32, #tpu.memory_space<vmem>>, %arg17: memref<2x1x128xf32, #tpu.memory_space<vmem>>, %arg18: memref<2x1x128xf32, #tpu.memory_space<vmem>>, %arg19: memref<2x1x128xf32, #tpu.memory_space<vmem>>, %arg20: memref<2x128x256xf32, #tpu.memory_space<vmem>>, %arg21: memref<2x1x256xf32, #tpu.memory_space<vmem>>, %arg22: memref<2x256x128xf32, #tpu.memory_space<vmem>>, %arg23: memref<2x1x128xf32, #tpu.memory_space<vmem>>, %arg24: memref<2x1x128xf32, #tpu.memory_space<vmem>>, %arg25: memref<2x1x128xf32, #tpu.memory_space<vmem>>, %arg26: memref<128x128xf32, #tpu.memory_space<vmem>>, %arg27: memref<1x128xf32, #tpu.memory_space<vmem>>, %arg28: memref<1x13x128xf32, #tpu.memory_space<vmem>>, %arg29: memref<1x1x128xf32, #tpu.memory_space<vmem>>, %arg30: memref<13x128xf32, #tpu.memory_space<vmem>>) attributes {dimension_semantics = [#tpu.dimension_semantics<parallel>], iteration_bounds = array<i64: 2>, scalar_prefetch = 0 : i64, scratch_operands = 1 : i64, tpu.core_type = #tpu.core_type<tc>, window_params = [{transform_indices = @transform_0, window_bounds = array<i64: 1, 8, 128>}, {transform_indices = @transform_1, window_bounds = array<i64: 1, 4, 192>}, {transform_indices = @transform_2, window_bounds = array<i64: 1, 4, 13, 13>}, {pipeline_mode = #tpu.pipeline_mode<synchronous>, transform_indices = @transform_3, window_bounds = array<i64: 192, 128>}, {pipeline_mode = #tpu.pipeline_mode<synchronous>, transform_indices = @transform_4, window_bounds = array<i64: 1, 128>}, {pipeline_mode = #tpu.pipeline_mode<synchronous>, transform_indices = @transform_5, window_bounds = array<i64: 1, 128>}, {pipeline_mode = #tpu.pipeline_mode<synchronous>, transform_indices = @transform_6, window_bounds = array<i64: 5, 128>}, {pipeline_mode = #tpu.pipeline_mode<synchronous>, transform_indices = @transform_7, window_bounds = array<i64: 1, 128>}, {pipeline_mode = #tpu.pipeline_mode<synchronous>, transform_indices = @transform_8, window_bounds = array<i64: 1, 128>}, {pipeline_mode = #tpu.pipeline_mode<synchronous>, transform_indices = @transform_9, window_bounds = array<i64: 1, 128>}, {pipeline_mode = #tpu.pipeline_mode<synchronous>, transform_indices = @transform_10, window_bounds = array<i64: 1, 128>}, {pipeline_mode = #tpu.pipeline_mode<synchronous>, transform_indices = @transform_11, window_bounds = array<i64: 1, 128>}, {pipeline_mode = #tpu.pipeline_mode<synchronous>, transform_indices = @transform_12, window_bounds = array<i64: 1, 128>}, {pipeline_mode = #tpu.pipeline_mode<synchronous>, transform_indices = @transform_13, window_bounds = array<i64: 2, 128, 384>}, {pipeline_mode = #tpu.pipeline_mode<synchronous>, transform_indices = @transform_14, window_bounds = array<i64: 2, 1, 384>}, {pipeline_mode = #tpu.pipeline_mode<synchronous>, transform_indices = @transform_15, window_bounds = array<i64: 2, 128, 128>}, {pipeline_mode = #tpu.pipeline_mode<synchronous>, transform_indices = @transform_16, window_bounds = array<i64: 2, 1, 128>}, {pipeline_mode = #tpu.pipeline_mode<synchronous>, transform_indices = @transform_17, window_bounds = array<i64: 2, 1, 128>}, {pipeline_mode = #tpu.pipeline_mode<synchronous>, transform_indices = @transform_18, window_bounds = array<i64: 2, 1, 128>}, {pipeline_mode = #tpu.pipeline_mode<synchronous>, transform_indices = @transform_19, window_bounds = array<i64: 2, 128, 256>}, {pipeline_mode = #tpu.pipeline_mode<synchronous>, transform_indices = @transform_20, window_bounds = array<i64: 2, 1, 256>}, {pipeline_mode = #tpu.pipeline_mode<synchronous>, transform_indices = @transform_21, window_bounds = array<i64: 2, 256, 128>}, {pipeline_mode = #tpu.pipeline_mode<synchronous>, transform_indices = @transform_22, window_bounds = array<i64: 2, 1, 128>}, {pipeline_mode = #tpu.pipeline_mode<synchronous>, transform_indices = @transform_23, window_bounds = array<i64: 2, 1, 128>}, {pipeline_mode = #tpu.pipeline_mode<synchronous>, transform_indices = @transform_24, window_bounds = array<i64: 2, 1, 128>}, {pipeline_mode = #tpu.pipeline_mode<synchronous>, transform_indices = @transform_25, window_bounds = array<i64: 128, 128>}, {pipeline_mode = #tpu.pipeline_mode<synchronous>, transform_indices = @transform_26, window_bounds = array<i64: 1, 128>}, {transform_indices = @transform_27, window_bounds = array<i64: 1, 13, 128>}, {transform_indices = @transform_28, window_bounds = array<i64: 1, 1, 128>}]} {
    %0 = tpu.iota {dimensions = array<i32: 1>} : vector<1x128xi32>
    %c48_i32 = arith.constant 48 : i32
    %1 = vector.broadcast %c48_i32 : i32 to vector<1x128xi32>
    %2 = arith.cmpi slt, %0, %1 : vector<1x128xi32>
    %3 = arith.extui %2 : vector<1x128xi1> to vector<1x128xi32>
    %4 = arith.sitofp %3 : vector<1x128xi32> to vector<1x128xf32>
    %c0 = arith.constant 0 : index
    %c0_0 = arith.constant 0 : index
    %c0_1 = arith.constant 0 : index
    %5 = vector.load %arg1[%c0, %c0_0, %c0_1] : memref<1x8x128xf32, #tpu.memory_space<vmem>>, vector<1x8x128xf32>
    %6 = vector.shape_cast %5 : vector<1x8x128xf32> to vector<8x128xf32>
    %c0_2 = arith.constant 0 : index
    %c0_3 = arith.constant 0 : index
    %7 = vector.load %arg8[%c0_2, %c0_3] : memref<1x128xf32, #tpu.memory_space<vmem>>, vector<1x128xf32>
    %c0_4 = arith.constant 0 : index
    %c0_5 = arith.constant 0 : index
    %8 = vector.load %arg9[%c0_4, %c0_5] : memref<1x128xf32, #tpu.memory_space<vmem>>, vector<1x128xf32>
    %cst = arith.constant dense<0.000000e+00> : vector<8xf32>
    %9 = vector.multi_reduction <add>, %6, %cst [1] : vector<8x128xf32> to vector<8xf32>
    %10 = vector.shape_cast %9 : vector<8xf32> to vector<8x1xf32>
    %cst_6 = arith.constant 0.020833334 : f32
    %11 = vector.broadcast %cst_6 : f32 to vector<8x1xf32>
    %12 = arith.mulf %10, %11 : vector<8x1xf32>
    %13 = vector.broadcast %12 : vector<8x1xf32> to vector<8x128xf32>
    %14 = arith.subf %6, %13 : vector<8x128xf32>
    %15 = vector.broadcast %4 : vector<1x128xf32> to vector<8x128xf32>
    %16 = arith.mulf %14, %15 : vector<8x128xf32>
    %17 = arith.mulf %16, %16 : vector<8x128xf32>
    %cst_7 = arith.constant dense<0.000000e+00> : vector<8xf32>
    %18 = vector.multi_reduction <add>, %17, %cst_7 [1] : vector<8x128xf32> to vector<8xf32>
    %19 = vector.shape_cast %18 : vector<8xf32> to vector<8x1xf32>
    %cst_8 = arith.constant 0.020833334 : f32
    %20 = vector.broadcast %cst_8 : f32 to vector<8x1xf32>
    %21 = arith.mulf %19, %20 : vector<8x1xf32>
    %cst_9 = arith.constant 9.99999974E-6 : f32
    %22 = vector.broadcast %cst_9 : f32 to vector<8x1xf32>
    %23 = arith.addf %21, %22 : vector<8x1xf32>
    %24 = math.rsqrt %23 : vector<8x1xf32>
    %25 = vector.broadcast %24 : vector<8x1xf32> to vector<8x128xf32>
    %26 = arith.mulf %16, %25 : vector<8x128xf32>
    %27 = vector.broadcast %7 : vector<1x128xf32> to vector<8x128xf32>
    %28 = arith.mulf %26, %27 : vector<8x128xf32>
    %29 = vector.broadcast %8 : vector<1x128xf32> to vector<8x128xf32>
    %30 = arith.addf %28, %29 : vector<8x128xf32>
    %c0_10 = arith.constant 0 : index
    %c0_11 = arith.constant 0 : index
    %31 = vector.load %arg7[%c0_10, %c0_11] : memref<5x128xf32, #tpu.memory_space<vmem>>, vector<5x128xf32>
    %c0_12 = arith.constant 0 : index
    %c0_13 = arith.constant 0 : index
    %c0_14 = arith.constant 0 : index
    %32 = vector.load %arg2[%c0_12, %c0_13, %c0_14] : memref<1x4x192xf32, #tpu.memory_space<vmem>>, vector<1x4x192xf32>
    %33 = vector.shape_cast %32 : vector<1x4x192xf32> to vector<4x192xf32>
    %c0_15 = arith.constant 0 : index
    %c0_16 = arith.constant 0 : index
    %34 = vector.load %arg4[%c0_15, %c0_16] : memref<192x128xf32, #tpu.memory_space<vmem>>, vector<192x128xf32>
    %cst_17 = arith.constant dense<0.000000e+00> : vector<4x128xf32>
    %35 = tpu.matmul %33, %34, %cst_17 {dimension_numbers = #tpu.dot_dimension_numbers<[1], [0], [0], [1], [0, 0, 1, 1], [], []>} : vector<4x192xf32>, vector<192x128xf32>, vector<4x128xf32> -> vector<4x128xf32>
    %c0_18 = arith.constant 0 : index
    %c0_19 = arith.constant 0 : index
    %36 = vector.load %arg5[%c0_18, %c0_19] : memref<1x128xf32, #tpu.memory_space<vmem>>, vector<1x128xf32>
    %37 = vector.broadcast %36 : vector<1x128xf32> to vector<4x128xf32>
    %38 = arith.addf %35, %37 : vector<4x128xf32>
    %c0_20 = arith.constant 0 : index
    %c0_21 = arith.constant 0 : index
    %39 = vector.load %arg6[%c0_20, %c0_21] : memref<1x128xf32, #tpu.memory_space<vmem>>, vector<1x128xf32>
    %40 = vector.extract_strided_slice %31 {offsets = [0, 0], sizes = [1, 128], strides = [1, 1]} : vector<5x128xf32> to vector<1x128xf32>
    %41 = arith.addf %39, %40 : vector<1x128xf32>
    %c0_22 = arith.constant 0 : index
    %c0_23 = arith.constant 0 : index
    %42 = vector.load %arg10[%c0_22, %c0_23] : memref<1x128xf32, #tpu.memory_space<vmem>>, vector<1x128xf32>
    %c0_24 = arith.constant 0 : index
    %c0_25 = arith.constant 0 : index
    %43 = vector.load %arg11[%c0_24, %c0_25] : memref<1x128xf32, #tpu.memory_space<vmem>>, vector<1x128xf32>
    %cst_26 = arith.constant dense<0.000000e+00> : vector<1xf32>
    %44 = vector.multi_reduction <add>, %41, %cst_26 [1] : vector<1x128xf32> to vector<1xf32>
    %45 = vector.shape_cast %44 : vector<1xf32> to vector<1x1xf32>
    %cst_27 = arith.constant 0.020833334 : f32
    %46 = vector.broadcast %cst_27 : f32 to vector<1x1xf32>
    %47 = arith.mulf %45, %46 : vector<1x1xf32>
    %48 = vector.broadcast %47 : vector<1x1xf32> to vector<1x128xf32>
    %49 = arith.subf %41, %48 : vector<1x128xf32>
    %50 = arith.mulf %49, %4 : vector<1x128xf32>
    %51 = arith.mulf %50, %50 : vector<1x128xf32>
    %cst_28 = arith.constant dense<0.000000e+00> : vector<1xf32>
    %52 = vector.multi_reduction <add>, %51, %cst_28 [1] : vector<1x128xf32> to vector<1xf32>
    %53 = vector.shape_cast %52 : vector<1xf32> to vector<1x1xf32>
    %cst_29 = arith.constant 0.020833334 : f32
    %54 = vector.broadcast %cst_29 : f32 to vector<1x1xf32>
    %55 = arith.mulf %53, %54 : vector<1x1xf32>
    %cst_30 = arith.constant 9.99999974E-6 : f32
    %56 = vector.broadcast %cst_30 : f32 to vector<1x1xf32>
    %57 = arith.addf %55, %56 : vector<1x1xf32>
    %58 = math.rsqrt %57 : vector<1x1xf32>
    %59 = vector.broadcast %58 : vector<1x1xf32> to vector<1x128xf32>
    %60 = arith.mulf %50, %59 : vector<1x128xf32>
    %61 = arith.mulf %60, %42 : vector<1x128xf32>
    %62 = arith.addf %61, %43 : vector<1x128xf32>
    %63 = vector.extract_strided_slice %31 {offsets = [1, 0], sizes = [4, 128], strides = [1, 1]} : vector<5x128xf32> to vector<4x128xf32>
    %64 = arith.addf %38, %63 : vector<4x128xf32>
    %c0_31 = arith.constant 0 : index
    %c0_32 = arith.constant 0 : index
    %65 = vector.load %arg10[%c0_31, %c0_32] : memref<1x128xf32, #tpu.memory_space<vmem>>, vector<1x128xf32>
    %c0_33 = arith.constant 0 : index
    %c0_34 = arith.constant 0 : index
    %66 = vector.load %arg11[%c0_33, %c0_34] : memref<1x128xf32, #tpu.memory_space<vmem>>, vector<1x128xf32>
    %cst_35 = arith.constant dense<0.000000e+00> : vector<4xf32>
    %67 = vector.multi_reduction <add>, %64, %cst_35 [1] : vector<4x128xf32> to vector<4xf32>
    %68 = vector.shape_cast %67 : vector<4xf32> to vector<4x1xf32>
    %cst_36 = arith.constant 0.020833334 : f32
    %69 = vector.broadcast %cst_36 : f32 to vector<4x1xf32>
    %70 = arith.mulf %68, %69 : vector<4x1xf32>
    %71 = vector.broadcast %70 : vector<4x1xf32> to vector<4x128xf32>
    %72 = arith.subf %64, %71 : vector<4x128xf32>
    %73 = vector.broadcast %4 : vector<1x128xf32> to vector<4x128xf32>
    %74 = arith.mulf %72, %73 : vector<4x128xf32>
    %75 = arith.mulf %74, %74 : vector<4x128xf32>
    %cst_37 = arith.constant dense<0.000000e+00> : vector<4xf32>
    %76 = vector.multi_reduction <add>, %75, %cst_37 [1] : vector<4x128xf32> to vector<4xf32>
    %77 = vector.shape_cast %76 : vector<4xf32> to vector<4x1xf32>
    %cst_38 = arith.constant 0.020833334 : f32
    %78 = vector.broadcast %cst_38 : f32 to vector<4x1xf32>
    %79 = arith.mulf %77, %78 : vector<4x1xf32>
    %cst_39 = arith.constant 9.99999974E-6 : f32
    %80 = vector.broadcast %cst_39 : f32 to vector<4x1xf32>
    %81 = arith.addf %79, %80 : vector<4x1xf32>
    %82 = math.rsqrt %81 : vector<4x1xf32>
    %83 = vector.broadcast %82 : vector<4x1xf32> to vector<4x128xf32>
    %84 = arith.mulf %74, %83 : vector<4x128xf32>
    %85 = vector.broadcast %65 : vector<1x128xf32> to vector<4x128xf32>
    %86 = arith.mulf %84, %85 : vector<4x128xf32>
    %87 = vector.broadcast %66 : vector<1x128xf32> to vector<4x128xf32>
    %88 = arith.addf %86, %87 : vector<4x128xf32>
    %c0_40 = arith.constant 0 : index
    %c0_41 = arith.constant 0 : index
    %89 = vector.load %arg30[%c0_40, %c0_41] : memref<13x128xf32, #tpu.memory_space<vmem>>, vector<8x128xf32>
    tpu.vector_store %arg30[%c0_40, %c0_41], %30 {strides = array<i32>} : memref<13x128xf32, #tpu.memory_space<vmem>>, vector<8x128xf32>,
    %c8 = arith.constant 8 : index
    %c0_42 = arith.constant 0 : index
    %90 = vector.load %arg30[%c8, %c0_42] : memref<13x128xf32, #tpu.memory_space<vmem>>, vector<1x128xf32>
    tpu.vector_store %arg30[%c8, %c0_42], %62 {strides = array<i32>} : memref<13x128xf32, #tpu.memory_space<vmem>>, vector<1x128xf32>,
    %c9 = arith.constant 9 : index
    %c0_43 = arith.constant 0 : index
    %91 = vector.load %arg30[%c9, %c0_43] : memref<13x128xf32, #tpu.memory_space<vmem>>, vector<4x128xf32>
    tpu.vector_store %arg30[%c9, %c0_43], %88 {strides = array<i32>} : memref<13x128xf32, #tpu.memory_space<vmem>>, vector<4x128xf32>,
    %c0_44 = arith.constant 0 : index
    %c0_45 = arith.constant 0 : index
    %92 = vector.load %arg30[%c0_44, %c0_45] : memref<13x128xf32, #tpu.memory_space<vmem>>, vector<13x128xf32>
    %c0_46 = arith.constant 0 : index
    %c0_47 = arith.constant 0 : index
    %93 = vector.load %arg12[%c0_46, %c0_47] : memref<1x128xf32, #tpu.memory_space<vmem>>, vector<1x128xf32>
    %c0_48 = arith.constant 0 : index
    %c0_49 = arith.constant 0 : index
    %94 = vector.load %arg13[%c0_48, %c0_49] : memref<1x128xf32, #tpu.memory_space<vmem>>, vector<1x128xf32>
    %cst_50 = arith.constant dense<0.000000e+00> : vector<13xf32>
    %95 = vector.multi_reduction <add>, %92, %cst_50 [1] : vector<13x128xf32> to vector<13xf32>
    %96 = vector.shape_cast %95 : vector<13xf32> to vector<13x1xf32>
    %cst_51 = arith.constant 0.020833334 : f32
    %97 = vector.broadcast %cst_51 : f32 to vector<13x1xf32>
    %98 = arith.mulf %96, %97 : vector<13x1xf32>
    %99 = vector.broadcast %98 : vector<13x1xf32> to vector<13x128xf32>
    %100 = arith.subf %92, %99 : vector<13x128xf32>
    %101 = vector.broadcast %4 : vector<1x128xf32> to vector<13x128xf32>
    %102 = arith.mulf %100, %101 : vector<13x128xf32>
    %103 = arith.mulf %102, %102 : vector<13x128xf32>
    %cst_52 = arith.constant dense<0.000000e+00> : vector<13xf32>
    %104 = vector.multi_reduction <add>, %103, %cst_52 [1] : vector<13x128xf32> to vector<13xf32>
    %105 = vector.shape_cast %104 : vector<13xf32> to vector<13x1xf32>
    %cst_53 = arith.constant 0.020833334 : f32
    %106 = vector.broadcast %cst_53 : f32 to vector<13x1xf32>
    %107 = arith.mulf %105, %106 : vector<13x1xf32>
    %cst_54 = arith.constant 9.99999974E-6 : f32
    %108 = vector.broadcast %cst_54 : f32 to vector<13x1xf32>
    %109 = arith.addf %107, %108 : vector<13x1xf32>
    %110 = math.rsqrt %109 : vector<13x1xf32>
    %111 = vector.broadcast %110 : vector<13x1xf32> to vector<13x128xf32>
    %112 = arith.mulf %102, %111 : vector<13x128xf32>
    %113 = vector.broadcast %93 : vector<1x128xf32> to vector<13x128xf32>
    %114 = arith.mulf %112, %113 : vector<13x128xf32>
    %115 = vector.broadcast %94 : vector<1x128xf32> to vector<13x128xf32>
    %116 = arith.addf %114, %115 : vector<13x128xf32>
    %c0_55 = arith.constant 0 : index
    %c0_56 = arith.constant 0 : index
    %c0_57 = arith.constant 0 : index
    %117 = vector.load %arg14[%c0_55, %c0_56, %c0_57] : memref<2x128x384xf32, #tpu.memory_space<vmem>>, vector<1x128x384xf32>
    %118 = vector.shape_cast %117 : vector<1x128x384xf32> to vector<128x384xf32>
    %cst_58 = arith.constant dense<0.000000e+00> : vector<13x384xf32>
    %119 = tpu.matmul %116, %118, %cst_58 {dimension_numbers = #tpu.dot_dimension_numbers<[1], [0], [0], [1], [0, 0, 1, 1], [], []>} : vector<13x128xf32>, vector<128x384xf32>, vector<13x384xf32> -> vector<13x384xf32>
    %c0_59 = arith.constant 0 : index
    %c0_60 = arith.constant 0 : index
    %c0_61 = arith.constant 0 : index
    %120 = vector.load %arg15[%c0_59, %c0_60, %c0_61] : memref<2x1x384xf32, #tpu.memory_space<vmem>>, vector<1x1x384xf32>
    %121 = vector.shape_cast %120 : vector<1x1x384xf32> to vector<1x384xf32>
    %122 = vector.broadcast %121 : vector<1x384xf32> to vector<13x384xf32>
    %123 = arith.addf %119, %122 : vector<13x384xf32>
    %124 = vector.extract_strided_slice %123 {offsets = [0, 0], sizes = [13, 32], strides = [1, 1]} : vector<13x384xf32> to vector<13x32xf32>
    %125 = vector.extract_strided_slice %123 {offsets = [0, 128], sizes = [13, 32], strides = [1, 1]} : vector<13x384xf32> to vector<13x32xf32>
    %126 = vector.extract_strided_slice %123 {offsets = [0, 256], sizes = [13, 32], strides = [1, 1]} : vector<13x384xf32> to vector<13x32xf32>
    %cst_62 = arith.constant dense<0.000000e+00> : vector<13x13xf32>
    %127 = tpu.matmul %124, %125, %cst_62 {dimension_numbers = #tpu.dot_dimension_numbers<[1], [1], [0], [0], [0, 0, 1, 0], [], []>} : vector<13x32xf32>, vector<13x32xf32>, vector<13x13xf32> -> vector<13x13xf32>
    %c0_63 = arith.constant 0 : index
    %c0_64 = arith.constant 0 : index
    %c0_65 = arith.constant 0 : index
    %c0_66 = arith.constant 0 : index
    %128 = vector.load %arg3[%c0_63, %c0_64, %c0_65, %c0_66] : memref<1x4x13x13xf32, #tpu.memory_space<vmem>>, vector<1x1x13x13xf32>
    %129 = vector.shape_cast %128 : vector<1x1x13x13xf32> to vector<13x13xf32>
    %130 = arith.addf %127, %129 : vector<13x13xf32>
    %cst_67 = arith.constant dense<0xFF800000> : vector<13xf32>
    %131 = vector.multi_reduction <maximumf>, %130, %cst_67 [1] : vector<13x13xf32> to vector<13xf32>
    %132 = vector.shape_cast %131 : vector<13xf32> to vector<13x1xf32>
    %133 = vector.broadcast %132 : vector<13x1xf32> to vector<13x13xf32>
    %134 = arith.subf %130, %133 : vector<13x13xf32>
    %135 = math.exp %134 : vector<13x13xf32>
    %cst_68 = arith.constant dense<0.000000e+00> : vector<13xf32>
    %136 = vector.multi_reduction <add>, %135, %cst_68 [1] : vector<13x13xf32> to vector<13xf32>
    %137 = vector.shape_cast %136 : vector<13xf32> to vector<13x1xf32>
    %138 = tpu.reciprocal %137 {approx = true} : vector<13x1xf32> -> vector<13x1xf32>
    %139 = vector.broadcast %138 : vector<13x1xf32> to vector<13x13xf32>
    %140 = arith.mulf %135, %139 : vector<13x13xf32>
    %cst_69 = arith.constant dense<0.000000e+00> : vector<13x32xf32>
    %141 = tpu.matmul %140, %126, %cst_69 {dimension_numbers = #tpu.dot_dimension_numbers<[1], [0], [0], [1], [0, 0, 1, 1], [], []>} : vector<13x13xf32>, vector<13x32xf32>, vector<13x32xf32> -> vector<13x32xf32>
    %c0_70 = arith.constant 0 : index
    %c0_71 = arith.constant 0 : index
    %c0_72 = arith.constant 0 : index
    %142 = vector.load %arg16[%c0_70, %c0_71, %c0_72] : memref<2x128x128xf32, #tpu.memory_space<vmem>>, vector<1x32x128xf32>
    %143 = vector.shape_cast %142 : vector<1x32x128xf32> to vector<32x128xf32>
    %cst_73 = arith.constant dense<0.000000e+00> : vector<13x128xf32>
    %144 = tpu.matmul %141, %143, %cst_73 {dimension_numbers = #tpu.dot_dimension_numbers<[1], [0], [0], [1], [0, 0, 1, 1], [], []>} : vector<13x32xf32>, vector<32x128xf32>, vector<13x128xf32> -> vector<13x128xf32>
    %145 = vector.extract_strided_slice %123 {offsets = [0, 32], sizes = [13, 32], strides = [1, 1]} : vector<13x384xf32> to vector<13x32xf32>
    %146 = vector.extract_strided_slice %123 {offsets = [0, 160], sizes = [13, 32], strides = [1, 1]} : vector<13x384xf32> to vector<13x32xf32>
    %147 = vector.extract_strided_slice %123 {offsets = [0, 288], sizes = [13, 32], strides = [1, 1]} : vector<13x384xf32> to vector<13x32xf32>
    %cst_74 = arith.constant dense<0.000000e+00> : vector<13x13xf32>
    %148 = tpu.matmul %145, %146, %cst_74 {dimension_numbers = #tpu.dot_dimension_numbers<[1], [1], [0], [0], [0, 0, 1, 0], [], []>} : vector<13x32xf32>, vector<13x32xf32>, vector<13x13xf32> -> vector<13x13xf32>
    %c0_75 = arith.constant 0 : index
    %c1 = arith.constant 1 : index
    %c0_76 = arith.constant 0 : index
    %c0_77 = arith.constant 0 : index
    %149 = vector.load %arg3[%c0_75, %c1, %c0_76, %c0_77] : memref<1x4x13x13xf32, #tpu.memory_space<vmem>>, vector<1x1x13x13xf32>
    %150 = vector.shape_cast %149 : vector<1x1x13x13xf32> to vector<13x13xf32>
    %151 = arith.addf %148, %150 : vector<13x13xf32>
    %cst_78 = arith.constant dense<0xFF800000> : vector<13xf32>
    %152 = vector.multi_reduction <maximumf>, %151, %cst_78 [1] : vector<13x13xf32> to vector<13xf32>
    %153 = vector.shape_cast %152 : vector<13xf32> to vector<13x1xf32>
    %154 = vector.broadcast %153 : vector<13x1xf32> to vector<13x13xf32>
    %155 = arith.subf %151, %154 : vector<13x13xf32>
    %156 = math.exp %155 : vector<13x13xf32>
    %cst_79 = arith.constant dense<0.000000e+00> : vector<13xf32>
    %157 = vector.multi_reduction <add>, %156, %cst_79 [1] : vector<13x13xf32> to vector<13xf32>
    %158 = vector.shape_cast %157 : vector<13xf32> to vector<13x1xf32>
    %159 = tpu.reciprocal %158 {approx = true} : vector<13x1xf32> -> vector<13x1xf32>
    %160 = vector.broadcast %159 : vector<13x1xf32> to vector<13x13xf32>
    %161 = arith.mulf %156, %160 : vector<13x13xf32>
    %cst_80 = arith.constant dense<0.000000e+00> : vector<13x32xf32>
    %162 = tpu.matmul %161, %147, %cst_80 {dimension_numbers = #tpu.dot_dimension_numbers<[1], [0], [0], [1], [0, 0, 1, 1], [], []>} : vector<13x13xf32>, vector<13x32xf32>, vector<13x32xf32> -> vector<13x32xf32>
    %c0_81 = arith.constant 0 : index
    %c32 = arith.constant 32 : index
    %c0_82 = arith.constant 0 : index
    %163 = vector.load %arg16[%c0_81, %c32, %c0_82] : memref<2x128x128xf32, #tpu.memory_space<vmem>>, vector<1x32x128xf32>
    %164 = vector.shape_cast %163 : vector<1x32x128xf32> to vector<32x128xf32>
    %cst_83 = arith.constant dense<0.000000e+00> : vector<13x128xf32>
    %165 = tpu.matmul %162, %164, %cst_83 {dimension_numbers = #tpu.dot_dimension_numbers<[1], [0], [0], [1], [0, 0, 1, 1], [], []>} : vector<13x32xf32>, vector<32x128xf32>, vector<13x128xf32> -> vector<13x128xf32>
    %166 = arith.addf %144, %165 : vector<13x128xf32>
    %167 = vector.extract_strided_slice %123 {offsets = [0, 64], sizes = [13, 32], strides = [1, 1]} : vector<13x384xf32> to vector<13x32xf32>
    %168 = vector.extract_strided_slice %123 {offsets = [0, 192], sizes = [13, 32], strides = [1, 1]} : vector<13x384xf32> to vector<13x32xf32>
    %169 = vector.extract_strided_slice %123 {offsets = [0, 320], sizes = [13, 32], strides = [1, 1]} : vector<13x384xf32> to vector<13x32xf32>
    %cst_84 = arith.constant dense<0.000000e+00> : vector<13x13xf32>
    %170 = tpu.matmul %167, %168, %cst_84 {dimension_numbers = #tpu.dot_dimension_numbers<[1], [1], [0], [0], [0, 0, 1, 0], [], []>} : vector<13x32xf32>, vector<13x32xf32>, vector<13x13xf32> -> vector<13x13xf32>
    %c0_85 = arith.constant 0 : index
    %c2 = arith.constant 2 : index
    %c0_86 = arith.constant 0 : index
    %c0_87 = arith.constant 0 : index
    %171 = vector.load %arg3[%c0_85, %c2, %c0_86, %c0_87] : memref<1x4x13x13xf32, #tpu.memory_space<vmem>>, vector<1x1x13x13xf32>
    %172 = vector.shape_cast %171 : vector<1x1x13x13xf32> to vector<13x13xf32>
    %173 = arith.addf %170, %172 : vector<13x13xf32>
    %cst_88 = arith.constant dense<0xFF800000> : vector<13xf32>
    %174 = vector.multi_reduction <maximumf>, %173, %cst_88 [1] : vector<13x13xf32> to vector<13xf32>
    %175 = vector.shape_cast %174 : vector<13xf32> to vector<13x1xf32>
    %176 = vector.broadcast %175 : vector<13x1xf32> to vector<13x13xf32>
    %177 = arith.subf %173, %176 : vector<13x13xf32>
    %178 = math.exp %177 : vector<13x13xf32>
    %cst_89 = arith.constant dense<0.000000e+00> : vector<13xf32>
    %179 = vector.multi_reduction <add>, %178, %cst_89 [1] : vector<13x13xf32> to vector<13xf32>
    %180 = vector.shape_cast %179 : vector<13xf32> to vector<13x1xf32>
    %181 = tpu.reciprocal %180 {approx = true} : vector<13x1xf32> -> vector<13x1xf32>
    %182 = vector.broadcast %181 : vector<13x1xf32> to vector<13x13xf32>
    %183 = arith.mulf %178, %182 : vector<13x13xf32>
    %cst_90 = arith.constant dense<0.000000e+00> : vector<13x32xf32>
    %184 = tpu.matmul %183, %169, %cst_90 {dimension_numbers = #tpu.dot_dimension_numbers<[1], [0], [0], [1], [0, 0, 1, 1], [], []>} : vector<13x13xf32>, vector<13x32xf32>, vector<13x32xf32> -> vector<13x32xf32>
    %c0_91 = arith.constant 0 : index
    %c64 = arith.constant 64 : index
    %c0_92 = arith.constant 0 : index
    %185 = vector.load %arg16[%c0_91, %c64, %c0_92] : memref<2x128x128xf32, #tpu.memory_space<vmem>>, vector<1x32x128xf32>
    %186 = vector.shape_cast %185 : vector<1x32x128xf32> to vector<32x128xf32>
    %cst_93 = arith.constant dense<0.000000e+00> : vector<13x128xf32>
    %187 = tpu.matmul %184, %186, %cst_93 {dimension_numbers = #tpu.dot_dimension_numbers<[1], [0], [0], [1], [0, 0, 1, 1], [], []>} : vector<13x32xf32>, vector<32x128xf32>, vector<13x128xf32> -> vector<13x128xf32>
    %188 = arith.addf %166, %187 : vector<13x128xf32>
    %189 = vector.extract_strided_slice %123 {offsets = [0, 96], sizes = [13, 32], strides = [1, 1]} : vector<13x384xf32> to vector<13x32xf32>
    %190 = vector.extract_strided_slice %123 {offsets = [0, 224], sizes = [13, 32], strides = [1, 1]} : vector<13x384xf32> to vector<13x32xf32>
    %191 = vector.extract_strided_slice %123 {offsets = [0, 352], sizes = [13, 32], strides = [1, 1]} : vector<13x384xf32> to vector<13x32xf32>
    %cst_94 = arith.constant dense<0.000000e+00> : vector<13x13xf32>
    %192 = tpu.matmul %189, %190, %cst_94 {dimension_numbers = #tpu.dot_dimension_numbers<[1], [1], [0], [0], [0, 0, 1, 0], [], []>} : vector<13x32xf32>, vector<13x32xf32>, vector<13x13xf32> -> vector<13x13xf32>
    %c0_95 = arith.constant 0 : index
    %c3 = arith.constant 3 : index
    %c0_96 = arith.constant 0 : index
    %c0_97 = arith.constant 0 : index
    %193 = vector.load %arg3[%c0_95, %c3, %c0_96, %c0_97] : memref<1x4x13x13xf32, #tpu.memory_space<vmem>>, vector<1x1x13x13xf32>
    %194 = vector.shape_cast %193 : vector<1x1x13x13xf32> to vector<13x13xf32>
    %195 = arith.addf %192, %194 : vector<13x13xf32>
    %cst_98 = arith.constant dense<0xFF800000> : vector<13xf32>
    %196 = vector.multi_reduction <maximumf>, %195, %cst_98 [1] : vector<13x13xf32> to vector<13xf32>
    %197 = vector.shape_cast %196 : vector<13xf32> to vector<13x1xf32>
    %198 = vector.broadcast %197 : vector<13x1xf32> to vector<13x13xf32>
    %199 = arith.subf %195, %198 : vector<13x13xf32>
    %200 = math.exp %199 : vector<13x13xf32>
    %cst_99 = arith.constant dense<0.000000e+00> : vector<13xf32>
    %201 = vector.multi_reduction <add>, %200, %cst_99 [1] : vector<13x13xf32> to vector<13xf32>
    %202 = vector.shape_cast %201 : vector<13xf32> to vector<13x1xf32>
    %203 = tpu.reciprocal %202 {approx = true} : vector<13x1xf32> -> vector<13x1xf32>
    %204 = vector.broadcast %203 : vector<13x1xf32> to vector<13x13xf32>
    %205 = arith.mulf %200, %204 : vector<13x13xf32>
    %cst_100 = arith.constant dense<0.000000e+00> : vector<13x32xf32>
    %206 = tpu.matmul %205, %191, %cst_100 {dimension_numbers = #tpu.dot_dimension_numbers<[1], [0], [0], [1], [0, 0, 1, 1], [], []>} : vector<13x13xf32>, vector<13x32xf32>, vector<13x32xf32> -> vector<13x32xf32>
    %c0_101 = arith.constant 0 : index
    %c96 = arith.constant 96 : index
    %c0_102 = arith.constant 0 : index
    %207 = vector.load %arg16[%c0_101, %c96, %c0_102] : memref<2x128x128xf32, #tpu.memory_space<vmem>>, vector<1x32x128xf32>
    %208 = vector.shape_cast %207 : vector<1x32x128xf32> to vector<32x128xf32>
    %cst_103 = arith.constant dense<0.000000e+00> : vector<13x128xf32>
    %209 = tpu.matmul %206, %208, %cst_103 {dimension_numbers = #tpu.dot_dimension_numbers<[1], [0], [0], [1], [0, 0, 1, 1], [], []>} : vector<13x32xf32>, vector<32x128xf32>, vector<13x128xf32> -> vector<13x128xf32>
    %210 = arith.addf %188, %209 : vector<13x128xf32>
    %c0_104 = arith.constant 0 : index
    %c0_105 = arith.constant 0 : index
    %c0_106 = arith.constant 0 : index
    %211 = vector.load %arg17[%c0_104, %c0_105, %c0_106] : memref<2x1x128xf32, #tpu.memory_space<vmem>>, vector<1x1x128xf32>
    %212 = vector.shape_cast %211 : vector<1x1x128xf32> to vector<1x128xf32>
    %213 = vector.broadcast %212 : vector<1x128xf32> to vector<13x128xf32>
    %214 = arith.addf %210, %213 : vector<13x128xf32>
    %215 = arith.addf %214, %116 : vector<13x128xf32>
    %c0_107 = arith.constant 0 : index
    %c0_108 = arith.constant 0 : index
    %c0_109 = arith.constant 0 : index
    %216 = vector.load %arg18[%c0_107, %c0_108, %c0_109] : memref<2x1x128xf32, #tpu.memory_space<vmem>>, vector<1x1x128xf32>
    %217 = vector.shape_cast %216 : vector<1x1x128xf32> to vector<1x128xf32>
    %c0_110 = arith.constant 0 : index
    %c0_111 = arith.constant 0 : index
    %c0_112 = arith.constant 0 : index
    %218 = vector.load %arg19[%c0_110, %c0_111, %c0_112] : memref<2x1x128xf32, #tpu.memory_space<vmem>>, vector<1x1x128xf32>
    %219 = vector.shape_cast %218 : vector<1x1x128xf32> to vector<1x128xf32>
    %cst_113 = arith.constant dense<0.000000e+00> : vector<13xf32>
    %220 = vector.multi_reduction <add>, %215, %cst_113 [1] : vector<13x128xf32> to vector<13xf32>
    %221 = vector.shape_cast %220 : vector<13xf32> to vector<13x1xf32>
    %cst_114 = arith.constant 0.020833334 : f32
    %222 = vector.broadcast %cst_114 : f32 to vector<13x1xf32>
    %223 = arith.mulf %221, %222 : vector<13x1xf32>
    %224 = vector.broadcast %223 : vector<13x1xf32> to vector<13x128xf32>
    %225 = arith.subf %215, %224 : vector<13x128xf32>
    %226 = vector.broadcast %4 : vector<1x128xf32> to vector<13x128xf32>
    %227 = arith.mulf %225, %226 : vector<13x128xf32>
    %228 = arith.mulf %227, %227 : vector<13x128xf32>
    %cst_115 = arith.constant dense<0.000000e+00> : vector<13xf32>
    %229 = vector.multi_reduction <add>, %228, %cst_115 [1] : vector<13x128xf32> to vector<13xf32>
    %230 = vector.shape_cast %229 : vector<13xf32> to vector<13x1xf32>
    %cst_116 = arith.constant 0.020833334 : f32
    %231 = vector.broadcast %cst_116 : f32 to vector<13x1xf32>
    %232 = arith.mulf %230, %231 : vector<13x1xf32>
    %cst_117 = arith.constant 9.99999974E-6 : f32
    %233 = vector.broadcast %cst_117 : f32 to vector<13x1xf32>
    %234 = arith.addf %232, %233 : vector<13x1xf32>
    %235 = math.rsqrt %234 : vector<13x1xf32>
    %236 = vector.broadcast %235 : vector<13x1xf32> to vector<13x128xf32>
    %237 = arith.mulf %227, %236 : vector<13x128xf32>
    %238 = vector.broadcast %217 : vector<1x128xf32> to vector<13x128xf32>
    %239 = arith.mulf %237, %238 : vector<13x128xf32>
    %240 = vector.broadcast %219 : vector<1x128xf32> to vector<13x128xf32>
    %241 = arith.addf %239, %240 : vector<13x128xf32>
    %c0_118 = arith.constant 0 : index
    %c0_119 = arith.constant 0 : index
    %c0_120 = arith.constant 0 : index
    %242 = vector.load %arg20[%c0_118, %c0_119, %c0_120] : memref<2x128x256xf32, #tpu.memory_space<vmem>>, vector<1x128x256xf32>
    %243 = vector.shape_cast %242 : vector<1x128x256xf32> to vector<128x256xf32>
    %cst_121 = arith.constant dense<0.000000e+00> : vector<13x256xf32>
    %244 = tpu.matmul %241, %243, %cst_121 {dimension_numbers = #tpu.dot_dimension_numbers<[1], [0], [0], [1], [0, 0, 1, 1], [], []>} : vector<13x128xf32>, vector<128x256xf32>, vector<13x256xf32> -> vector<13x256xf32>
    %c0_122 = arith.constant 0 : index
    %c0_123 = arith.constant 0 : index
    %c0_124 = arith.constant 0 : index
    %245 = vector.load %arg21[%c0_122, %c0_123, %c0_124] : memref<2x1x256xf32, #tpu.memory_space<vmem>>, vector<1x1x256xf32>
    %246 = vector.shape_cast %245 : vector<1x1x256xf32> to vector<1x256xf32>
    %247 = vector.broadcast %246 : vector<1x256xf32> to vector<13x256xf32>
    %248 = arith.addf %244, %247 : vector<13x256xf32>
    %cst_125 = arith.constant 5.000000e-01 : f32
    %249 = vector.broadcast %cst_125 : f32 to vector<13x256xf32>
    %250 = arith.mulf %249, %248 : vector<13x256xf32>
    %cst_126 = arith.constant 4.471500e-02 : f32
    %251 = vector.broadcast %cst_126 : f32 to vector<13x256xf32>
    %252 = arith.mulf %251, %248 : vector<13x256xf32>
    %253 = arith.mulf %252, %248 : vector<13x256xf32>
    %254 = arith.mulf %253, %248 : vector<13x256xf32>
    %255 = arith.addf %248, %254 : vector<13x256xf32>
    %cst_127 = arith.constant 0.797884583 : f32
    %256 = vector.broadcast %cst_127 : f32 to vector<13x256xf32>
    %257 = arith.mulf %256, %255 : vector<13x256xf32>
    %258 = math.tanh %257 : vector<13x256xf32>
    %cst_128 = arith.constant 1.000000e+00 : f32
    %259 = vector.broadcast %cst_128 : f32 to vector<13x256xf32>
    %260 = arith.addf %259, %258 : vector<13x256xf32>
    %261 = arith.mulf %250, %260 : vector<13x256xf32>
    %c0_129 = arith.constant 0 : index
    %c0_130 = arith.constant 0 : index
    %c0_131 = arith.constant 0 : index
    %262 = vector.load %arg22[%c0_129, %c0_130, %c0_131] : memref<2x256x128xf32, #tpu.memory_space<vmem>>, vector<1x256x128xf32>
    %263 = vector.shape_cast %262 : vector<1x256x128xf32> to vector<256x128xf32>
    %cst_132 = arith.constant dense<0.000000e+00> : vector<13x128xf32>
    %264 = tpu.matmul %261, %263, %cst_132 {dimension_numbers = #tpu.dot_dimension_numbers<[1], [0], [0], [1], [0, 0, 1, 1], [], []>} : vector<13x256xf32>, vector<256x128xf32>, vector<13x128xf32> -> vector<13x128xf32>
    %c0_133 = arith.constant 0 : index
    %c0_134 = arith.constant 0 : index
    %c0_135 = arith.constant 0 : index
    %265 = vector.load %arg23[%c0_133, %c0_134, %c0_135] : memref<2x1x128xf32, #tpu.memory_space<vmem>>, vector<1x1x128xf32>
    %266 = vector.shape_cast %265 : vector<1x1x128xf32> to vector<1x128xf32>
    %267 = vector.broadcast %266 : vector<1x128xf32> to vector<13x128xf32>
    %268 = arith.addf %264, %267 : vector<13x128xf32>
    %269 = arith.addf %268, %241 : vector<13x128xf32>
    %c0_136 = arith.constant 0 : index
    %c0_137 = arith.constant 0 : index
    %c0_138 = arith.constant 0 : index
    %270 = vector.load %arg24[%c0_136, %c0_137, %c0_138] : memref<2x1x128xf32, #tpu.memory_space<vmem>>, vector<1x1x128xf32>
    %271 = vector.shape_cast %270 : vector<1x1x128xf32> to vector<1x128xf32>
    %c0_139 = arith.constant 0 : index
    %c0_140 = arith.constant 0 : index
    %c0_141 = arith.constant 0 : index
    %272 = vector.load %arg25[%c0_139, %c0_140, %c0_141] : memref<2x1x128xf32, #tpu.memory_space<vmem>>, vector<1x1x128xf32>
    %273 = vector.shape_cast %272 : vector<1x1x128xf32> to vector<1x128xf32>
    %cst_142 = arith.constant dense<0.000000e+00> : vector<13xf32>
    %274 = vector.multi_reduction <add>, %269, %cst_142 [1] : vector<13x128xf32> to vector<13xf32>
    %275 = vector.shape_cast %274 : vector<13xf32> to vector<13x1xf32>
    %cst_143 = arith.constant 0.020833334 : f32
    %276 = vector.broadcast %cst_143 : f32 to vector<13x1xf32>
    %277 = arith.mulf %275, %276 : vector<13x1xf32>
    %278 = vector.broadcast %277 : vector<13x1xf32> to vector<13x128xf32>
    %279 = arith.subf %269, %278 : vector<13x128xf32>
    %280 = vector.broadcast %4 : vector<1x128xf32> to vector<13x128xf32>
    %281 = arith.mulf %279, %280 : vector<13x128xf32>
    %282 = arith.mulf %281, %281 : vector<13x128xf32>
    %cst_144 = arith.constant dense<0.000000e+00> : vector<13xf32>
    %283 = vector.multi_reduction <add>, %282, %cst_144 [1] : vector<13x128xf32> to vector<13xf32>
    %284 = vector.shape_cast %283 : vector<13xf32> to vector<13x1xf32>
    %cst_145 = arith.constant 0.020833334 : f32
    %285 = vector.broadcast %cst_145 : f32 to vector<13x1xf32>
    %286 = arith.mulf %284, %285 : vector<13x1xf32>
    %cst_146 = arith.constant 9.99999974E-6 : f32
    %287 = vector.broadcast %cst_146 : f32 to vector<13x1xf32>
    %288 = arith.addf %286, %287 : vector<13x1xf32>
    %289 = math.rsqrt %288 : vector<13x1xf32>
    %290 = vector.broadcast %289 : vector<13x1xf32> to vector<13x128xf32>
    %291 = arith.mulf %281, %290 : vector<13x128xf32>
    %292 = vector.broadcast %271 : vector<1x128xf32> to vector<13x128xf32>
    %293 = arith.mulf %291, %292 : vector<13x128xf32>
    %294 = vector.broadcast %273 : vector<1x128xf32> to vector<13x128xf32>
    %295 = arith.addf %293, %294 : vector<13x128xf32>
    %c1_147 = arith.constant 1 : index
    %c0_148 = arith.constant 0 : index
    %c0_149 = arith.constant 0 : index
    %296 = vector.load %arg14[%c1_147, %c0_148, %c0_149] : memref<2x128x384xf32, #tpu.memory_space<vmem>>, vector<1x128x384xf32>
    %297 = vector.shape_cast %296 : vector<1x128x384xf32> to vector<128x384xf32>
    %cst_150 = arith.constant dense<0.000000e+00> : vector<13x384xf32>
    %298 = tpu.matmul %295, %297, %cst_150 {dimension_numbers = #tpu.dot_dimension_numbers<[1], [0], [0], [1], [0, 0, 1, 1], [], []>} : vector<13x128xf32>, vector<128x384xf32>, vector<13x384xf32> -> vector<13x384xf32>
    %c1_151 = arith.constant 1 : index
    %c0_152 = arith.constant 0 : index
    %c0_153 = arith.constant 0 : index
    %299 = vector.load %arg15[%c1_151, %c0_152, %c0_153] : memref<2x1x384xf32, #tpu.memory_space<vmem>>, vector<1x1x384xf32>
    %300 = vector.shape_cast %299 : vector<1x1x384xf32> to vector<1x384xf32>
    %301 = vector.broadcast %300 : vector<1x384xf32> to vector<13x384xf32>
    %302 = arith.addf %298, %301 : vector<13x384xf32>
    %303 = vector.extract_strided_slice %302 {offsets = [0, 0], sizes = [13, 32], strides = [1, 1]} : vector<13x384xf32> to vector<13x32xf32>
    %304 = vector.extract_strided_slice %302 {offsets = [0, 128], sizes = [13, 32], strides = [1, 1]} : vector<13x384xf32> to vector<13x32xf32>
    %305 = vector.extract_strided_slice %302 {offsets = [0, 256], sizes = [13, 32], strides = [1, 1]} : vector<13x384xf32> to vector<13x32xf32>
    %cst_154 = arith.constant dense<0.000000e+00> : vector<13x13xf32>
    %306 = tpu.matmul %303, %304, %cst_154 {dimension_numbers = #tpu.dot_dimension_numbers<[1], [1], [0], [0], [0, 0, 1, 0], [], []>} : vector<13x32xf32>, vector<13x32xf32>, vector<13x13xf32> -> vector<13x13xf32>
    %c0_155 = arith.constant 0 : index
    %c0_156 = arith.constant 0 : index
    %c0_157 = arith.constant 0 : index
    %c0_158 = arith.constant 0 : index
    %307 = vector.load %arg3[%c0_155, %c0_156, %c0_157, %c0_158] : memref<1x4x13x13xf32, #tpu.memory_space<vmem>>, vector<1x1x13x13xf32>
    %308 = vector.shape_cast %307 : vector<1x1x13x13xf32> to vector<13x13xf32>
    %309 = arith.addf %306, %308 : vector<13x13xf32>
    %cst_159 = arith.constant dense<0xFF800000> : vector<13xf32>
    %310 = vector.multi_reduction <maximumf>, %309, %cst_159 [1] : vector<13x13xf32> to vector<13xf32>
    %311 = vector.shape_cast %310 : vector<13xf32> to vector<13x1xf32>
    %312 = vector.broadcast %311 : vector<13x1xf32> to vector<13x13xf32>
    %313 = arith.subf %309, %312 : vector<13x13xf32>
    %314 = math.exp %313 : vector<13x13xf32>
    %cst_160 = arith.constant dense<0.000000e+00> : vector<13xf32>
    %315 = vector.multi_reduction <add>, %314, %cst_160 [1] : vector<13x13xf32> to vector<13xf32>
    %316 = vector.shape_cast %315 : vector<13xf32> to vector<13x1xf32>
    %317 = tpu.reciprocal %316 {approx = true} : vector<13x1xf32> -> vector<13x1xf32>
    %318 = vector.broadcast %317 : vector<13x1xf32> to vector<13x13xf32>
    %319 = arith.mulf %314, %318 : vector<13x13xf32>
    %cst_161 = arith.constant dense<0.000000e+00> : vector<13x32xf32>
    %320 = tpu.matmul %319, %305, %cst_161 {dimension_numbers = #tpu.dot_dimension_numbers<[1], [0], [0], [1], [0, 0, 1, 1], [], []>} : vector<13x13xf32>, vector<13x32xf32>, vector<13x32xf32> -> vector<13x32xf32>
    %c1_162 = arith.constant 1 : index
    %c0_163 = arith.constant 0 : index
    %c0_164 = arith.constant 0 : index
    %321 = vector.load %arg16[%c1_162, %c0_163, %c0_164] : memref<2x128x128xf32, #tpu.memory_space<vmem>>, vector<1x32x128xf32>
    %322 = vector.shape_cast %321 : vector<1x32x128xf32> to vector<32x128xf32>
    %cst_165 = arith.constant dense<0.000000e+00> : vector<13x128xf32>
    %323 = tpu.matmul %320, %322, %cst_165 {dimension_numbers = #tpu.dot_dimension_numbers<[1], [0], [0], [1], [0, 0, 1, 1], [], []>} : vector<13x32xf32>, vector<32x128xf32>, vector<13x128xf32> -> vector<13x128xf32>
    %324 = vector.extract_strided_slice %302 {offsets = [0, 32], sizes = [13, 32], strides = [1, 1]} : vector<13x384xf32> to vector<13x32xf32>
    %325 = vector.extract_strided_slice %302 {offsets = [0, 160], sizes = [13, 32], strides = [1, 1]} : vector<13x384xf32> to vector<13x32xf32>
    %326 = vector.extract_strided_slice %302 {offsets = [0, 288], sizes = [13, 32], strides = [1, 1]} : vector<13x384xf32> to vector<13x32xf32>
    %cst_166 = arith.constant dense<0.000000e+00> : vector<13x13xf32>
    %327 = tpu.matmul %324, %325, %cst_166 {dimension_numbers = #tpu.dot_dimension_numbers<[1], [1], [0], [0], [0, 0, 1, 0], [], []>} : vector<13x32xf32>, vector<13x32xf32>, vector<13x13xf32> -> vector<13x13xf32>
    %c0_167 = arith.constant 0 : index
    %c1_168 = arith.constant 1 : index
    %c0_169 = arith.constant 0 : index
    %c0_170 = arith.constant 0 : index
    %328 = vector.load %arg3[%c0_167, %c1_168, %c0_169, %c0_170] : memref<1x4x13x13xf32, #tpu.memory_space<vmem>>, vector<1x1x13x13xf32>
    %329 = vector.shape_cast %328 : vector<1x1x13x13xf32> to vector<13x13xf32>
    %330 = arith.addf %327, %329 : vector<13x13xf32>
    %cst_171 = arith.constant dense<0xFF800000> : vector<13xf32>
    %331 = vector.multi_reduction <maximumf>, %330, %cst_171 [1] : vector<13x13xf32> to vector<13xf32>
    %332 = vector.shape_cast %331 : vector<13xf32> to vector<13x1xf32>
    %333 = vector.broadcast %332 : vector<13x1xf32> to vector<13x13xf32>
    %334 = arith.subf %330, %333 : vector<13x13xf32>
    %335 = math.exp %334 : vector<13x13xf32>
    %cst_172 = arith.constant dense<0.000000e+00> : vector<13xf32>
    %336 = vector.multi_reduction <add>, %335, %cst_172 [1] : vector<13x13xf32> to vector<13xf32>
    %337 = vector.shape_cast %336 : vector<13xf32> to vector<13x1xf32>
    %338 = tpu.reciprocal %337 {approx = true} : vector<13x1xf32> -> vector<13x1xf32>
    %339 = vector.broadcast %338 : vector<13x1xf32> to vector<13x13xf32>
    %340 = arith.mulf %335, %339 : vector<13x13xf32>
    %cst_173 = arith.constant dense<0.000000e+00> : vector<13x32xf32>
    %341 = tpu.matmul %340, %326, %cst_173 {dimension_numbers = #tpu.dot_dimension_numbers<[1], [0], [0], [1], [0, 0, 1, 1], [], []>} : vector<13x13xf32>, vector<13x32xf32>, vector<13x32xf32> -> vector<13x32xf32>
    %c1_174 = arith.constant 1 : index
    %c32_175 = arith.constant 32 : index
    %c0_176 = arith.constant 0 : index
    %342 = vector.load %arg16[%c1_174, %c32_175, %c0_176] : memref<2x128x128xf32, #tpu.memory_space<vmem>>, vector<1x32x128xf32>
    %343 = vector.shape_cast %342 : vector<1x32x128xf32> to vector<32x128xf32>
    %cst_177 = arith.constant dense<0.000000e+00> : vector<13x128xf32>
    %344 = tpu.matmul %341, %343, %cst_177 {dimension_numbers = #tpu.dot_dimension_numbers<[1], [0], [0], [1], [0, 0, 1, 1], [], []>} : vector<13x32xf32>, vector<32x128xf32>, vector<13x128xf32> -> vector<13x128xf32>
    %345 = arith.addf %323, %344 : vector<13x128xf32>
    %346 = vector.extract_strided_slice %302 {offsets = [0, 64], sizes = [13, 32], strides = [1, 1]} : vector<13x384xf32> to vector<13x32xf32>
    %347 = vector.extract_strided_slice %302 {offsets = [0, 192], sizes = [13, 32], strides = [1, 1]} : vector<13x384xf32> to vector<13x32xf32>
    %348 = vector.extract_strided_slice %302 {offsets = [0, 320], sizes = [13, 32], strides = [1, 1]} : vector<13x384xf32> to vector<13x32xf32>
    %cst_178 = arith.constant dense<0.000000e+00> : vector<13x13xf32>
    %349 = tpu.matmul %346, %347, %cst_178 {dimension_numbers = #tpu.dot_dimension_numbers<[1], [1], [0], [0], [0, 0, 1, 0], [], []>} : vector<13x32xf32>, vector<13x32xf32>, vector<13x13xf32> -> vector<13x13xf32>
    %c0_179 = arith.constant 0 : index
    %c2_180 = arith.constant 2 : index
    %c0_181 = arith.constant 0 : index
    %c0_182 = arith.constant 0 : index
    %350 = vector.load %arg3[%c0_179, %c2_180, %c0_181, %c0_182] : memref<1x4x13x13xf32, #tpu.memory_space<vmem>>, vector<1x1x13x13xf32>
    %351 = vector.shape_cast %350 : vector<1x1x13x13xf32> to vector<13x13xf32>
    %352 = arith.addf %349, %351 : vector<13x13xf32>
    %cst_183 = arith.constant dense<0xFF800000> : vector<13xf32>
    %353 = vector.multi_reduction <maximumf>, %352, %cst_183 [1] : vector<13x13xf32> to vector<13xf32>
    %354 = vector.shape_cast %353 : vector<13xf32> to vector<13x1xf32>
    %355 = vector.broadcast %354 : vector<13x1xf32> to vector<13x13xf32>
    %356 = arith.subf %352, %355 : vector<13x13xf32>
    %357 = math.exp %356 : vector<13x13xf32>
    %cst_184 = arith.constant dense<0.000000e+00> : vector<13xf32>
    %358 = vector.multi_reduction <add>, %357, %cst_184 [1] : vector<13x13xf32> to vector<13xf32>
    %359 = vector.shape_cast %358 : vector<13xf32> to vector<13x1xf32>
    %360 = tpu.reciprocal %359 {approx = true} : vector<13x1xf32> -> vector<13x1xf32>
    %361 = vector.broadcast %360 : vector<13x1xf32> to vector<13x13xf32>
    %362 = arith.mulf %357, %361 : vector<13x13xf32>
    %cst_185 = arith.constant dense<0.000000e+00> : vector<13x32xf32>
    %363 = tpu.matmul %362, %348, %cst_185 {dimension_numbers = #tpu.dot_dimension_numbers<[1], [0], [0], [1], [0, 0, 1, 1], [], []>} : vector<13x13xf32>, vector<13x32xf32>, vector<13x32xf32> -> vector<13x32xf32>
    %c1_186 = arith.constant 1 : index
    %c64_187 = arith.constant 64 : index
    %c0_188 = arith.constant 0 : index
    %364 = vector.load %arg16[%c1_186, %c64_187, %c0_188] : memref<2x128x128xf32, #tpu.memory_space<vmem>>, vector<1x32x128xf32>
    %365 = vector.shape_cast %364 : vector<1x32x128xf32> to vector<32x128xf32>
    %cst_189 = arith.constant dense<0.000000e+00> : vector<13x128xf32>
    %366 = tpu.matmul %363, %365, %cst_189 {dimension_numbers = #tpu.dot_dimension_numbers<[1], [0], [0], [1], [0, 0, 1, 1], [], []>} : vector<13x32xf32>, vector<32x128xf32>, vector<13x128xf32> -> vector<13x128xf32>
    %367 = arith.addf %345, %366 : vector<13x128xf32>
    %368 = vector.extract_strided_slice %302 {offsets = [0, 96], sizes = [13, 32], strides = [1, 1]} : vector<13x384xf32> to vector<13x32xf32>
    %369 = vector.extract_strided_slice %302 {offsets = [0, 224], sizes = [13, 32], strides = [1, 1]} : vector<13x384xf32> to vector<13x32xf32>
    %370 = vector.extract_strided_slice %302 {offsets = [0, 352], sizes = [13, 32], strides = [1, 1]} : vector<13x384xf32> to vector<13x32xf32>
    %cst_190 = arith.constant dense<0.000000e+00> : vector<13x13xf32>
    %371 = tpu.matmul %368, %369, %cst_190 {dimension_numbers = #tpu.dot_dimension_numbers<[1], [1], [0], [0], [0, 0, 1, 0], [], []>} : vector<13x32xf32>, vector<13x32xf32>, vector<13x13xf32> -> vector<13x13xf32>
    %c0_191 = arith.constant 0 : index
    %c3_192 = arith.constant 3 : index
    %c0_193 = arith.constant 0 : index
    %c0_194 = arith.constant 0 : index
    %372 = vector.load %arg3[%c0_191, %c3_192, %c0_193, %c0_194] : memref<1x4x13x13xf32, #tpu.memory_space<vmem>>, vector<1x1x13x13xf32>
    %373 = vector.shape_cast %372 : vector<1x1x13x13xf32> to vector<13x13xf32>
    %374 = arith.addf %371, %373 : vector<13x13xf32>
    %cst_195 = arith.constant dense<0xFF800000> : vector<13xf32>
    %375 = vector.multi_reduction <maximumf>, %374, %cst_195 [1] : vector<13x13xf32> to vector<13xf32>
    %376 = vector.shape_cast %375 : vector<13xf32> to vector<13x1xf32>
    %377 = vector.broadcast %376 : vector<13x1xf32> to vector<13x13xf32>
    %378 = arith.subf %374, %377 : vector<13x13xf32>
    %379 = math.exp %378 : vector<13x13xf32>
    %cst_196 = arith.constant dense<0.000000e+00> : vector<13xf32>
    %380 = vector.multi_reduction <add>, %379, %cst_196 [1] : vector<13x13xf32> to vector<13xf32>
    %381 = vector.shape_cast %380 : vector<13xf32> to vector<13x1xf32>
    %382 = tpu.reciprocal %381 {approx = true} : vector<13x1xf32> -> vector<13x1xf32>
    %383 = vector.broadcast %382 : vector<13x1xf32> to vector<13x13xf32>
    %384 = arith.mulf %379, %383 : vector<13x13xf32>
    %cst_197 = arith.constant dense<0.000000e+00> : vector<13x32xf32>
    %385 = tpu.matmul %384, %370, %cst_197 {dimension_numbers = #tpu.dot_dimension_numbers<[1], [0], [0], [1], [0, 0, 1, 1], [], []>} : vector<13x13xf32>, vector<13x32xf32>, vector<13x32xf32> -> vector<13x32xf32>
    %c1_198 = arith.constant 1 : index
    %c96_199 = arith.constant 96 : index
    %c0_200 = arith.constant 0 : index
    %386 = vector.load %arg16[%c1_198, %c96_199, %c0_200] : memref<2x128x128xf32, #tpu.memory_space<vmem>>, vector<1x32x128xf32>
    %387 = vector.shape_cast %386 : vector<1x32x128xf32> to vector<32x128xf32>
    %cst_201 = arith.constant dense<0.000000e+00> : vector<13x128xf32>
    %388 = tpu.matmul %385, %387, %cst_201 {dimension_numbers = #tpu.dot_dimension_numbers<[1], [0], [0], [1], [0, 0, 1, 1], [], []>} : vector<13x32xf32>, vector<32x128xf32>, vector<13x128xf32> -> vector<13x128xf32>
    %389 = arith.addf %367, %388 : vector<13x128xf32>
    %c1_202 = arith.constant 1 : index
    %c0_203 = arith.constant 0 : index
    %c0_204 = arith.constant 0 : index
    %390 = vector.load %arg17[%c1_202, %c0_203, %c0_204] : memref<2x1x128xf32, #tpu.memory_space<vmem>>, vector<1x1x128xf32>
    %391 = vector.shape_cast %390 : vector<1x1x128xf32> to vector<1x128xf32>
    %392 = vector.broadcast %391 : vector<1x128xf32> to vector<13x128xf32>
    %393 = arith.addf %389, %392 : vector<13x128xf32>
    %394 = arith.addf %393, %295 : vector<13x128xf32>
    %c1_205 = arith.constant 1 : index
    %c0_206 = arith.constant 0 : index
    %c0_207 = arith.constant 0 : index
    %395 = vector.load %arg18[%c1_205, %c0_206, %c0_207] : memref<2x1x128xf32, #tpu.memory_space<vmem>>, vector<1x1x128xf32>
    %396 = vector.shape_cast %395 : vector<1x1x128xf32> to vector<1x128xf32>
    %c1_208 = arith.constant 1 : index
    %c0_209 = arith.constant 0 : index
    %c0_210 = arith.constant 0 : index
    %397 = vector.load %arg19[%c1_208, %c0_209, %c0_210] : memref<2x1x128xf32, #tpu.memory_space<vmem>>, vector<1x1x128xf32>
    %398 = vector.shape_cast %397 : vector<1x1x128xf32> to vector<1x128xf32>
    %cst_211 = arith.constant dense<0.000000e+00> : vector<13xf32>
    %399 = vector.multi_reduction <add>, %394, %cst_211 [1] : vector<13x128xf32> to vector<13xf32>
    %400 = vector.shape_cast %399 : vector<13xf32> to vector<13x1xf32>
    %cst_212 = arith.constant 0.020833334 : f32
    %401 = vector.broadcast %cst_212 : f32 to vector<13x1xf32>
    %402 = arith.mulf %400, %401 : vector<13x1xf32>
    %403 = vector.broadcast %402 : vector<13x1xf32> to vector<13x128xf32>
    %404 = arith.subf %394, %403 : vector<13x128xf32>
    %405 = vector.broadcast %4 : vector<1x128xf32> to vector<13x128xf32>
    %406 = arith.mulf %404, %405 : vector<13x128xf32>
    %407 = arith.mulf %406, %406 : vector<13x128xf32>
    %cst_213 = arith.constant dense<0.000000e+00> : vector<13xf32>
    %408 = vector.multi_reduction <add>, %407, %cst_213 [1] : vector<13x128xf32> to vector<13xf32>
    %409 = vector.shape_cast %408 : vector<13xf32> to vector<13x1xf32>
    %cst_214 = arith.constant 0.020833334 : f32
    %410 = vector.broadcast %cst_214 : f32 to vector<13x1xf32>
    %411 = arith.mulf %409, %410 : vector<13x1xf32>
    %cst_215 = arith.constant 9.99999974E-6 : f32
    %412 = vector.broadcast %cst_215 : f32 to vector<13x1xf32>
    %413 = arith.addf %411, %412 : vector<13x1xf32>
    %414 = math.rsqrt %413 : vector<13x1xf32>
    %415 = vector.broadcast %414 : vector<13x1xf32> to vector<13x128xf32>
    %416 = arith.mulf %406, %415 : vector<13x128xf32>
    %417 = vector.broadcast %396 : vector<1x128xf32> to vector<13x128xf32>
    %418 = arith.mulf %416, %417 : vector<13x128xf32>
    %419 = vector.broadcast %398 : vector<1x128xf32> to vector<13x128xf32>
    %420 = arith.addf %418, %419 : vector<13x128xf32>
    %c1_216 = arith.constant 1 : index
    %c0_217 = arith.constant 0 : index
    %c0_218 = arith.constant 0 : index
    %421 = vector.load %arg20[%c1_216, %c0_217, %c0_218] : memref<2x128x256xf32, #tpu.memory_space<vmem>>, vector<1x128x256xf32>
    %422 = vector.shape_cast %421 : vector<1x128x256xf32> to vector<128x256xf32>
    %cst_219 = arith.constant dense<0.000000e+00> : vector<13x256xf32>
    %423 = tpu.matmul %420, %422, %cst_219 {dimension_numbers = #tpu.dot_dimension_numbers<[1], [0], [0], [1], [0, 0, 1, 1], [], []>} : vector<13x128xf32>, vector<128x256xf32>, vector<13x256xf32> -> vector<13x256xf32>
    %c1_220 = arith.constant 1 : index
    %c0_221 = arith.constant 0 : index
    %c0_222 = arith.constant 0 : index
    %424 = vector.load %arg21[%c1_220, %c0_221, %c0_222] : memref<2x1x256xf32, #tpu.memory_space<vmem>>, vector<1x1x256xf32>
    %425 = vector.shape_cast %424 : vector<1x1x256xf32> to vector<1x256xf32>
    %426 = vector.broadcast %425 : vector<1x256xf32> to vector<13x256xf32>
    %427 = arith.addf %423, %426 : vector<13x256xf32>
    %cst_223 = arith.constant 5.000000e-01 : f32
    %428 = vector.broadcast %cst_223 : f32 to vector<13x256xf32>
    %429 = arith.mulf %428, %427 : vector<13x256xf32>
    %cst_224 = arith.constant 4.471500e-02 : f32
    %430 = vector.broadcast %cst_224 : f32 to vector<13x256xf32>
    %431 = arith.mulf %430, %427 : vector<13x256xf32>
    %432 = arith.mulf %431, %427 : vector<13x256xf32>
    %433 = arith.mulf %432, %427 : vector<13x256xf32>
    %434 = arith.addf %427, %433 : vector<13x256xf32>
    %cst_225 = arith.constant 0.797884583 : f32
    %435 = vector.broadcast %cst_225 : f32 to vector<13x256xf32>
    %436 = arith.mulf %435, %434 : vector<13x256xf32>
    %437 = math.tanh %436 : vector<13x256xf32>
    %cst_226 = arith.constant 1.000000e+00 : f32
    %438 = vector.broadcast %cst_226 : f32 to vector<13x256xf32>
    %439 = arith.addf %438, %437 : vector<13x256xf32>
    %440 = arith.mulf %429, %439 : vector<13x256xf32>
    %c1_227 = arith.constant 1 : index
    %c0_228 = arith.constant 0 : index
    %c0_229 = arith.constant 0 : index
    %441 = vector.load %arg22[%c1_227, %c0_228, %c0_229] : memref<2x256x128xf32, #tpu.memory_space<vmem>>, vector<1x256x128xf32>
    %442 = vector.shape_cast %441 : vector<1x256x128xf32> to vector<256x128xf32>
    %cst_230 = arith.constant dense<0.000000e+00> : vector<13x128xf32>
    %443 = tpu.matmul %440, %442, %cst_230 {dimension_numbers = #tpu.dot_dimension_numbers<[1], [0], [0], [1], [0, 0, 1, 1], [], []>} : vector<13x256xf32>, vector<256x128xf32>, vector<13x128xf32> -> vector<13x128xf32>
    %c1_231 = arith.constant 1 : index
    %c0_232 = arith.constant 0 : index
    %c0_233 = arith.constant 0 : index
    %444 = vector.load %arg23[%c1_231, %c0_232, %c0_233] : memref<2x1x128xf32, #tpu.memory_space<vmem>>, vector<1x1x128xf32>
    %445 = vector.shape_cast %444 : vector<1x1x128xf32> to vector<1x128xf32>
    %446 = vector.broadcast %445 : vector<1x128xf32> to vector<13x128xf32>
    %447 = arith.addf %443, %446 : vector<13x128xf32>
    %448 = arith.addf %447, %420 : vector<13x128xf32>
    %c1_234 = arith.constant 1 : index
    %c0_235 = arith.constant 0 : index
    %c0_236 = arith.constant 0 : index
    %449 = vector.load %arg24[%c1_234, %c0_235, %c0_236] : memref<2x1x128xf32, #tpu.memory_space<vmem>>, vector<1x1x128xf32>
    %450 = vector.shape_cast %449 : vector<1x1x128xf32> to vector<1x128xf32>
    %c1_237 = arith.constant 1 : index
    %c0_238 = arith.constant 0 : index
    %c0_239 = arith.constant 0 : index
    %451 = vector.load %arg25[%c1_237, %c0_238, %c0_239] : memref<2x1x128xf32, #tpu.memory_space<vmem>>, vector<1x1x128xf32>
    %452 = vector.shape_cast %451 : vector<1x1x128xf32> to vector<1x128xf32>
    %cst_240 = arith.constant dense<0.000000e+00> : vector<13xf32>
    %453 = vector.multi_reduction <add>, %448, %cst_240 [1] : vector<13x128xf32> to vector<13xf32>
    %454 = vector.shape_cast %453 : vector<13xf32> to vector<13x1xf32>
    %cst_241 = arith.constant 0.020833334 : f32
    %455 = vector.broadcast %cst_241 : f32 to vector<13x1xf32>
    %456 = arith.mulf %454, %455 : vector<13x1xf32>
    %457 = vector.broadcast %456 : vector<13x1xf32> to vector<13x128xf32>
    %458 = arith.subf %448, %457 : vector<13x128xf32>
    %459 = vector.broadcast %4 : vector<1x128xf32> to vector<13x128xf32>
    %460 = arith.mulf %458, %459 : vector<13x128xf32>
    %461 = arith.mulf %460, %460 : vector<13x128xf32>
    %cst_242 = arith.constant dense<0.000000e+00> : vector<13xf32>
    %462 = vector.multi_reduction <add>, %461, %cst_242 [1] : vector<13x128xf32> to vector<13xf32>
    %463 = vector.shape_cast %462 : vector<13xf32> to vector<13x1xf32>
    %cst_243 = arith.constant 0.020833334 : f32
    %464 = vector.broadcast %cst_243 : f32 to vector<13x1xf32>
    %465 = arith.mulf %463, %464 : vector<13x1xf32>
    %cst_244 = arith.constant 9.99999974E-6 : f32
    %466 = vector.broadcast %cst_244 : f32 to vector<13x1xf32>
    %467 = arith.addf %465, %466 : vector<13x1xf32>
    %468 = math.rsqrt %467 : vector<13x1xf32>
    %469 = vector.broadcast %468 : vector<13x1xf32> to vector<13x128xf32>
    %470 = arith.mulf %460, %469 : vector<13x128xf32>
    %471 = vector.broadcast %450 : vector<1x128xf32> to vector<13x128xf32>
    %472 = arith.mulf %470, %471 : vector<13x128xf32>
    %473 = vector.broadcast %452 : vector<1x128xf32> to vector<13x128xf32>
    %474 = arith.addf %472, %473 : vector<13x128xf32>
    %c0_245 = arith.constant 0 : index
    %c0_246 = arith.constant 0 : index
    %c0_247 = arith.constant 0 : index
    %475 = vector.load %arg28[%c0_245, %c0_246, %c0_247] : memref<1x13x128xf32, #tpu.memory_space<vmem>>, vector<1x13x128xf32>
    %476 = vector.shape_cast %475 : vector<1x13x128xf32> to vector<13x128xf32>
    %477 = vector.shape_cast %474 : vector<13x128xf32> to vector<1x13x128xf32>
    tpu.vector_store %arg28[%c0_245, %c0_246, %c0_247], %477 {strides = array<i32>} : memref<1x13x128xf32, #tpu.memory_space<vmem>>, vector<1x13x128xf32>,
    %478 = vector.extract_strided_slice %474 {offsets = [0, 0], sizes = [1, 128], strides = [1, 1]} : vector<13x128xf32> to vector<1x128xf32>
    %c0_248 = arith.constant 0 : index
    %c0_249 = arith.constant 0 : index
    %479 = vector.load %arg26[%c0_248, %c0_249] : memref<128x128xf32, #tpu.memory_space<vmem>>, vector<128x128xf32>
    %cst_250 = arith.constant dense<0.000000e+00> : vector<1x128xf32>
    %480 = tpu.matmul %478, %479, %cst_250 {dimension_numbers = #tpu.dot_dimension_numbers<[1], [0], [0], [1], [0, 0, 1, 1], [], []>} : vector<1x128xf32>, vector<128x128xf32>, vector<1x128xf32> -> vector<1x128xf32>
    %c0_251 = arith.constant 0 : index
    %c0_252 = arith.constant 0 : index
    %481 = vector.load %arg27[%c0_251, %c0_252] : memref<1x128xf32, #tpu.memory_space<vmem>>, vector<1x128xf32>
    %482 = arith.addf %480, %481 : vector<1x128xf32>
    %483 = math.tanh %482 : vector<1x128xf32>
    %c0_253 = arith.constant 0 : index
    %c0_254 = arith.constant 0 : index
    %c0_255 = arith.constant 0 : index
    %484 = vector.load %arg29[%c0_253, %c0_254, %c0_255] : memref<1x1x128xf32, #tpu.memory_space<vmem>>, vector<1x1x128xf32>
    %485 = vector.shape_cast %484 : vector<1x1x128xf32> to vector<1x128xf32>
    %486 = vector.shape_cast %483 : vector<1x128xf32> to vector<1x1x128xf32>
    tpu.vector_store %arg29[%c0_253, %c0_254, %c0_255], %486 {strides = array<i32>} : memref<1x1x128xf32, #tpu.memory_space<vmem>>, vector<1x1x128xf32>,
    return
  }
  func.func @transform_0(%arg0: i32) -> (i32, i32, i32) {
    %c0_i32 = arith.constant 0 : i32
    %c0_i32_0 = arith.constant 0 : i32
    %c0_i32_1 = arith.constant 0 : i32
    return %arg0, %c0_i32, %c0_i32_0 : i32, i32, i32
  }
  func.func @transform_1(%arg0: i32) -> (i32, i32, i32) {
    %c0_i32 = arith.constant 0 : i32
    %c0_i32_0 = arith.constant 0 : i32
    %c0_i32_1 = arith.constant 0 : i32
    return %arg0, %c0_i32, %c0_i32_0 : i32, i32, i32
  }
  func.func @transform_2(%arg0: i32) -> (i32, i32, i32, i32) {
    %c0_i32 = arith.constant 0 : i32
    %c0_i32_0 = arith.constant 0 : i32
    %c0_i32_1 = arith.constant 0 : i32
    %c0_i32_2 = arith.constant 0 : i32
    return %arg0, %c0_i32, %c0_i32_0, %c0_i32_1 : i32, i32, i32, i32
  }
  func.func @transform_3(%arg0: i32) -> (i32, i32) {
    %c0_i32 = arith.constant 0 : i32
    %c0_i32_0 = arith.constant 0 : i32
    %c0_i32_1 = arith.constant 0 : i32
    return %c0_i32, %c0_i32_0 : i32, i32
  }
  func.func @transform_4(%arg0: i32) -> (i32, i32) {
    %c0_i32 = arith.constant 0 : i32
    %c0_i32_0 = arith.constant 0 : i32
    %c0_i32_1 = arith.constant 0 : i32
    return %c0_i32, %c0_i32_0 : i32, i32
  }
  func.func @transform_5(%arg0: i32) -> (i32, i32) {
    %c0_i32 = arith.constant 0 : i32
    %c0_i32_0 = arith.constant 0 : i32
    %c0_i32_1 = arith.constant 0 : i32
    return %c0_i32, %c0_i32_0 : i32, i32
  }
  func.func @transform_6(%arg0: i32) -> (i32, i32) {
    %c0_i32 = arith.constant 0 : i32
    %c0_i32_0 = arith.constant 0 : i32
    %c0_i32_1 = arith.constant 0 : i32
    return %c0_i32, %c0_i32_0 : i32, i32
  }
  func.func @transform_7(%arg0: i32) -> (i32, i32) {
    %c0_i32 = arith.constant 0 : i32
    %c0_i32_0 = arith.constant 0 : i32
    %c0_i32_1 = arith.constant 0 : i32
    return %c0_i32, %c0_i32_0 : i32, i32
  }
  func.func @transform_8(%arg0: i32) -> (i32, i32) {
    %c0_i32 = arith.constant 0 : i32
    %c0_i32_0 = arith.constant 0 : i32
    %c0_i32_1 = arith.constant 0 : i32
    return %c0_i32, %c0_i32_0 : i32, i32
  }
  func.func @transform_9(%arg0: i32) -> (i32, i32) {
    %c0_i32 = arith.constant 0 : i32
    %c0_i32_0 = arith.constant 0 : i32
    %c0_i32_1 = arith.constant 0 : i32
    return %c0_i32, %c0_i32_0 : i32, i32
  }
  func.func @transform_10(%arg0: i32) -> (i32, i32) {
    %c0_i32 = arith.constant 0 : i32
    %c0_i32_0 = arith.constant 0 : i32
    %c0_i32_1 = arith.constant 0 : i32
    return %c0_i32, %c0_i32_0 : i32, i32
  }
  func.func @transform_11(%arg0: i32) -> (i32, i32) {
    %c0_i32 = arith.constant 0 : i32
    %c0_i32_0 = arith.constant 0 : i32
    %c0_i32_1 = arith.constant 0 : i32
    return %c0_i32, %c0_i32_0 : i32, i32
  }
  func.func @transform_12(%arg0: i32) -> (i32, i32) {
    %c0_i32 = arith.constant 0 : i32
    %c0_i32_0 = arith.constant 0 : i32
    %c0_i32_1 = arith.constant 0 : i32
    return %c0_i32, %c0_i32_0 : i32, i32
  }
  func.func @transform_13(%arg0: i32) -> (i32, i32, i32) {
    %c0_i32 = arith.constant 0 : i32
    %c0_i32_0 = arith.constant 0 : i32
    %c0_i32_1 = arith.constant 0 : i32
    %c0_i32_2 = arith.constant 0 : i32
    return %c0_i32, %c0_i32_0, %c0_i32_1 : i32, i32, i32
  }
  func.func @transform_14(%arg0: i32) -> (i32, i32, i32) {
    %c0_i32 = arith.constant 0 : i32
    %c0_i32_0 = arith.constant 0 : i32
    %c0_i32_1 = arith.constant 0 : i32
    %c0_i32_2 = arith.constant 0 : i32
    return %c0_i32, %c0_i32_0, %c0_i32_1 : i32, i32, i32
  }
  func.func @transform_15(%arg0: i32) -> (i32, i32, i32) {
    %c0_i32 = arith.constant 0 : i32
    %c0_i32_0 = arith.constant 0 : i32
    %c0_i32_1 = arith.constant 0 : i32
    %c0_i32_2 = arith.constant 0 : i32
    return %c0_i32, %c0_i32_0, %c0_i32_1 : i32, i32, i32
  }
  func.func @transform_16(%arg0: i32) -> (i32, i32, i32) {
    %c0_i32 = arith.constant 0 : i32
    %c0_i32_0 = arith.constant 0 : i32
    %c0_i32_1 = arith.constant 0 : i32
    %c0_i32_2 = arith.constant 0 : i32
    return %c0_i32, %c0_i32_0, %c0_i32_1 : i32, i32, i32
  }
  func.func @transform_17(%arg0: i32) -> (i32, i32, i32) {
    %c0_i32 = arith.constant 0 : i32
    %c0_i32_0 = arith.constant 0 : i32
    %c0_i32_1 = arith.constant 0 : i32
    %c0_i32_2 = arith.constant 0 : i32
    return %c0_i32, %c0_i32_0, %c0_i32_1 : i32, i32, i32
  }
  func.func @transform_18(%arg0: i32) -> (i32, i32, i32) {
    %c0_i32 = arith.constant 0 : i32
    %c0_i32_0 = arith.constant 0 : i32
    %c0_i32_1 = arith.constant 0 : i32
    %c0_i32_2 = arith.constant 0 : i32
    return %c0_i32, %c0_i32_0, %c0_i32_1 : i32, i32, i32
  }
  func.func @transform_19(%arg0: i32) -> (i32, i32, i32) {
    %c0_i32 = arith.constant 0 : i32
    %c0_i32_0 = arith.constant 0 : i32
    %c0_i32_1 = arith.constant 0 : i32
    %c0_i32_2 = arith.constant 0 : i32
    return %c0_i32, %c0_i32_0, %c0_i32_1 : i32, i32, i32
  }
  func.func @transform_20(%arg0: i32) -> (i32, i32, i32) {
    %c0_i32 = arith.constant 0 : i32
    %c0_i32_0 = arith.constant 0 : i32
    %c0_i32_1 = arith.constant 0 : i32
    %c0_i32_2 = arith.constant 0 : i32
    return %c0_i32, %c0_i32_0, %c0_i32_1 : i32, i32, i32
  }
  func.func @transform_21(%arg0: i32) -> (i32, i32, i32) {
    %c0_i32 = arith.constant 0 : i32
    %c0_i32_0 = arith.constant 0 : i32
    %c0_i32_1 = arith.constant 0 : i32
    %c0_i32_2 = arith.constant 0 : i32
    return %c0_i32, %c0_i32_0, %c0_i32_1 : i32, i32, i32
  }
  func.func @transform_22(%arg0: i32) -> (i32, i32, i32) {
    %c0_i32 = arith.constant 0 : i32
    %c0_i32_0 = arith.constant 0 : i32
    %c0_i32_1 = arith.constant 0 : i32
    %c0_i32_2 = arith.constant 0 : i32
    return %c0_i32, %c0_i32_0, %c0_i32_1 : i32, i32, i32
  }
  func.func @transform_23(%arg0: i32) -> (i32, i32, i32) {
    %c0_i32 = arith.constant 0 : i32
    %c0_i32_0 = arith.constant 0 : i32
    %c0_i32_1 = arith.constant 0 : i32
    %c0_i32_2 = arith.constant 0 : i32
    return %c0_i32, %c0_i32_0, %c0_i32_1 : i32, i32, i32
  }
  func.func @transform_24(%arg0: i32) -> (i32, i32, i32) {
    %c0_i32 = arith.constant 0 : i32
    %c0_i32_0 = arith.constant 0 : i32
    %c0_i32_1 = arith.constant 0 : i32
    %c0_i32_2 = arith.constant 0 : i32
    return %c0_i32, %c0_i32_0, %c0_i32_1 : i32, i32, i32
  }
  func.func @transform_25(%arg0: i32) -> (i32, i32) {
    %c0_i32 = arith.constant 0 : i32
    %c0_i32_0 = arith.constant 0 : i32
    %c0_i32_1 = arith.constant 0 : i32
    return %c0_i32, %c0_i32_0 : i32, i32
  }
  func.func @transform_26(%arg0: i32) -> (i32, i32) {
    %c0_i32 = arith.constant 0 : i32
    %c0_i32_0 = arith.constant 0 : i32
    %c0_i32_1 = arith.constant 0 : i32
    return %c0_i32, %c0_i32_0 : i32, i32
  }
  func.func @transform_27(%arg0: i32) -> (i32, i32, i32) {
    %c0_i32 = arith.constant 0 : i32
    %c0_i32_0 = arith.constant 0 : i32
    %c0_i32_1 = arith.constant 0 : i32
    return %arg0, %c0_i32, %c0_i32_0 : i32, i32, i32
  }
  func.func @transform_28(%arg0: i32) -> (i32, i32, i32) {
    %c0_i32 = arith.constant 0 : i32
    %c0_i32_0 = arith.constant 0 : i32
    %c0_i32_1 = arith.constant 0 : i32
    return %arg0, %c0_i32, %c0_i32_0 : i32, i32, i32
  }
}

</mosaic_0001>

<bundles_post_ra>
// kernel: encoder_forward.1
= control target key start
LH: loop header
LB: loop body
LE: loop exit
PB: predicated region body
PF: predicated region fallthrough
CT: control target
= control target key end

     0   :  { %s8055_s0 = inlined_call_operand.vmem [shape: f32[2,8,128], index: 0, kind: input, shape index: {}]   ;;  %s8056_s1 = inlined_call_operand.vmem [shape: f32[2,4,192], index: 1, kind: input, shape index: {}]   ;;  %s8057_s2 = inlined_call_operand.vmem [shape: f32[2,4,13,13], index: 2, kind: input, shape index: {}]   ;;  %s8058_s3 = inlined_call_operand.vmem [shape: f32[192,128], index: 3, kind: input, shape index: {}]   ;;  %s8059_s4 = inlined_call_operand.vmem [shape: f32[1,128], index: 4, kind: input, shape index: {}]   ;;  %s8060_s5 = inlined_call_operand.vmem [shape: f32[1,128], index: 5, kind: input, shape index: {}]   ;;  %s8061_s6 = inlined_call_operand.vmem [shape: f32[5,128], index: 6, kind: input, shape index: {}]   ;;  %s8062_s7 = inlined_call_operand.vmem [shape: f32[1,128], index: 7, kind: input, shape index: {}]   ;;  %s8063_s8 = inlined_call_operand.vmem [shape: f32[1,128], index: 8, kind: input, shape index: {}]   ;;  %s8064_s9 = inlined_call_operand.vmem [shape: f32[1,128], index: 9, kind: input, shape index: {}]   ;;  %s8065_s10 = inlined_call_operand.vmem [shape: f32[1,128], index: 10, kind: input, shape index: {}]   ;;  %s8066_s11 = inlined_call_operand.vmem [shape: f32[1,128], index: 11, kind: input, shape index: {}]   ;;  %s8067_s12 = inlined_call_operand.vmem [shape: f32[1,128], index: 12, kind: input, shape index: {}]   ;;  %s8068_s13 = inlined_call_operand.vmem [shape: f32[2,128,384], index: 13, kind: input, shape index: {}]   ;;  %s8069_s14 = inlined_call_operand.vmem [shape: f32[2,1,384], index: 14, kind: input, shape index: {}]   ;;  %s8070_s15 = inlined_call_operand.vmem [shape: f32[2,128,128], index: 15, kind: input, shape index: {}]   ;;  %s8071_s16 = inlined_call_operand.vmem [shape: f32[2,1,128], index: 16, kind: input, shape index: {}]   ;;  %s8072_s17 = inlined_call_operand.vmem [shape: f32[2,1,128], index: 17, kind: input, shape index: {}]   ;;  %s8073_s18 = inlined_call_operand.vmem [shape: f32[2,1,128], index: 18, kind: input, shape index: {}]   ;;  %s8074_s19 = inlined_call_operand.vmem [shape: f32[2,128,256], index: 19, kind: input, shape index: {}]   ;;  %s8075_s20 = inlined_call_operand.vmem [shape: f32[2,1,256], index: 20, kind: input, shape index: {}]   ;;  %s8076_s21 = inlined_call_operand.vmem [shape: f32[2,256,128], index: 21, kind: input, shape index: {}]   ;;  %s8077_s22 = inlined_call_operand.vmem [shape: f32[2,1,128], index: 22, kind: input, shape index: {}]   ;;  %s8078_s23 = inlined_call_operand.vmem [shape: f32[2,1,128], index: 23, kind: input, shape index: {}]   ;;  %s8079_s24 = inlined_call_operand.vmem [shape: f32[2,1,128], index: 24, kind: input, shape index: {}]   ;;  %s8080_s25 = inlined_call_operand.vmem [shape: f32[128,128], index: 25, kind: input, shape index: {}]   ;;  %s8081_s26 = inlined_call_operand.vmem [shape: f32[1,128], index: 26, kind: input, shape index: {}]   ;;  %s8082_s27 = inlined_call_operand.vmem [shape: f32[2,13,128], index: 27, kind: output, shape index: {0}]   ;;  %s8083_s28 = inlined_call_operand.hbm [shape: f32[2,1,128], index: 28, kind: output, shape index: {1}]  }
   0x1   :  { %8095 = sst [smem:[#allocation14_spill]] %s8055_s0 }
   0x2   :  { %8096 = sst [smem:[#allocation15_spill]] %s8056_s1 }
   0x3   :  { %8097 = sst [smem:[#allocation16_spill]] %s8057_s2 }
   0x4   :  { %8098 = sst [smem:[#allocation17_spill]] %s8058_s3 }
   0x5   :  { %8099 = sst [smem:[#allocation18_spill]] %s8059_s4 }
   0x6   :  { %8100 = sst [smem:[#allocation19_spill]] %s8060_s5 }
   0x7   :  { %8101 = sst [smem:[#allocation20_spill]] %s8061_s6 }
   0x8   :  { %8102 = sst [smem:[#allocation21_spill]] %s8062_s7 }
   0x9   :  { %8103 = sst [smem:[#allocation22_spill]] %s8063_s8 }
   0xa   :  { %8104 = sst [smem:[#allocation23_spill]] %s8064_s9 }
   0xb   :  { %8105 = sst [smem:[#allocation24_spill]] %s8065_s10 }
   0xc   :  { %8106 = sst [smem:[#allocation25_spill]] %s8066_s11 }
   0xd   :  { %8107 = sst [smem:[#allocation26_spill]] %s8067_s12 }
   0xe   :  { %8108 = sst [smem:[#allocation27_spill]] %s8081_s26 }
   0xf   :  { %8109 = sst [smem:[#allocation28_spill]] %s8082_s27 }
  0x10   :  { %8110 = sst [smem:[#allocation29_spill]] %s8083_s28 }
  0x11   :  { %34 = vsyncpa [#allocation4], 0 }
  0x12   :  { %36 = vsyncpa [#allocation4 + $0x1], 0  ;;  %s6565_s8 = smov 0   ;;  %s6567_s5 = smov 0  }
  0x13   :  { %s6569_s9 = smov 0   ;;  %s6571_s30 = smov 0  }
  0x14 LB: > { %8111 = sst [smem:[#allocation6_spill]] %s6398_s8  ;;  %s6586_s3 = sadd.s32 4294967295, %s6410_s30   ;;  %s6410_s30 = sphi %s6571_s30, %s8146_s30   ;;  %s6406_s9 = sphi %s6569_s9, %s8148_s9   ;;  %s6402_s5 = sphi %s6567_s5, %s8150_s5   ;;  %s6398_s8 = sphi %s6565_s8, %s8149_s8  }
  0x15   : > { %8112 = sst [smem:[#allocation7_spill]] %s6406_s9  ;;  %s4841_s6 = sadd.s32 4294967294, %s6410_s30  }
  0x16   : > { %8113 = sst [smem:[#allocation8_spill]] %s6410_s30  ;;  %s6590_s10 = sadd.s32 1, %s6410_s30  }
  0x17   : > { %8114 = sst [smem:[#allocation9_spill]] %s6586_s3  ;;  %s657_s0 = sadd.s32 1, %s6406_s9 }
  0x18   : > { %8115 = sst [smem:[#allocation10_spill]] %s6590_s10  ;;  %s654_s11 = ssub.s32 %s6410_s30, %s6590_s10 }
  0x19   : > { %p667_p0 = scmp.ne.s32.totalorder %s6406_s9, %s6402_s5  ;;  %p655_p1 = scmp.eq.s32.totalorder %s654_s11, 0 }
  0x1a   : > { %p668_p2 = scmp.eq.s32.totalorder %s6586_s3, 1  ;;  %p673_p3 = scmp.ne.s32.totalorder %s6402_s5, %s6398_s8 }
  0x1b   : > { %p674_p4 = scmp.eq.s32.totalorder %s4841_s6, 1  ;;  %p4844_p7 = scmp.ge.s32.totalorder %s6410_s30, 1 }
  0x1c   : > { %s6601_s29 = scalar_select %p655_p1, %s6406_s9, %s657_s0  }
  0x1d   : > { %p6603_p5 = por %p668_p2, %p667_p0  ;;  %p6607_p6 = por %p674_p4, %p673_p3 }
  0x1e   : > { %8116 = sst [smem:[#allocation11_spill]] %s6601_s29  ;;  %p787_p8 = scmp.lt.s32.totalorder %s6410_s30, 3 }
  0x1f   : > { %s8117_s2 = scalar_select %p6603_p5, 1, 0 }
  0x20   : > { %s8119_s7 = scalar_select %p6607_p6, 1, 0 }
  0x21   : > { %8118 = sst [smem:[#allocation12_spill]] %s8117_s2  ;;  %p788_p9 = pnand %p4844_p7, %p787_p8 }
  0x22   : > { %8120 = sst [smem:[#allocation13_spill]] %s8119_s7  ;;  %s8121_s4 = sld [smem:[#allocation17_spill]] (!%p788_p9)  ;;  %v6412_v3 = vmov (!%p788_p9), 0.0|0.0   ;;  %vm962_vm0 = vcmask (!%p788_p9), 523264   ;;  %vm1039_vm1 = vcmask (!%p788_p9), 1040384   ;;  %v6413_v34 = vmov (!%p788_p9), 0.0  }
  0x23   : > { %791 = sbr.rel (%p788_p9) target bundleno = 8256 (0x2040), region = 128  ;;  %p874_p10 = scmp.lt.s32.totalorder (!%p788_p9), %s6586_s3, 1  ;;  %5637 = vmatprep.subr.bf16.mxu0 (!%p788_p9), %v6412_v3  ;;  %1268 = vmatprep.mubr.f32.mxu1 (!%p788_p9), %v6413_v34  ;;  %v893_v45 = vlaneseq (!%p788_p9)  ;;  %vm1060_vm3 = vcmask (!%p788_p9), 1043456   ;;  %vm1098_vm4 = vcmask (!%p788_p9), 1044480   ;;  %vm1358_vm5 = vcmask (!%p788_p9), 261120  }
  0x24   : > { %s8122_s9 = sld [smem:[#allocation15_spill]] (!%p788_p9)  ;;  %s8123_s2 = sld [smem:[#allocation14_spill]] (!%p788_p9)  ;;  %vm6942_vm6 = vmpackc.low (!%p788_p9), %vm1358_vm5, %vm1358_vm5  ;;  %vm6414_vm7 = vmmov (!%p788_p9), 1   ;;  %vm1450_vm9 = vcmask (!%p788_p9), 102400   ;;  %vm1446_vm10 = vcmask (!%p788_p9), 105472   ;;  %vm6418_vm11 = vmmov (!%p788_p9), 0  }
  0x25   : > { %s8124_s28 = sld [smem:[#allocation20_spill]] (!%p788_p9)  ;;  %v894_v46 = vand.u32 (!%p788_p9), 127, %v893_v45  ;;  %s8127_s1 = sld [smem:[#allocation23_spill]] (!%p788_p9)  ;;  %vm6951_vm8 = vmpackc.low (!%p788_p9), %vm1098_vm4, %vm6414_vm7 }
  0x26   : > { %s8128_s7 = sld [smem:[#allocation24_spill]] (!%p788_p9)  ;;  %s8129_s30 = sld [smem:[#allocation21_spill]] (!%p788_p9) }
  0x27   : > { %vm895_vm2 = vcmp.lt.s32.totalorder (!%p788_p9), %v894_v46, 48  ;;  %s8131_s27 = sld [smem:[#allocation25_spill]] (!%p788_p9)  ;;  %s872_s0 = sand.u32 (!%p788_p9), 1, %s6402_s5  }
  0x28   : > { %v929_v0 = vld [vmem:[%s8121_s4] sm:$0xff] (!%p788_p9)  ;;  %v930_v1 = vld [vmem:[%s8121_s4 + $0x8] sm:$0xff] (!%p788_p9)  ;;  %v931_v2 = vld [vmem:[%s8121_s4 + $0x10] sm:$0xff] (!%p788_p9)  ;;  %v6724_v50 = vsel (!%p788_p9), %vm895_vm2, 1.0, %v6413_v34  ;;  %s873_s6 = scalar_lea.vmem (!%p788_p9), [#allocation3], %s872_s0 }
  0x29   : > { %v5638_v4 = vpack.c.bf16 (!%p788_p9), %v930_v1, %v929_v0  ;;  %v932_v5 = vld [vmem:[%s8121_s4 + $0x18] sm:$0xff] (!%p788_p9)  ;;  %v933_v7 = vld [vmem:[%s8121_s4 + $0x20] sm:$0xff] (!%p788_p9)  ;;  %v934_v8 = vld [vmem:[%s8121_s4 + $0x28] sm:$0xff] (!%p788_p9) }
  0x2a   : > { %s6628_s12 = scalar_select %p874_p10, %s6586_s3, 1  ;;  %v5641_v6 = vpack.c.bf16 %v932_v5, %v931_v2  ;;  %v5644_v9 = vpack.c.bf16 %v934_v8, %v933_v7  ;;  %v935_v10 = vld [vmem:[%s8121_s4 + $0x30] sm:$0xff]  ;;  %v936_v11 = vld [vmem:[%s8121_s4 + $0x38] sm:$0xff]  ;;  %v937_v19 = vld [vmem:[%s8121_s4 + $0x40] sm:$0xff] }
  0x2b   : > { %5639 = vmatpush1.bf16.msra.mxu0 %v5638_v4  ;;  %v6656_v14 = vld [vmem:[%s8124_s28] sm:$0x1f]  ;;  %s8125_s3 = sld [smem:[#allocation19_spill]]  ;;  %v5647_v18 = vpack.c.bf16 %v936_v11, %v935_v10  ;;  %v938_v20 = vld [vmem:[%s8121_s4 + $0x48] sm:$0xff]  ;;  %v939_v23 = vld [vmem:[%s8121_s4 + $0x50] sm:$0xff]  ;;  %s8142_s28 = sld [smem:[#allocation29_spill]] }
  0x2c   : > { %5640 = vmatprep.subr.bf16.mxu0 %v6412_v3  ;;  %s4845_s11 = sshll.u32 %s6628_s12, 3  ;;  %v5650_v22 = vpack.c.bf16 %v938_v20, %v937_v19  ;;  %v940_v24 = vld [vmem:[%s8121_s4 + $0x58] sm:$0xff]  ;;  %v941_v26 = vld [vmem:[%s8121_s4 + $0x60] sm:$0xff]  ;;  %v942_v27 = vld [vmem:[%s8121_s4 + $0x68] sm:$0xff]  ;;  %v1057_v58 = vrot.slane %v6656_v14, 1  ;;  %s5090_s8 = sshll.u32 %s6628_s12, 4 }
  0x2d   : > { %s882_s10 = scalar_lea.vmem %s8122_s9, %s4845_s11  ;;  %s877_s26 = scalar_lea.vmem %s8123_s2, %s4845_s11  ;;  %v5653_v25 = vpack.c.bf16 %v940_v24, %v939_v23  ;;  %v5656_v28 = vpack.c.bf16 %v942_v27, %v941_v26  ;;  %v943_v29 = vld [vmem:[%s8121_s4 + $0x70] sm:$0xff]  ;;  %v944_v30 = vld [vmem:[%s8121_s4 + $0x78] sm:$0xff]  ;;  %v945_v32 = vld [vmem:[%s8121_s4 + $0x80] sm:$0xff] }
  0x2e   : > { %v928_v12 = vld [vmem:[%s882_s10] sm:$0xff]  ;;  %v5659_v31 = vpack.c.bf16 %v944_v30, %v943_v29  ;;  %v946_v33 = vld [vmem:[%s8121_s4 + $0x88] sm:$0xff]  ;;  %v947_v36 = vld [vmem:[%s8121_s4 + $0x90] sm:$0xff]  ;;  %s8126_s11 = sld [smem:[#allocation18_spill]]  ;;  %s8130_s2 = sld [smem:[#allocation22_spill]] }
  0x2f   : > { %5642 = vmatpush1.bf16.msra.mxu0 %v5641_v6  ;;  %v6651_v13 = vld [vmem:[%s877_s26] sm:$0xff]  ;;  %v961_v15 = vcombine.high %v928_v12, %v928_v12  ;;  %v5662_v35 = vpack.c.bf16 %v946_v33, %v945_v32  ;;  %v948_v37 = vld [vmem:[%s8121_s4 + $0x98] sm:$0xff]  ;;  %v950_v40 = vld [vmem:[%s8121_s4 + $0xa8] sm:$0xff]  ;;  %s8132_s26 = sld [smem:[#allocation26_spill]]  ;;  %s6415_s10 = smov 96  }
  0x30   : > { %5643 = vmatprep.subr.bf16.mxu0 %v6412_v3  ;;  %901 = vadd.xlane.f32.xlu0 %v6651_v13  ;;  %v5665_v38 = vpack.c.bf16 %v948_v37, %v947_v36  ;;  %v949_v39 = vld [vmem:[%s8121_s4 + $0xa0] sm:$0xff]  ;;  %v951_v42 = vld [vmem:[%s8121_s4 + $0xb0] sm:$0xff]  ;;  %v952_v43 = vld [vmem:[%s8121_s4 + $0xb8] sm:$0xff] }
  0x31   : > { %v1035_v16 = vld [vmem:[%s8125_s3] sm:$0x1]  ;;  %4856 = vmatprep.mubr.msk.f32.mxu0 %vm962_vm0, %v961_v15  ;;  %v5668_v41 = vpack.c.bf16 %v950_v40, %v949_v39  ;;  %v5671_v44 = vpack.c.bf16 %v952_v43, %v951_v42  ;;  %v1140_v27 = vld [vmem:[%s8068_s13 + $0x8] sm:$0xff]  ;;  %v1146_v32 = vld [vmem:[%s8068_s13 + $0x38] sm:$0xff]  ;;  %s4722_s3 = scalar_lea.sflag [#allocation4], %s872_s0 }
  0x32   : > { %v1036_v17 = vadd.f32 %v1035_v16, %v6656_v14  ;;  %v1037_v7 = vld [vmem:[%s8127_s1] sm:$0x1]  ;;  %v1145_v36 = vld [vmem:[%s8068_s13 + $0x30] sm:$0xff]  ;;  %v1148_v37 = vld [vmem:[%s8068_s13 + $0x48] sm:$0xff]  ;;  %s6416_s1 = smov 64  }
  0x33   : > { %5645 = vmatpush1.bf16.msra.mxu0 %v5644_v9  ;;  %v1038_v9 = vld [vmem:[%s8128_s7] sm:$0x1]  ;;  %v1152_v39 = vld [vmem:[%s8068_s13 + $0x68] sm:$0xff] }
  0x34   : > { %5646 = vmatprep.subr.bf16.mxu0 %v6412_v3  ;;  %v1040_v21 = vsel %vm1039_vm1, %v1036_v17, 0.0  ;;  %v4855_v57 = vld [vmem:[%s8126_s11] ss:$0 sm:$0xff]  ;;  %s8137_s11 = sld [smem:[#allocation16_spill]] }
  0x35   : > { %1041 = vadd.xlane.f32.xlu0 %v1040_v21  ;;  %v4854_v24 = vld [vmem:[%s8130_s2] ss:$0 sm:$0xff]  ;;  %s5089_s2 = sshll.u32 %s6628_s12, 6 }
  0x36   : > { %v1139_v30 = vld [vmem:[%s8068_s13] sm:$0xff] }
  0x37   : > { %5648 = vmatpush1.bf16.msra.mxu0 %v5647_v18  ;;  %v1155_v40 = vld [vmem:[%s8068_s13 + $0x80] sm:$0xff] }
  0x38   : > { %5649 = vmatprep.subr.bf16.mxu0 %v6412_v3  ;;  %v5681_v42 = vpack.c.bf16 %v1155_v40, %v1152_v39 }
  0x3a   : > { %s6971_s9 = scalar_lea.vmem %s8137_s11, %s5089_s2  ;;  %s8140_s2 = sld [smem:[#allocation27_spill]] }
  0x3b   : > { %5651 = vmatpush1.bf16.msra.mxu0 %v5650_v22  ;;  %v4853_v22 = vld [vmem:[%s8129_s30] ss:$0 sm:$0xff] }
  0x3c   : > { %5652 = vmatprep.subr.bf16.mxu0 %v6412_v3 }
  0x3f   : > { %5654 = vmatpush1.bf16.msra.mxu0 %v5653_v25 }
  0x40   : > { %5655 = vmatprep.subr.bf16.mxu0 %v6412_v3 }
  0x43   : > { %5657 = vmatpush1.bf16.msra.mxu0 %v5656_v28  ;;  %v1143_v28 = vld [vmem:[%s8068_s13 + $0x20] sm:$0xff] }
  0x44   : > { %5658 = vmatprep.subr.bf16.mxu0 %v6412_v3  ;;  %v5673_v29 = vpack.c.bf16 %v1143_v28, %v1140_v27  ;;  %v1185_v27 = vld [vmem:[%s8068_s13 + $0x170] sm:$0xff] }
  0x46   : > { %5674 = vmatprep.subr.bf16.mxu1 %v5673_v29  ;;  %v1181_v29 = vld [vmem:[%s8068_s13 + $0x150] sm:$0xff] }
  0x47   : > { %5660 = vmatpush1.bf16.msra.mxu0 %v5659_v31  ;;  %v1142_v31 = vld [vmem:[%s8068_s13 + $0x18] sm:$0xff] }
  0x48   : > { %5661 = vmatprep.subr.bf16.mxu0 %v6412_v3  ;;  %v5675_v33 = vpack.c.bf16 %v1142_v31, %v1139_v30  ;;  %v1184_v30 = vld [vmem:[%s8068_s13 + $0x168] sm:$0xff] }
  0x49   : > { %v5703_v31 = vpack.c.bf16 %v1184_v30, %v1181_v29 }
  0x4a   : > { %5676 = vmatpush1.bf16.msra.mxu1 %v5675_v33  ;;  %v1144_v33 = vld [vmem:[%s8068_s13 + $0x28] sm:$0xff] }
  0x4b   : > { %5663 = vmatpush1.bf16.msra.mxu0 %v5662_v35  ;;  %v1149_v35 = vld [vmem:[%s8068_s13 + $0x50] sm:$0xff] }
  0x4c   : > { %5664 = vmatprep.subr.bf16.mxu0 %v6412_v3 }
  0x4f   : > { %5666 = vmatpush1.bf16.msra.mxu0 %v5665_v38  ;;  %v5677_v38 = vpack.c.bf16 %v1149_v35, %v1146_v32  ;;  %v1141_v32 = vld [vmem:[%s8068_s13 + $0x10] sm:$0xff] }
  0x50   : > { %5667 = vmatprep.subr.bf16.mxu0 %v6412_v3  ;;  %v5705_v35 = vpack.c.bf16 %v1144_v33, %v1141_v32 }
  0x51   : > { %5678 = vmatprep.subr.bf16.mxu1 %v5677_v38 }
  0x53   : > { %5669 = vmatpush1.bf16.msra.mxu0 %v5668_v41  ;;  %v5679_v41 = vpack.c.bf16 %v1148_v37, %v1145_v36 }
  0x54   : > { %5670 = vmatprep.subr.bf16.mxu0 %v6412_v3 }
  0x55   : > { %5680 = vmatpush1.bf16.msra.mxu1 %v5679_v41 }
  0x56   : > { %5682 = vmatprep.subr.bf16.mxu1 %v5681_v42 }
  0x57   : > { %5672 = vmatpush1.bf16.msra.mxu0 %v5671_v44 }
  0x5a   : > { %1030 = vmatmul.mubr.f32.vlgmr.msra.gmra.mrb[0].mxu0 %v928_v12 }
  0xbd   : > { %v902_v47 = vpop.xlane.xlu0 %901 }
  0xbe   : > { %v903_v55 = vmul.f32 0.020833334, %v902_v47  ;;  %v6780_v47 = vshrl.u32 %v893_v45, 7 }
  0xc0   : > { %v904_v56 = vsub.f32 %v6651_v13, %v903_v55 }
  0xc2   : > { %v1042_v48 = vpop.xlane.xlu0 %1041  ;;  %v905_v62 = vmul.f32 %v6724_v50, %v904_v56 }
  0xc3   : > { %v1043_v49 = vmul.f32 0.020833334, %v1042_v48  ;;  %v6783_v48 = vsub.s32 0, %v6780_v47 }
  0xc4   : > { %v906_v1 = vmul.f32 %v905_v62, %v905_v62 }
  0xc5   : > { %v1044_v51 = vsub.f32 %v1036_v17, %v1043_v49  ;;  %v1079_v49 = vrot.slane %v1037_v7, %v6783_v48 }
  0xc7   : > { %v1045_v52 = vmul.f32 %v6724_v50, %v1044_v51 }
  0xc9   : > { %v1046_v53 = vmul.f32 %v1045_v52, %v1045_v52 }
  0xcb   : > { %v1047_v54 = vsel %vm1039_vm1, %v1046_v53, 0.0 }
  0xcc   : > { %1048 = vadd.xlane.f32.xlu0 %v1047_v54 }
 0x12d   : > { %v1031_v59 = vpop.f32.mrb[0].mxu0 }
 0x12e   : > { %v1032_v60 = vadd.f32 %v4855_v57, %v1031_v59  ;;  %v1033_v61 = vpop.f32.mrb[1].mxu0 }
 0x130   : > { %v1059_v63 = vadd.f32 %v1057_v58, %v1032_v60 }
 0x132   : > { %v1061_v0 = vsel %vm1060_vm3, %v1059_v63, 0.0 }
 0x133   : > { %1062 = vadd.xlane.f32.xlu1 %v1061_v0 }
 0x137   : > { %907 = vadd.xlane.f32.xlu1 %v906_v1  ;;  %v1158_v1 = vld [vmem:[%s8068_s13 + $0x98] sm:$0xff] }
 0x159   : > { %v1049_v2 = vpop.xlane.xlu0 %1048 }
 0x15a   : > { %v1050_v4 = vmul.f32 0.020833334, %v1049_v2  ;;  %v1161_v2 = vld [vmem:[%s8068_s13 + $0xb0] sm:$0xff] }
 0x15c   : > { %v1051_v5 = vadd.f32 1e-05, %v1050_v4  ;;  %v5685_v4 = vpack.c.bf16 %v1161_v2, %v1158_v1  ;;  %v1171_v1 = vld [vmem:[%s8068_s13 + $0x100] sm:$0xff] }
 0x15e   : > { %6232 = vrsqrt.f32 %v1051_v5  ;;  %v1157_v5 = vld [vmem:[%s8068_s13 + $0x90] sm:$0xff] }
 0x168   : > { %v6233_v6 = vpop.eup %6232 }
 0x169   : > { %v1053_v8 = vmul.f32 %v6233_v6, %v1045_v52  ;;  %v1086_v52 = vrot.slane %v1038_v9, %v6783_v48  ;;  %v1160_v6 = vld [vmem:[%s8068_s13 + $0xa8] sm:$0xff] }
 0x16b   : > { %v1054_v10 = vmul.f32 %v1053_v8, %v1037_v7  ;;  %v5687_v7 = vpack.c.bf16 %v1160_v6, %v1157_v5  ;;  %v1164_v8 = vld [vmem:[%s8068_s13 + $0xc8] sm:$0xff]  ;;  %v1177_v6 = vld [vmem:[%s8068_s13 + $0x130] sm:$0xff] }
 0x16d   : > { %v1055_v11 = vadd.f32 %v1054_v10, %v1038_v9  ;;  %v1167_v9 = vld [vmem:[%s8068_s13 + $0xe0] sm:$0xff] }
 0x16e   : > { %v5689_v10 = vpack.c.bf16 %v1167_v9, %v1164_v8  ;;  %v1183_v9 = vld [vmem:[%s8068_s13 + $0x160] sm:$0xff] }
 0x16f   : > { %1090 = vst [vmem:[#allocation2 + $0x8] sm:$0x1] %v1055_v11  ;;  %v1163_v11 = vld [vmem:[%s8068_s13 + $0xc0] sm:$0xff] }
 0x1c0   : > { %v1063_v12 = vpop.xlane.xlu1 %1062 }
 0x1c1   : > { %v1064_v13 = vmul.f32 0.020833334, %v1063_v12  ;;  %v1166_v12 = vld [vmem:[%s8068_s13 + $0xd8] sm:$0xff] }
 0x1c3   : > { %v1065_v14 = vsub.f32 %v1059_v63, %v1064_v13  ;;  %v1154_v63 = vld [vmem:[%s8068_s13 + $0x78] sm:$0xff]  ;;  %v5691_v13 = vpack.c.bf16 %v1166_v12, %v1163_v11 }
 0x1c4   : > { %v908_v15 = vpop.xlane.xlu1 %907 }
 0x1c5   : > { %v909_v16 = vmul.f32 0.020833334, %v908_v15  ;;  %v1066_v17 = vmul.f32 %v6724_v50, %v1065_v14  ;;  %v1170_v14 = vld [vmem:[%s8068_s13 + $0xf8] sm:$0xff]  ;;  %v1173_v15 = vld [vmem:[%s8068_s13 + $0x110] sm:$0xff] }
 0x1c7   : > { %v910_v18 = vadd.f32 1e-05, %v909_v16  ;;  %v1067_v19 = vmul.f32 %v1066_v17, %v1066_v17  ;;  %v5693_v16 = vpack.c.bf16 %v1173_v15, %v1170_v14 }
 0x1c9   : > { %6234 = vrsqrt.f32 %v910_v18  ;;  %v1068_v20 = vsel %vm1060_vm3, %v1067_v19, 0.0  ;;  %v1172_v18 = vld [vmem:[%s8068_s13 + $0x108] sm:$0xff] }
 0x1ca   : > { %1069 = vadd.xlane.f32.xlu1 %v1068_v20  ;;  %v1176_v20 = vld [vmem:[%s8068_s13 + $0x128] sm:$0xff] }
 0x1d3   : > { %v6235_v21 = vpop.eup %6234 }
 0x1d4   : > { %v912_v23 = vmul.f32 %v6235_v21, %v905_v62  ;;  %v1151_v62 = vld [vmem:[%s8068_s13 + $0x60] sm:$0xff] }
 0x1d5   : > { %v5683_v0 = vpack.c.bf16 %v1154_v63, %v1151_v62  ;;  %v1179_v21 = vld [vmem:[%s8068_s13 + $0x140] sm:$0xff]  ;;  %v1165_v63 = vld [vmem:[%s8068_s13 + $0xd0] sm:$0xff] }
 0x1d6   : > { %v919_v25 = vmul.f32 %v4853_v22, %v912_v23  ;;  %v5697_v22 = vpack.c.bf16 %v1179_v21, %v1176_v20  ;;  %v1175_v23 = vld [vmem:[%s8068_s13 + $0x120] sm:$0xff] }
 0x1d7   : > { %5684 = vmatpush1.bf16.msra.mxu1 %v5683_v0  ;;  %v1168_v0 = vld [vmem:[%s8068_s13 + $0xe8] sm:$0xff] }
 0x1d8   : > { %v926_v26 = vadd.f32 %v4854_v24, %v919_v25  ;;  %5686 = vmatprep.subr.bf16.mxu1 %v5685_v4  ;;  %v1178_v24 = vld [vmem:[%s8068_s13 + $0x138] sm:$0xff]  ;;  %v5721_v2 = vpack.c.bf16 %v1168_v0, %v1165_v63 }
 0x1d9   : > { %v5699_v25 = vpack.c.bf16 %v1178_v24, %v1175_v23  ;;  %v1174_v4 = vld [vmem:[%s8068_s13 + $0x118] sm:$0xff]  ;;  %v6934_v24 = vsub.s32 1, %v6780_v47 }
 0x1da   : > { %1096 = vadd.xlane.f32.xlu0 %v926_v26  ;;  %v5725_v5 = vpack.c.bf16 %v1174_v4, %v1171_v1 }
 0x1db   : > { %5688 = vmatpush1.bf16.msra.mxu1 %v5687_v7  ;;  %v1180_v7 = vld [vmem:[%s8068_s13 + $0x148] sm:$0xff] }
 0x1dc   : > { %5690 = vmatprep.subr.bf16.mxu1 %v5689_v10  ;;  %v5729_v8 = vpack.c.bf16 %v1180_v7, %v1177_v6  ;;  %v1186_v10 = vld [vmem:[%s8068_s13 + $0x178] sm:$0xff] }
 0x1dd   : > { %v5733_v11 = vpack.c.bf16 %v1186_v10, %v1183_v9 }
 0x1df   : > { %5692 = vmatpush1.bf16.msra.mxu1 %v5691_v13 }
 0x1e0   : > { %5694 = vmatprep.subr.bf16.mxu1 %v5693_v16 }
 0x257   : > { %v1070_v43 = vpop.xlane.xlu1 %1069 }
 0x258   : > { %v1071_v44 = vmul.f32 0.020833334, %v1070_v43 }
 0x25a   : > { %v1072_v46 = vadd.f32 1e-05, %v1071_v44 }
 0x25c   : > { %6236 = vrsqrt.f32 %v1072_v46 }
 0x266   : > { %v6237_v51 = vpop.eup %6236 }
 0x267   : > { %v1074_v53 = vmul.f32 %v6237_v51, %v1066_v17  ;;  %v1097_v54 = vpop.xlane.xlu0 %1096  ;;  %v1169_v17 = vld [vmem:[%s8068_s13 + $0xf0] sm:$0xff] }
 0x268   : > { %v1102_v55 = vmul.f32 0.020833334, %v1097_v54  ;;  %v5695_v19 = vpack.c.bf16 %v1172_v18, %v1169_v17  ;;  %v1150_v54 = vld [vmem:[%s8068_s13 + $0x58] sm:$0xff] }
 0x269   : > { %v1081_v56 = vmul.f32 %v1079_v49, %v1074_v53  ;;  %v4857_v49 = vld [vmem:[%s8131_s27] ss:$0 sm:$0xff]  ;;  %s6417_s27 = smov 32  }
 0x26a   : > { %v1104_v57 = vsub.f32 %v926_v26, %v1102_v55  ;;  %5696 = vmatpush1.bf16.msra.mxu1 %v5695_v19  ;;  %v1182_v26 = vld [vmem:[%s8068_s13 + $0x158] sm:$0xff]  ;;  %v1147_v53 = vld [vmem:[%s8068_s13 + $0x40] sm:$0xff] }
 0x26b   : > { %v1088_v58 = vadd.f32 %v1086_v52, %v1081_v56  ;;  %5698 = vmatprep.subr.bf16.mxu1 %v5697_v22  ;;  %v5701_v28 = vpack.c.bf16 %v1185_v27, %v1182_v26  ;;  %v4858_v52 = vld [vmem:[%s8132_s26] ss:$0 sm:$0xff]  ;;  %s8138_s26 = sld [smem:[#allocation28_spill]] }
 0x26c   : > { %v6788_v59 = vmul.f32 %v6724_v50, %v1104_v57  ;;  %v5709_v57 = vpack.c.bf16 %v1150_v54, %v1147_v53  ;;  %v1187_v19 = vld [vmem:[%s8069_s14] sm:$0x7] }
 0x26d   : > { %1091 = vst [vmem:[#allocation2 + $0x9] sm:$0xf] %v1088_v58  ;;  %v1153_v58 = vld [vmem:[%s8068_s13 + $0x70] sm:$0xff]  ;;  %v1192_v20 = vrot.slane %v1187_v19, %v6783_v48  ;;  %v1196_v26 = vrot.slane %v1187_v19, %v6934_v24 }
 0x26e   : > { %v1108_v45 = vmul.f32 %v6788_v59, %v6788_v59  ;;  %5700 = vmatpush1.bf16.msra.mxu1 %v5699_v25  ;;  %v1199_v25 = vsub.s32 2, %v6780_v47 }
 0x26f   : > { %5702 = vmatprep.subr.bf16.mxu1 %v5701_v28 }
 0x270   : > { %1110 = vadd.xlane.f32.xlu0 %v1108_v45  ;;  %v1200_v29 = vrot.slane %v1187_v19, %v1199_v25  ;;  %v4866_v19 = vld [vmem:[%s6971_s9 + $0x10] sm:$0xff] }
 0x272   : > { %5704 = vmatpush1.bf16.msra.mxu1 %v5703_v31 }
 0x273   : > { %5706 = vmatprep.subr.bf16.mxu1 %v5705_v35 }
 0x274   : > { %v1093_v60 = vld [vmem:[#allocation2 + $0x8] sm:$0x1f] }
 0x275   : > { %v1099_v61 = vsel %vm1098_vm4, %v1093_v60, 0.0 }
 0x276   : > { %1100 = vadd.xlane.f32.xlu1 %v1099_v61  ;;  %v1162_v61 = vld [vmem:[%s8068_s13 + $0xb8] sm:$0xff] }
 0x2fd   : > { %v1111_v36 = vpop.xlane.xlu0 %1110 }
 0x2fe   : > { %v1115_v37 = vmul.f32 0.020833334, %v1111_v36 }
 0x300   : > { %v1117_v38 = vadd.f32 1e-05, %v1115_v37 }
 0x302   : > { %6238 = vrsqrt.f32 %v1117_v38 }
 0x303   : > { %v1101_v39 = vpop.xlane.xlu1 %1100 }
 0x304   : > { %v1103_v40 = vmul.f32 0.020833334, %v1101_v39 }
 0x306   : > { %v1105_v41 = vsub.f32 %v1093_v60, %v1103_v40  ;;  %v1159_v60 = vld [vmem:[%s8068_s13 + $0xa0] sm:$0xff]  ;;  %v4966_v40 = vld [vmem:[%s8070_s15 + $0x98] sm:$0xff] }
 0x307   : > { %v5717_v62 = vpack.c.bf16 %v1162_v61, %v1159_v60 }
 0x308   : > { %v1107_v42 = vmul.f32 %v6724_v50, %v1105_v41 }
 0x30a   : > { %v1109_v43 = vmul.f32 %v1107_v42, %v1107_v42 }
 0x30c   : > { %v6239_v44 = vpop.eup %6238  ;;  %v1112_v46 = vsel %vm1098_vm4, %v1109_v43, 0.0 }
 0x30d   : > { %1113 = vadd.xlane.f32.xlu1 %v1112_v46  ;;  %v1121_v51 = vmul.f32 %v6239_v44, %v6788_v59  ;;  %v1156_v59 = vld [vmem:[%s8068_s13 + $0x88] sm:$0xff]  ;;  %v1356_v46 = vld [vmem:[%s6971_s9] sm:$0xff] }
 0x30e   : > { %v5713_v45 = vpack.c.bf16 %v1156_v59, %v1153_v58  ;;  %v1357_v44 = vld [vmem:[%s6971_s9 + $0x8] sm:$0x1f] }
 0x30f   : > { %v1129_v55 = vmul.f32 %v4857_v49, %v1121_v51 }
 0x311   : > { %v6880_v56 = vadd.f32 %v4858_v52, %v1129_v55 }
 0x313   : > { %1269 = vmatmul.mubr.f32.vlgmr.msra.gmra.mrb[0].mxu1 %v6880_v56 }
 0x314   : > { %5708 = vmatpush3.bf16.msra.mxu1 %v5705_v35  ;;  %1274 = vmatprep.mubr.f32.mxu1 %v6413_v34 }
 0x315   : > { %5710 = vmatprep.subr.bf16.mxu1 %v5709_v57 }
 0x318   : > { %5712 = vmatpush3.bf16.msra.mxu1 %v5709_v57 }
 0x319   : > { %5714 = vmatprep.subr.bf16.mxu1 %v5713_v45 }
 0x31c   : > { %5716 = vmatpush3.bf16.msra.mxu1 %v5713_v45 }
 0x31d   : > { %5718 = vmatprep.subr.bf16.mxu1 %v5717_v62 }
 0x320   : > { %5720 = vmatpush3.bf16.msra.mxu1 %v5717_v62 }
 0x321   : > { %5722 = vmatprep.subr.bf16.mxu1 %v5721_v2 }
 0x324   : > { %5724 = vmatpush3.bf16.msra.mxu1 %v5721_v2 }
 0x325   : > { %5726 = vmatprep.subr.bf16.mxu1 %v5725_v5 }
 0x328   : > { %5728 = vmatpush3.bf16.msra.mxu1 %v5725_v5 }
 0x329   : > { %5730 = vmatprep.subr.bf16.mxu1 %v5729_v8 }
 0x32c   : > { %5732 = vmatpush3.bf16.msra.mxu1 %v5729_v8 }
 0x32d   : > { %5734 = vmatprep.subr.bf16.mxu1 %v5733_v11 }
 0x330   : > { %5736 = vmatpush3.bf16.msra.mxu1 %v5733_v11 }
 0x39a   : > { %v1114_v12 = vpop.xlane.xlu1 %1113 }
 0x39b   : > { %v1116_v13 = vmul.f32 0.020833334, %v1114_v12 }
 0x39d   : > { %v1118_v14 = vadd.f32 1e-05, %v1116_v13 }
 0x39f   : > { %6240 = vrsqrt.f32 %v1118_v14 }
 0x3a9   : > { %v6241_v15 = vpop.eup %6240 }
 0x3aa   : > { %v1122_v16 = vmul.f32 %v6241_v15, %v1107_v42 }
 0x3ac   : > { %v1130_v17 = vmul.f32 %v4857_v49, %v1122_v16 }
 0x3ae   : > { %v6920_v18 = vadd.f32 %v4858_v52, %v1130_v17  ;;  %v4867_v17 = vld [vmem:[%s6971_s9 + $0x18] sm:$0x1f] }
 0x3b0   : > { %1275 = vmatmul.mubr.f32.gmra.mrb[2].mxu1 %v6920_v18 }
 0x3b1   : > { %5364 = vmatprep.mubr.f32.mxu1 %v6880_v56 }
 0x3b4   : > { %5365 = vmatmul.mubr.f32.vlgmr.msra.gmra.mrb[4].mxu1 %v6920_v18 }
 0x3e6   : > { %v1270_v21 = vpop.f32.mrb[0].mxu1 }
 0x3e7   : > { %v6929_v22 = vadd.f32 %v1270_v21, %v1192_v20  ;;  %v1272_v23 = vpop.f32.mrb[1].mxu1 }
 0x3e8   : > { %v1273_v30 = vadd.f32 %v1272_v23, %v1196_v26 }
 0x3e9   : > { %5371 = vmatprep.mubr.msk.f32.mxu0 %vm1358_vm5, %v6929_v22 }
 0x483   : > { %v1276_v27 = vpop.f32.mrb[2].mxu1 }
 0x484   : > { %v1278_v28 = vpop.f32.mrb[3].mxu1  ;;  %v6961_v43 = vadd.f32 %v1276_v27, %v1192_v20 }
 0x485   : > { %v1279_v31 = vadd.f32 %v1278_v28, %v1196_v26 }
 0x487   : > { %v5366_v33 = vpop.f32.mrb[4].mxu1  ;;  %v5737_v35 = vpack.c.bf16 %v1279_v31, %v1273_v30  ;;  %v6946_v36 = vpack.i.bf16 %v1279_v31, %v1273_v30 }
 0x488   : > { %v1353_v37 = vadd.f32 %v5366_v33, %v1200_v29  ;;  %v1347_v38 = vpop.f32.mrb[5].mxu1 }
 0x489   : > { %v1348_v39 = vadd.f32 %v1347_v38, %v1200_v29  ;;  %5739 = vmatprep.subr.msk.bf16.mxu0 %vm6942_vm6, %v5737_v35 }
 0x48a   : > { %5742 = vmatpush3.bf16.xpose.msk.msra.mxu0 %vm6942_vm6, %v5737_v35 }
 0x48b   : > { %v5743_v41 = vpack.c.bf16 %v1353_v37, %v1348_v39  ;;  %v6957_v42 = vpack.i.bf16 %v1353_v37, %v1348_v39 }
 0x48d   : > { %5745 = vmatprep.subr.msk.bf16.mxu0 %vm6951_vm8, %v5743_v41 }
 0x491   : > { %5372 = vmatmul.mubr.msk.f32.vlgmr.msra.gmra.mrb[2].mxu0 %vm1358_vm5, %v6961_v43 }
 0x492   : > { %5748 = vmatpush3.bf16.msk.msra.mxu0 %vm6951_vm8, %v5743_v41 }
 0x564   : > { %v5373_v49 = vpop.f32.mrb[2].mxu0 }
 0x565   : > { %v1443_v51 = vadd.f32 %v5373_v49, %v1357_v44  ;;  %v1437_v52 = vpop.f32.mrb[3].mxu0 }
 0x566   : > { %v1438_v53 = vadd.f32 %v1437_v52, %v1356_v46 }
 0x567   : > { %v1451_v54 = vsel %vm1450_vm9, %v1443_v51, -inf }
 0x568   : > { %1452 = vmax.xlane.f32.xlu1 %v1451_v54  ;;  %v1447_v55 = vsel %vm1446_vm10, %v1438_v53, -inf  ;;  %v1764_v54 = vld [vmem:[%s8070_s15 + $0x28] sm:$0xff] }
 0x569   : > { %1448 = vmax.xlane.f32.xlu0 %v1447_v55  ;;  %v1765_v55 = vld [vmem:[%s8070_s15 + $0x30] sm:$0xff] }
 0x5f5   : > { %v1453_v57 = vpop.xlane.xlu1 %1452 }
 0x5f6   : > { %v1455_v58 = vsub.f32 %v1443_v51, %v1453_v57  ;;  %v1449_v59 = vpop.xlane.xlu0 %1448 }
 0x5f7   : > { %v1454_v45 = vsub.f32 %v1438_v53, %v1449_v59  ;;  %v1763_v53 = vld [vmem:[%s8070_s15 + $0x20] sm:$0xff] }
 0x5f8   : > { %v1458_v60 = vmul.f32 1.442695, %v1455_v58  ;;  %v5761_v57 = vpack.c.bf16 %v1764_v54, %v1763_v53  ;;  %v1766_v58 = vld [vmem:[%s8070_s15 + $0x38] sm:$0xff] }
 0x5f9   : > { %v1456_v61 = vmul.f32 1.442695, %v1454_v45  ;;  %v5765_v59 = vpack.c.bf16 %v1766_v58, %v1765_v55  ;;  %v2136_v54 = vld [vmem:[%s8070_s15 + $0x58] sm:$0xff] }
 0x5fa   : > { %6242 = vpow2.f32 %v1458_v60 }
 0x5fb   : > { %6244 = vpow2.f32 %v1456_v61 }
 0x604   : > { %v6243_v62 = vpop.eup %6242 }
 0x605   : > { %v6245_v63 = vpop.eup %6244  ;;  %v1463_v0 = vsel %vm1450_vm9, %v6243_v62, 0.0 }
 0x606   : > { %1464 = vadd.xlane.f32.xlu1 %v1463_v0  ;;  %v1460_v1 = vsel %vm1446_vm10, %v6245_v63, 0.0 }
 0x607   : > { %1461 = vadd.xlane.f32.xlu0 %v1460_v1  ;;  %v1554_v1 = vld [vmem:[%s8070_s15] sm:$0xff] }
 0x617   : > { %1561 = vrot.lane.b32.xlu1 %v6929_v22, %s6415_s10 }
 0x61b   : > { %1563 = vrot.lane.b32.xlu1 %v6961_v43, %s6415_s10 }
 0x61d   : > { %6172 = vrot.lane.b32.xlu0 %v6946_v36, %s6415_s10 }
 0x693   : > { %v1465_v2 = vpop.xlane.xlu1 %1464 }
 0x694   : > { %6246 = vrcp.f32 %v1465_v2  ;;  %v1462_v4 = vpop.xlane.xlu0 %1461  ;;  %v1555_v2 = vld [vmem:[%s8070_s15 + $0x8] sm:$0xff] }
 0x695   : > { %6248 = vrcp.f32 %v1462_v4  ;;  %v5769_v4 = vpack.c.bf16 %v1555_v2, %v1554_v1 }
 0x697   : > { %v1562_v13 = vpop.permute.xlu1 %1561 }
 0x698   : > { %v6173_v5 = vpop.permute.xlu0 %6172 }
 0x699   : > { %v6175_v6 = vunpack.i.h.bf16 %v6173_v5  ;;  %v6174_v7 = vunpack.i.l.bf16 %v6173_v5  ;;  %v1556_v5 = vld [vmem:[%s8070_s15 + $0x10] sm:$0xff] }
 0x69b   : > { %v5749_v8 = vpack.c.bf16 %v6175_v6, %v6174_v7  ;;  %v1564_v14 = vpop.permute.xlu1 %1563  ;;  %v1557_v6 = vld [vmem:[%s8070_s15 + $0x18] sm:$0xff] }
 0x69d   : > { %5751 = vmatprep.subr.msk.bf16.mxu0 %vm6942_vm6, %v5749_v8 }
 0x69e   : > { %v6247_v9 = vpop.eup %6246 }
 0x69f   : > { %v6249_v10 = vpop.eup %6248  ;;  %v1469_v12 = vmul.f32 %v6247_v9, %v6243_v62 }
 0x6a0   : > { %v1468_v11 = vmul.f32 %v6249_v10, %v6245_v63  ;;  %v5773_v10 = vpack.c.bf16 %v1557_v6, %v1556_v5  ;;  %v4891_v6 = vld [vmem:[%s6971_s9 + $0x38] sm:$0x1f] }
 0x6a2   : > { %5378 = vmatprep.mubr.msk.f32.mxu0 %vm1446_vm10, %v1468_v11 }
 0x6a3   : > { %5379 = vmatmul.mubr.msk.f32.vlgmr.msra.gmra.mrb[4].mxu0 %vm1446_vm10, %v1469_v12 }
 0x6a4   : > { %5754 = vmatpush3.bf16.xpose.msk.msra.mxu0 %vm6942_vm6, %v5749_v8  ;;  %5385 = vmatprep.mubr.msk.f32.mxu0 %vm1358_vm5, %v1562_v13 }
 0x6a5   : > { %5762 = vmatprep.subr.bf16.mxu0 %v5761_v57 }
 0x6ab   : > { %5386 = vmatmul.mubr.msk.f32.vlgmr.msra.gmra.mrb[6].mxu0 %vm1358_vm5, %v1564_v14 }
 0x6ac   : > { %5764 = vmatpush3.bf16.msra.mxu0 %v5761_v57 }
 0x6ad   : > { %5766 = vmatprep.subr.bf16.mxu0 %v5765_v59 }
 0x6b0   : > { %5768 = vmatpush3.bf16.msra.mxu0 %v5765_v59 }
 0x6b1   : > { %5770 = vmatprep.subr.bf16.mxu0 %v5769_v4 }
 0x776   : > { %v6993_v15 = vpop.f32.mrb[4].mxu0 }
 0x777   : > { %v6995_v16 = vpop.f32.mrb[5].mxu0 }
 0x77e   : > { %v5387_v20 = vpop.f32.mrb[6].mxu0 }
 0x77f   : > { %v1649_v21 = vadd.f32 %v5387_v20, %v4867_v17  ;;  %v1643_v23 = vpop.f32.mrb[7].mxu0 }
 0x780   : > { %v1644_v26 = vadd.f32 %v4866_v19, %v1643_v23  ;;  %v4880_v19 = vld [vmem:[%s6971_s9 + $0x28] sm:$0x1f] }
 0x781   : > { %v1655_v27 = vsel %vm1450_vm9, %v1649_v21, -inf }
 0x782   : > { %1656 = vmax.xlane.f32.xlu0 %v1655_v27  ;;  %v1652_v28 = vsel %vm1446_vm10, %v1644_v26, -inf }
 0x783   : > { %1653 = vmax.xlane.f32.xlu1 %v1652_v28 }
 0x794   : > { %6177 = vrot.lane.b32.xlu1 %v6957_v42, %s6415_s10 }
 0x798   : > { %1932 = vrot.lane.b32.xlu1 %v6929_v22, %s6416_s1 }
 0x79c   : > { %1934 = vrot.lane.b32.xlu1 %v6961_v43, %s6416_s1 }
 0x80f   : > { %v1657_v29 = vpop.xlane.xlu0 %1656 }
 0x810   : > { %v1659_v30 = vsub.f32 %v1649_v21, %v1657_v29  ;;  %v1654_v31 = vpop.xlane.xlu1 %1653 }
 0x811   : > { %v1658_v33 = vsub.f32 %v1644_v26, %v1654_v31 }
 0x812   : > { %v1662_v35 = vmul.f32 1.442695, %v1659_v30 }
 0x813   : > { %v1660_v37 = vmul.f32 1.442695, %v1658_v33 }
 0x814   : > { %v6178_v38 = vpop.permute.xlu1 %6177 }
 0x815   : > { %6250 = vpow2.f32 %v1660_v37  ;;  %v6180_v39 = vunpack.i.h.bf16 %v6178_v38  ;;  %v6179_v41 = vunpack.i.l.bf16 %v6178_v38 }
 0x816   : > { %6252 = vpow2.f32 %v1662_v35 }
 0x817   : > { %v5755_v44 = vpack.c.bf16 %v6180_v39, %v6179_v41 }
 0x818   : > { %v1933_v14 = vpop.permute.xlu1 %1932 }
 0x819   : > { %5757 = vmatprep.subr.msk.bf16.mxu1 %vm6951_vm8, %v5755_v44 }
 0x81a   : > { %5760 = vmatpush3.bf16.msk.msra.mxu1 %vm6951_vm8, %v5755_v44 }
 0x81c   : > { %v1935_v17 = vpop.permute.xlu1 %1934 }
 0x81f   : > { %v6251_v46 = vpop.eup %6250 }
 0x820   : > { %v1664_v49 = vsel %vm1446_vm10, %v6251_v46, 0.0  ;;  %v6253_v51 = vpop.eup %6252 }
 0x821   : > { %1665 = vadd.xlane.f32.xlu0 %v1664_v49  ;;  %v1667_v52 = vsel %vm1450_vm9, %v6253_v51, 0.0  ;;  %v2133_v49 = vld [vmem:[%s8070_s15 + $0x40] sm:$0xff] }
 0x825   : > { %1668 = vadd.xlane.f32.xlu0 %v1667_v52  ;;  %v2135_v52 = vld [vmem:[%s8070_s15 + $0x50] sm:$0xff] }
 0x826   : > { %v5793_v55 = vpack.c.bf16 %v2136_v54, %v2135_v52 }
 0x83b   : > { %6182 = vrot.lane.b32.xlu0 %v6946_v36, %s6416_s1 }
 0x8ae   : > { %v1666_v45 = vpop.xlane.xlu0 %1665 }
 0x8af   : > { %6254 = vrcp.f32 %v1666_v45 }
 0x8b2   : > { %v1669_v60 = vpop.xlane.xlu0 %1668 }
 0x8b3   : > { %6256 = vrcp.f32 %v1669_v60 }
 0x8b6   : > { %v6183_v7 = vpop.permute.xlu0 %6182 }
 0x8b7   : > { %v6185_v11 = vunpack.i.h.bf16 %v6183_v7  ;;  %v6184_v12 = vunpack.i.l.bf16 %v6183_v7  ;;  %v4890_v7 = vld [vmem:[%s6971_s9 + $0x30] sm:$0xff] }
 0x8b9   : > { %v6255_v61 = vpop.eup %6254  ;;  %v5777_v13 = vpack.c.bf16 %v6185_v11, %v6184_v12 }
 0x8ba   : > { %v1672_v62 = vmul.f32 %v6255_v61, %v6251_v46 }
 0x8bc   : > { %5392 = vmatprep.mubr.msk.f32.mxu1 %vm1446_vm10, %v1672_v62 }
 0x8bd   : > { %v6257_v63 = vpop.eup %6256 }
 0x8be   : > { %v1673_v0 = vmul.f32 %v6257_v63, %v6253_v51  ;;  %v2134_v51 = vld [vmem:[%s8070_s15 + $0x48] sm:$0xff] }
 0x8bf   : > { %v5789_v53 = vpack.c.bf16 %v2134_v51, %v2133_v49 }
 0x8c0   : > { %5393 = vmatmul.mubr.msk.f32.vlgmr.msra.gmra.mrb[6].mxu1 %vm1446_vm10, %v1673_v0 }
 0x993   : > { %v5394_v8 = vpop.f32.mrb[6].mxu1 }
 0x994   : > { %v1754_v9 = vpop.f32.mrb[7].mxu1 }
 0x995   : > { %5403 = vmatprep.mubr.msk.f32.mxu0 %vm1358_vm5, %v1754_v9 }
 0x996   : > { %5404 = vmatmul.mubr.msk.f32.vlgmr.msra.gmra.mrb[8].mxu0 %vm1358_vm5, %v5394_v8 }
 0x997   : > { %5772 = vmatpush3.bf16.msra.mxu0 %v5769_v4  ;;  %5414 = vmatprep.mubr.msk.f32.mxu0 %vm1358_vm5, %v6995_v16  ;;  %v4879_v16 = vld [vmem:[%s6971_s9 + $0x20] sm:$0xff] }
 0x998   : > { %5774 = vmatprep.subr.bf16.mxu0 %v5773_v10 }
 0x99b   : > { %5776 = vmatpush3.bf16.msra.mxu0 %v5773_v10 }
 0x99c   : > { %5779 = vmatprep.subr.msk.bf16.mxu0 %vm6942_vm6, %v5777_v13 }
 0x99e   : > { %5415 = vmatmul.mubr.msk.f32.vlgmr.msra.gmra.mrb[8].mxu0 %vm1358_vm5, %v6993_v15 }
 0x99f   : > { %5421 = vmatprep.mubr.msk.f32.mxu0 %vm1358_vm5, %v1933_v14 }
 0x9a4   : > { %5782 = vmatpush3.bf16.xpose.msk.msra.mxu0 %vm6942_vm6, %v5777_v13 }
 0x9a5   : > { %5790 = vmatprep.subr.bf16.mxu0 %v5789_v53 }
 0x9ab   : > { %5422 = vmatmul.mubr.msk.f32.vlgmr.msra.gmra.mrb[10].mxu0 %vm1358_vm5, %v1935_v17 }
 0x9ac   : > { %5792 = vmatpush3.bf16.msra.mxu0 %v5789_v53  ;;  %v4901_v53 = vld [vmem:[%s8071_s16] ss:$0 sm:$0xff] }
 0x9ad   : > { %5794 = vmatprep.subr.bf16.mxu0 %v5793_v55 }
 0x9b0   : > { %5796 = vmatpush3.bf16.msra.mxu0 %v5793_v55 }
 0xa7e   : > { %v5423_v20 = vpop.f32.mrb[10].mxu0 }
 0xa7f   : > { %v2020_v21 = vadd.f32 %v5423_v20, %v4880_v19  ;;  %v2014_v23 = vpop.f32.mrb[11].mxu0 }
 0xa80   : > { %v2015_v26 = vadd.f32 %v4879_v16, %v2014_v23 }
 0xa81   : > { %v2026_v27 = vsel %vm1450_vm9, %v2020_v21, -inf }
 0xa82   : > { %2027 = vmax.xlane.f32.xlu0 %v2026_v27  ;;  %v2023_v28 = vsel %vm1446_vm10, %v2015_v26, -inf }
 0xa83   : > { %2024 = vmax.xlane.f32.xlu1 %v2023_v28 }
 0xa94   : > { %6187 = vrot.lane.b32.xlu1 %v6957_v42, %s6416_s1 }
 0xa98   : > { %2223 = vrot.lane.b32.xlu1 %v6929_v22, %s6417_s27 }
 0xa9c   : > { %2225 = vrot.lane.b32.xlu1 %v6961_v43, %s6417_s27 }
 0xb0f   : > { %v2028_v15 = vpop.xlane.xlu0 %2027 }
 0xb10   : > { %v2030_v29 = vsub.f32 %v2020_v21, %v2028_v15  ;;  %v2025_v30 = vpop.xlane.xlu1 %2024 }
 0xb11   : > { %v2029_v31 = vsub.f32 %v2015_v26, %v2025_v30 }
 0xb12   : > { %v2033_v33 = vmul.f32 1.442695, %v2030_v29 }
 0xb13   : > { %v2031_v35 = vmul.f32 1.442695, %v2029_v31  ;;  %v2424_v31 = vld [vmem:[%s8070_s15 + $0x60] sm:$0xff] }
 0xb14   : > { %6258 = vpow2.f32 %v2033_v33  ;;  %v6188_v37 = vpop.permute.xlu1 %6187  ;;  %v2425_v33 = vld [vmem:[%s8070_s15 + $0x68] sm:$0xff] }
 0xb15   : > { %v6190_v38 = vunpack.i.h.bf16 %v6188_v37  ;;  %v6189_v39 = vunpack.i.l.bf16 %v6188_v37  ;;  %6260 = vpow2.f32 %v2031_v35  ;;  %v2426_v35 = vld [vmem:[%s8070_s15 + $0x70] sm:$0xff]  ;;  %v5809_v37 = vpack.c.bf16 %v2425_v33, %v2424_v31 }
 0xb16   : > { %v2580_v31 = vld [vmem:[%s8074_s19 + $0x70] sm:$0xff] }
 0xb17   : > { %v5783_v41 = vpack.c.bf16 %v6190_v38, %v6189_v39  ;;  %v2427_v38 = vld [vmem:[%s8070_s15 + $0x78] sm:$0xff]  ;;  %5810 = vmatprep.subr.bf16.mxu0 %v5809_v37 }
 0xb18   : > { %v2224_v1 = vpop.permute.xlu1 %2223  ;;  %v5813_v39 = vpack.c.bf16 %v2427_v38, %v2426_v35  ;;  %v2583_v35 = vld [vmem:[%s8074_s19 + $0x88] sm:$0xff] }
 0xb19   : > { %5785 = vmatprep.subr.msk.bf16.mxu1 %vm6951_vm8, %v5783_v41 }
 0xb1a   : > { %5788 = vmatpush3.bf16.msk.msra.mxu1 %vm6951_vm8, %v5783_v41 }
 0xb1c   : > { %v2226_v2 = vpop.permute.xlu1 %2225 }
 0xb1e   : > { %v6259_v22 = vpop.eup %6258 }
 0xb1f   : > { %v2038_v43 = vsel %vm1450_vm9, %v6259_v22, 0.0  ;;  %v6261_v44 = vpop.eup %6260 }
 0xb20   : > { %2039 = vadd.xlane.f32.xlu0 %v2038_v43  ;;  %v2035_v46 = vsel %vm1446_vm10, %v6261_v44, 0.0 }
 0xb24   : > { %2036 = vadd.xlane.f32.xlu0 %v2035_v46 }
 0xb3a   : > { %6192 = vrot.lane.b32.xlu0 %v6946_v36, %s6417_s27 }
 0xbad   : > { %v2040_v36 = vpop.xlane.xlu0 %2039 }
 0xbae   : > { %6262 = vrcp.f32 %v2040_v36 }
 0xbb1   : > { %v2037_v57 = vpop.xlane.xlu0 %2036 }
 0xbb2   : > { %6264 = vrcp.f32 %v2037_v57 }
 0xbb5   : > { %v6193_v58 = vpop.permute.xlu0 %6192 }
 0xbb6   : > { %v6195_v59 = vunpack.i.h.bf16 %v6193_v58  ;;  %v6194_v45 = vunpack.i.l.bf16 %v6193_v58 }
 0xbb8   : > { %v5797_v60 = vpack.c.bf16 %v6195_v59, %v6194_v45  ;;  %v6263_v61 = vpop.eup %6262 }
 0xbb9   : > { %v2044_v0 = vmul.f32 %v6263_v61, %v6259_v22  ;;  %v2569_v61 = vld [vmem:[%s8074_s19 + $0x18] sm:$0xff] }
 0xbba   : > { %5799 = vmatprep.subr.msk.bf16.mxu1 %vm6942_vm6, %v5797_v60 }
 0xbbc   : > { %v6265_v62 = vpop.eup %6264 }
 0xbbd   : > { %v2043_v63 = vmul.f32 %v6265_v62, %v6261_v44  ;;  %v2566_v62 = vld [vmem:[%s8074_s19] sm:$0xff] }
 0xbbf   : > { %5428 = vmatprep.mubr.msk.f32.mxu1 %vm1446_vm10, %v2043_v63 }
 0xbc0   : > { %5429 = vmatmul.mubr.msk.f32.vlgmr.msra.gmra.mrb[8].mxu1 %vm1446_vm10, %v2044_v0  ;;  %v2573_v0 = vld [vmem:[%s8074_s19 + $0x38] sm:$0xff] }
 0xbc1   : > { %5802 = vmatpush3.bf16.xpose.msk.msra.mxu1 %vm6942_vm6, %v5797_v60  ;;  %5446 = vmatprep.mubr.msk.f32.mxu1 %vm1358_vm5, %v2224_v1  ;;  %v2567_v60 = vld [vmem:[%s8074_s19 + $0x8] sm:$0xff] }
 0xbc2   : > { %v5817_v63 = vpack.c.bf16 %v2569_v61, %v2567_v60  ;;  %v2594_v61 = vld [vmem:[%s8074_s19 + $0xe0] sm:$0xff] }
 0xbc8   : > { %5447 = vmatmul.mubr.msk.f32.vlgmr.msra.gmra.mrb[10].mxu1 %vm1358_vm5, %v2226_v2 }
 0xc93   : > { %v5430_v4 = vpop.f32.mrb[8].mxu1 }
 0xc94   : > { %v2124_v5 = vpop.f32.mrb[9].mxu1 }
 0xc95   : > { %5439 = vmatprep.mubr.msk.f32.mxu0 %vm1358_vm5, %v2124_v5  ;;  %v2572_v5 = vld [vmem:[%s8074_s19 + $0x30] sm:$0xff] }
 0xc96   : > { %5440 = vmatmul.mubr.msk.f32.vlgmr.msra.gmra.mrb[8].mxu0 %vm1358_vm5, %v5430_v4  ;;  %v2570_v4 = vld [vmem:[%s8074_s19 + $0x20] sm:$0xff] }
 0xc97   : > { %5812 = vmatpush3.bf16.msra.mxu0 %v5809_v37  ;;  %v2585_v37 = vld [vmem:[%s8074_s19 + $0x98] sm:$0xff] }
 0xc98   : > { %5814 = vmatprep.subr.bf16.mxu0 %v5813_v39  ;;  %v5833_v38 = vpack.c.bf16 %v2585_v37, %v2583_v35  ;;  %v2727_v35 = vld [vmem:[%s8076_s21 + $0x20] sm:$0xff]  ;;  %v2728_v37 = vld [vmem:[%s8076_s21 + $0x28] sm:$0xff] }
 0xc9b   : > { %v5448_v8 = vpop.f32.mrb[10].mxu1  ;;  %5816 = vmatpush3.bf16.msra.mxu0 %v5813_v39  ;;  %v2582_v39 = vld [vmem:[%s8074_s19 + $0x80] sm:$0xff] }
 0xc9c   : > { %v2311_v9 = vadd.f32 %v5448_v8, %v4891_v6  ;;  %v2305_v10 = vpop.f32.mrb[11].mxu1  ;;  %v2575_v6 = vld [vmem:[%s8074_s19 + $0x48] sm:$0xff]  ;;  %v5823_v8 = vpack.c.bf16 %v2572_v5, %v2570_v4 }
 0xc9d   : > { %v2306_v11 = vadd.f32 %v4890_v7, %v2305_v10  ;;  %v2577_v7 = vld [vmem:[%s8074_s19 + $0x58] sm:$0xff]  ;;  %v2574_v10 = vld [vmem:[%s8074_s19 + $0x40] sm:$0xff] }
 0xc9e   : > { %v2317_v12 = vsel %vm1450_vm9, %v2311_v9, -inf }
 0xc9f   : > { %2318 = vmax.xlane.f32.xlu0 %v2317_v12  ;;  %v2314_v13 = vsel %vm1446_vm10, %v2306_v11, -inf }
 0xca0   : > { %2315 = vmax.xlane.f32.xlu1 %v2314_v13 }
 0xcb1   : > { %6197 = vrot.lane.b32.xlu1 %v6957_v42, %s6417_s27 }
 0xd2c   : > { %v2319_v14 = vpop.xlane.xlu0 %2318 }
 0xd2d   : > { %v2321_v17 = vsub.f32 %v2311_v9, %v2319_v14  ;;  %v2316_v19 = vpop.xlane.xlu1 %2315  ;;  %v5825_v9 = vpack.c.bf16 %v2577_v7, %v2575_v6 }
 0xd2e   : > { %v2320_v16 = vsub.f32 %v2306_v11, %v2316_v19  ;;  %v2576_v11 = vld [vmem:[%s8074_s19 + $0x50] sm:$0xff] }
 0xd2f   : > { %v2324_v20 = vmul.f32 1.442695, %v2321_v17  ;;  %v5827_v12 = vpack.c.bf16 %v2576_v11, %v2574_v10 }
 0xd30   : > { %v2322_v21 = vmul.f32 1.442695, %v2320_v16 }
 0xd31   : > { %v6198_v23 = vpop.permute.xlu1 %6197 }
 0xd32   : > { %6266 = vpow2.f32 %v2322_v21  ;;  %v6200_v26 = vunpack.i.h.bf16 %v6198_v23  ;;  %v6199_v27 = vunpack.i.l.bf16 %v6198_v23 }
 0xd33   : > { %6268 = vpow2.f32 %v2324_v20 }
 0xd34   : > { %v5803_v28 = vpack.c.bf16 %v6200_v26, %v6199_v27 }
 0xd36   : > { %5805 = vmatprep.subr.msk.bf16.mxu1 %vm6951_vm8, %v5803_v28 }
 0xd37   : > { %5808 = vmatpush3.bf16.msk.msra.mxu1 %vm6951_vm8, %v5803_v28 }
 0xd38   : > { %5818 = vmatprep.subr.bf16.mxu1 %v5817_v63 }
 0xd3c   : > { %v6267_v15 = vpop.eup %6266 }
 0xd3d   : > { %v2326_v42 = vsel %vm1446_vm10, %v6267_v15, 0.0  ;;  %v6269_v29 = vpop.eup %6268 }
 0xd3e   : > { %2327 = vadd.xlane.f32.xlu0 %v2326_v42  ;;  %v2329_v30 = vsel %vm1450_vm9, %v6269_v29, 0.0  ;;  %v2581_v42 = vld [vmem:[%s8074_s19 + $0x78] sm:$0xff] }
 0xd42   : > { %2330 = vadd.xlane.f32.xlu0 %v2329_v30  ;;  %v2578_v30 = vld [vmem:[%s8074_s19 + $0x60] sm:$0xff] }
 0xd43   : > { %v5831_v33 = vpack.c.bf16 %v2580_v31, %v2578_v30  ;;  %v2743_v30 = vld [vmem:[%s8076_s21 + $0xa0] sm:$0xff]  ;;  %v2744_v31 = vld [vmem:[%s8076_s21 + $0xa8] sm:$0xff] }
 0xdcb   : > { %v2328_v41 = vpop.xlane.xlu0 %2327 }
 0xdcc   : > { %6270 = vrcp.f32 %v2328_v41  ;;  %v2584_v41 = vld [vmem:[%s8074_s19 + $0x90] sm:$0xff] }
 0xdcf   : > { %v2331_v22 = vpop.xlane.xlu0 %2330 }
 0xdd0   : > { %6272 = vrcp.f32 %v2331_v22  ;;  %v5835_v22 = vpack.c.bf16 %v2584_v41, %v2582_v39  ;;  %v2745_v39 = vld [vmem:[%s8076_s21 + $0xb0] sm:$0xff]  ;;  %v2746_v41 = vld [vmem:[%s8076_s21 + $0xb8] sm:$0xff] }
 0xdd6   : > { %v6271_v43 = vpop.eup %6270 }
 0xdd7   : > { %v2334_v44 = vmul.f32 %v6271_v43, %v6267_v15  ;;  %v2579_v15 = vld [vmem:[%s8074_s19 + $0x68] sm:$0xff] }
 0xdd8   : > { %v2587_v43 = vld [vmem:[%s8074_s19 + $0xa8] sm:$0xff] }
 0xdd9   : > { %5453 = vmatprep.mubr.msk.f32.mxu1 %vm1446_vm10, %v2334_v44  ;;  %v2589_v44 = vld [vmem:[%s8074_s19 + $0xb8] sm:$0xff] }
 0xdda   : > { %v6273_v46 = vpop.eup %6272 }
 0xddb   : > { %v2335_v49 = vmul.f32 %v6273_v46, %v6269_v29  ;;  %v5829_v29 = vpack.c.bf16 %v2581_v42, %v2579_v15  ;;  %v5837_v46 = vpack.c.bf16 %v2589_v44, %v2587_v43  ;;  %v2725_v15 = vld [vmem:[%s8076_s21 + $0x10] sm:$0xff]  ;;  %v2726_v42 = vld [vmem:[%s8076_s21 + $0x18] sm:$0xff] }
 0xddc   : > { %v2729_v43 = vld [vmem:[%s8076_s21 + $0x30] sm:$0xff]  ;;  %v2730_v44 = vld [vmem:[%s8076_s21 + $0x38] sm:$0xff] }
 0xddd   : > { %5454 = vmatmul.mubr.msk.f32.vlgmr.msra.gmra.mrb[12].mxu1 %vm1446_vm10, %v2335_v49  ;;  %v2586_v49 = vld [vmem:[%s8074_s19 + $0xa0] sm:$0xff] }
 0xdde   : > { %2674 = vmatprep.mubr.f32.mxu1 %v6413_v34 }
 0xeb0   : > { %v5455_v51 = vpop.f32.mrb[12].mxu1 }
 0xeb1   : > { %v2415_v52 = vpop.f32.mrb[13].mxu1 }
 0xeb2   : > { %5464 = vmatprep.mubr.msk.f32.mxu0 %vm1358_vm5, %v2415_v52 }
 0xeb3   : > { %5465 = vmatmul.mubr.msk.f32.vlgmr.msra.gmra.mrb[8].mxu0 %vm1358_vm5, %v5455_v51  ;;  %v2588_v51 = vld [vmem:[%s8074_s19 + $0xb0] sm:$0xff] }
 0xeb4   : > { %v5839_v52 = vpack.c.bf16 %v2588_v51, %v2586_v49  ;;  %v2747_v49 = vld [vmem:[%s8076_s21 + $0xc0] sm:$0xff]  ;;  %v2748_v51 = vld [vmem:[%s8076_s21 + $0xc8] sm:$0xff] }
 0xf86   : > { %v5466_v54 = vpop.f32.mrb[8].mxu0 }
 0xf87   : > { %v2519_v55 = vadd.f32 %v5466_v54, %v4901_v53  ;;  %v2500_v36 = vpop.f32.mrb[9].mxu0  ;;  %v2593_v54 = vld [vmem:[%s8074_s19 + $0xd8] sm:$0xff] }
 0xf88   : > { %v2518_v57 = vadd.f32 %v4901_v53, %v2500_v36  ;;  %v2591_v53 = vld [vmem:[%s8074_s19 + $0xc8] sm:$0xff] }
 0xf89   : > { %v2521_v59 = vadd.f32 %v2519_v55, %v6920_v18  ;;  %v2571_v18 = vld [vmem:[%s8074_s19 + $0x28] sm:$0xff]  ;;  %v2590_v55 = vld [vmem:[%s8074_s19 + $0xc0] sm:$0xff]  ;;  %v5841_v36 = vpack.c.bf16 %v2593_v54, %v2591_v53  ;;  %v5865_v53 = vpack.c.bf16 %v2748_v51, %v2747_v49 }
 0xf8a   : > { %v2520_v58 = vadd.f32 %v2518_v57, %v6880_v56  ;;  %v2568_v56 = vld [vmem:[%s8074_s19 + $0x10] sm:$0xff]  ;;  %v5821_v2 = vpack.c.bf16 %v2573_v0, %v2571_v18  ;;  %v2740_v18 = vld [vmem:[%s8076_s21 + $0x88] sm:$0xff]  ;;  %v2723_v0 = vld [vmem:[%s8076_s21] sm:$0xff] }
 0xf8b   : > { %v2526_v45 = vsel %vm1098_vm4, %v2521_v59, 0.0  ;;  %v5819_v1 = vpack.c.bf16 %v2568_v56, %v2566_v62  ;;  %v2592_v57 = vld [vmem:[%s8074_s19 + $0xd0] sm:$0xff]  ;;  %v2739_v56 = vld [vmem:[%s8076_s21 + $0x80] sm:$0xff]  ;;  %v2732_v54 = vld [vmem:[%s8076_s21 + $0x48] sm:$0xff] }
 0xf8c   : > { %2524 = vadd.xlane.f32.xlu0 %v2520_v58  ;;  %v2596_v62 = vld [vmem:[%s8074_s19 + $0xf0] sm:$0xff] }
 0xf8d   : > { %5820 = vmatpush1.bf16.msra.mxu1 %v5819_v1  ;;  %v5847_v63 = vpack.c.bf16 %v2596_v62, %v2594_v61  ;;  %v5849_v1 = vpack.c.bf16 %v2740_v18, %v2739_v56  ;;  %v2752_v61 = vld [vmem:[%s8076_s21 + $0xe8] sm:$0xff]  ;;  %v2735_v56 = vld [vmem:[%s8076_s21 + $0x60] sm:$0xff] }
 0xf8e   : > { %5822 = vmatprep.subr.bf16.mxu1 %v5821_v2  ;;  %v2724_v2 = vld [vmem:[%s8076_s21 + $0x8] sm:$0xff] }
 0xf8f   : > { %v5851_v4 = vpack.c.bf16 %v2724_v2, %v2723_v0  ;;  %5850 = vmatprep.subr.bf16.mxu0 %v5849_v1  ;;  %v2736_v18 = vld [vmem:[%s8076_s21 + $0x68] sm:$0xff]  ;;  %v2753_v0 = vld [vmem:[%s8076_s21 + $0xf0] sm:$0xff]  ;;  %v2754_v1 = vld [vmem:[%s8076_s21 + $0xf8] sm:$0xff] }
 0xf90   : > { %2527 = vadd.xlane.f32.xlu0 %v2526_v45  ;;  %v5843_v45 = vpack.c.bf16 %v2592_v57, %v2590_v55  ;;  %v2749_v55 = vld [vmem:[%s8076_s21 + $0xd0] sm:$0xff]  ;;  %v5875_v2 = vpack.c.bf16 %v2736_v18, %v2735_v56 }
 0xf91   : > { %5824 = vmatpush1.bf16.msra.mxu1 %v5823_v8  ;;  %5852 = vmatpush3.bf16.msra.mxu0 %v5851_v4  ;;  %v5877_v4 = vpack.c.bf16 %v2754_v1, %v2753_v0 }
 0xf92   : > { %5826 = vmatprep.subr.bf16.mxu1 %v5825_v9 }
 0xf95   : > { %5828 = vmatpush1.bf16.msra.mxu1 %v5827_v12  ;;  %v4902_v12 = vld [vmem:[%s8072_s17] ss:$0 sm:$0xff] }
 0xf96   : > { %5830 = vmatprep.subr.bf16.mxu1 %v5829_v29  ;;  %v5855_v29 = vpack.c.bf16 %v2726_v42, %v2725_v15 }
 0xf99   : > { %5832 = vmatpush1.bf16.msra.mxu1 %v5831_v33  ;;  %v5857_v33 = vpack.c.bf16 %v2744_v31, %v2743_v30 }
 0xf9a   : > { %5834 = vmatprep.subr.bf16.mxu1 %v5833_v38  ;;  %v5859_v38 = vpack.c.bf16 %v2728_v37, %v2727_v35 }
 0xf9d   : > { %5836 = vmatpush1.bf16.msra.mxu1 %v5835_v22  ;;  %v5861_v22 = vpack.c.bf16 %v2746_v41, %v2745_v39 }
 0xf9e   : > { %5838 = vmatprep.subr.bf16.mxu1 %v5837_v46  ;;  %v5863_v46 = vpack.c.bf16 %v2730_v44, %v2729_v43 }
 0xfa1   : > { %5840 = vmatpush1.bf16.msra.mxu1 %v5839_v52  ;;  %v2731_v52 = vld [vmem:[%s8076_s21 + $0x40] sm:$0xff] }
 0xfa2   : > { %5842 = vmatprep.subr.bf16.mxu1 %v5841_v36  ;;  %v2750_v36 = vld [vmem:[%s8076_s21 + $0xd8] sm:$0xff]  ;;  %v5867_v57 = vpack.c.bf16 %v2732_v54, %v2731_v52 }
 0xfa5   : > { %5844 = vmatpush1.bf16.msra.mxu1 %v5843_v45  ;;  %v2734_v45 = vld [vmem:[%s8076_s21 + $0x58] sm:$0xff] }
0x1019   : > { %v2525_v13 = vpop.xlane.xlu0 %2524 }
0x101a   : > { %v2529_v14 = vmul.f32 0.020833334, %v2525_v13 }
0x101c   : > { %v2531_v17 = vsub.f32 %v2520_v58, %v2529_v14  ;;  %v2595_v58 = vld [vmem:[%s8074_s19 + $0xe8] sm:$0xff]  ;;  %v4903_v14 = vld [vmem:[%s8073_s18] ss:$0 sm:$0xff] }
0x101d   : > { %v2528_v19 = vpop.xlane.xlu0 %2527 }
0x101e   : > { %v2530_v16 = vmul.f32 0.020833334, %v2528_v19  ;;  %v7165_v20 = vmul.f32 %v6724_v50, %v2531_v17 }
0x1020   : > { %v2532_v21 = vsub.f32 %v2521_v59, %v2530_v16  ;;  %v2535_v23 = vmul.f32 %v7165_v20, %v7165_v20  ;;  %v2597_v59 = vld [vmem:[%s8074_s19 + $0xf8] sm:$0xff] }
0x1021   : > { %v5845_v60 = vpack.c.bf16 %v2597_v59, %v2595_v58  ;;  %v5869_v58 = vpack.c.bf16 %v2750_v36, %v2749_v55  ;;  %v2733_v59 = vld [vmem:[%s8076_s21 + $0x50] sm:$0xff] }
0x1022   : > { %2537 = vadd.xlane.f32.xlu0 %v2535_v23  ;;  %v7170_v26 = vmul.f32 %v6724_v50, %v2532_v21  ;;  %v5871_v62 = vpack.c.bf16 %v2734_v45, %v2733_v59 }
0x1023   : > { %5846 = vmatprep.subr.bf16.mxu1 %v5845_v60  ;;  %v2751_v60 = vld [vmem:[%s8076_s21 + $0xe0] sm:$0xff] }
0x1024   : > { %v2536_v27 = vmul.f32 %v7170_v26, %v7170_v26  ;;  %5848 = vmatpush1.bf16.msra.mxu1 %v5847_v63  ;;  %v5873_v63 = vpack.c.bf16 %v2752_v61, %v2751_v60 }
0x1026   : > { %v2539_v28 = vsel %vm1098_vm4, %v2536_v27, 0.0 }
0x1027   : > { %2540 = vadd.xlane.f32.xlu0 %v2539_v28  ;;  %v2742_v28 = vld [vmem:[%s8076_s21 + $0x98] sm:$0xff] }
0x10af   : > { %v2538_v5 = vpop.xlane.xlu0 %2537 }
0x10b0   : > { %v2542_v6 = vmul.f32 0.020833334, %v2538_v5  ;;  %v2737_v5 = vld [vmem:[%s8076_s21 + $0x70] sm:$0xff] }
0x10b2   : > { %v2544_v7 = vadd.f32 1e-05, %v2542_v6  ;;  %v2738_v6 = vld [vmem:[%s8076_s21 + $0x78] sm:$0xff] }
0x10b4   : > { %6274 = vrsqrt.f32 %v2544_v7  ;;  %v2541_v8 = vpop.xlane.xlu0 %2540  ;;  %v5879_v7 = vpack.c.bf16 %v2738_v6, %v2737_v5 }
0x10b5   : > { %v2543_v9 = vmul.f32 0.020833334, %v2541_v8  ;;  %v2598_v8 = vld [vmem:[%s8075_s20] sm:$0x3] }
0x10b7   : > { %v2545_v10 = vadd.f32 1e-05, %v2543_v9  ;;  %v2603_v9 = vrot.slane %v2598_v8, %v6783_v48 }
0x10b9   : > { %6276 = vrsqrt.f32 %v2545_v10  ;;  %v2607_v10 = vrot.slane %v2598_v8, %v6934_v24 }
0x10be   : > { %v6275_v11 = vpop.eup %6274 }
0x10bf   : > { %v2548_v13 = vmul.f32 %v6275_v11, %v7165_v20  ;;  %v2741_v20 = vld [vmem:[%s8076_s21 + $0x90] sm:$0xff] }
0x10c1   : > { %v2556_v17 = vmul.f32 %v4902_v12, %v2548_v13 }
0x10c3   : > { %v6277_v19 = vpop.eup %6276  ;;  %v7254_v16 = vadd.f32 %v4903_v14, %v2556_v17 }
0x10c4   : > { %v2549_v21 = vmul.f32 %v6277_v19, %v7170_v26  ;;  %v5853_v26 = vpack.c.bf16 %v2742_v28, %v2741_v20 }
0x10c5   : > { %2675 = vmatmul.mubr.f32.vlgmr.msra.gmra.mrb[14].mxu1 %v7254_v16 }
0x10c6   : > { %2680 = vmatprep.mubr.f32.mxu1 %v6413_v34  ;;  %v2557_v23 = vmul.f32 %v4902_v12, %v2549_v21  ;;  %5854 = vmatprep.subr.bf16.mxu0 %v5853_v26 }
0x10c7   : > { %5856 = vmatpush3.bf16.msra.mxu0 %v5855_v29 }
0x10c8   : > { %v7259_v27 = vadd.f32 %v4903_v14, %v2557_v23  ;;  %5858 = vmatprep.subr.bf16.mxu0 %v5857_v33 }
0x10ca   : > { %2681 = vmatmul.mubr.f32.gmra.mrb[16].mxu1 %v7259_v27 }
0x10cb   : > { %3014 = vmatprep.mubr.f32.mxu1 %v6413_v34  ;;  %5860 = vmatpush3.bf16.msra.mxu0 %v5859_v38 }
0x10cc   : > { %5862 = vmatprep.subr.bf16.mxu0 %v5861_v22 }
0x10cf   : > { %5864 = vmatpush3.bf16.msra.mxu0 %v5863_v46 }
0x10d0   : > { %5866 = vmatprep.subr.bf16.mxu0 %v5865_v53 }
0x10d3   : > { %5868 = vmatpush3.bf16.msra.mxu0 %v5867_v57 }
0x10d4   : > { %5870 = vmatprep.subr.bf16.mxu0 %v5869_v58 }
0x10d7   : > { %5872 = vmatpush3.bf16.msra.mxu0 %v5871_v62 }
0x10d8   : > { %5874 = vmatprep.subr.bf16.mxu0 %v5873_v63 }
0x10db   : > { %5876 = vmatpush3.bf16.msra.mxu0 %v5875_v2  ;;  %v4904_v2 = vld [vmem:[%s8077_s22] ss:$0 sm:$0xff] }
0x10dc   : > { %5878 = vmatprep.subr.bf16.mxu0 %v5877_v4 }
0x10df   : > { %5880 = vmatpush3.bf16.msra.mxu0 %v5879_v7 }
0x1198   : > { %v2676_v11 = vpop.f32.mrb[14].mxu1 }
0x1199   : > { %v2677_v12 = vadd.f32 %v2676_v11, %v2603_v9  ;;  %v2678_v13 = vpop.f32.mrb[15].mxu1 }
0x119a   : > { %v2679_v14 = vadd.f32 %v2678_v13, %v2607_v10 }
0x119b   : > { %v2691_v17 = vmul.f32 0.044715, %v2677_v12  ;;  %v2687_v57 = vmul.f32 0.5, %v2677_v12 }
0x119c   : > { %v2692_v19 = vmul.f32 0.044715, %v2679_v14  ;;  %v2688_v55 = vmul.f32 0.5, %v2679_v14 }
0x119d   : > { %v2695_v21 = vmul.f32 %v2691_v17, %v2677_v12  ;;  %v2682_v23 = vpop.f32.mrb[16].mxu1  ;;  %v4911_v17 = vld [vmem:[%s8068_s13 + $0x1a0] sm:$0xff] }
0x119e   : > { %v2696_v20 = vmul.f32 %v2692_v19, %v2679_v14  ;;  %v2683_v28 = vadd.f32 %v2682_v23, %v2603_v9  ;;  %v2684_v26 = vpop.f32.mrb[17].mxu1  ;;  %v4917_v23 = vld [vmem:[%s8068_s13 + $0x1d0] sm:$0xff] }
0x119f   : > { %v2699_v15 = vmul.f32 %v2695_v21, %v2677_v12  ;;  %v2685_v42 = vadd.f32 %v2684_v26, %v2607_v10  ;;  %v4914_v21 = vld [vmem:[%s8068_s13 + $0x1b8] sm:$0xff]  ;;  %v4913_v26 = vld [vmem:[%s8068_s13 + $0x1b0] sm:$0xff] }
0x11a0   : > { %v2693_v29 = vmul.f32 0.044715, %v2683_v28  ;;  %v2700_v30 = vmul.f32 %v2696_v20, %v2679_v14  ;;  %v2689_v56 = vmul.f32 0.5, %v2683_v28 }
0x11a1   : > { %v2703_v31 = vadd.f32 %v2699_v15, %v2677_v12  ;;  %v2694_v33 = vmul.f32 0.044715, %v2685_v42  ;;  %v2690_v62 = vmul.f32 0.5, %v2685_v42  ;;  %v4916_v15 = vld [vmem:[%s8068_s13 + $0x1c8] sm:$0xff] }
0x11a2   : > { %v2697_v35 = vmul.f32 %v2693_v29, %v2683_v28  ;;  %v2704_v37 = vadd.f32 %v2700_v30, %v2679_v14  ;;  %v4908_v14 = vld [vmem:[%s8068_s13 + $0x188] sm:$0xff] }
0x11a3   : > { %v2698_v38 = vmul.f32 %v2694_v33, %v2685_v42  ;;  %v2707_v39 = vmul.f32 0.7978846, %v2703_v31  ;;  %v5881_v19 = vpack.c.bf16 %v4911_v17, %v4908_v14  ;;  %v4912_v29 = vld [vmem:[%s8068_s13 + $0x1a8] sm:$0xff]  ;;  %v4923_v31 = vld [vmem:[%s8068_s13 + $0x200] sm:$0xff]  ;;  %v5887_v33 = vpack.c.bf16 %v4916_v15, %v4913_v26  ;;  %v4937_v17 = vld [vmem:[%s8068_s13 + $0x270] sm:$0xff] }
0x11a4   : > { %v2708_v41 = vmul.f32 0.7978846, %v2704_v37  ;;  %v2701_v22 = vmul.f32 %v2697_v35, %v2683_v28  ;;  %v4920_v30 = vld [vmem:[%s8068_s13 + $0x1e8] sm:$0xff]  ;;  %v4943_v15 = vld [vmem:[%s8068_s13 + $0x2a0] sm:$0xff] }
0x11a5   : > { %6278 = vtanh.f32 %v2707_v39  ;;  %v2702_v43 = vmul.f32 %v2698_v38, %v2685_v42  ;;  %5882 = vmatprep.subr.bf16.mxu1 %v5881_v19  ;;  %v5889_v37 = vpack.c.bf16 %v4923_v31, %v4920_v30  ;;  %v4919_v38 = vld [vmem:[%s8068_s13 + $0x1e0] sm:$0xff]  ;;  %v4922_v39 = vld [vmem:[%s8068_s13 + $0x1f8] sm:$0xff] }
0x11a6   : > { %6280 = vtanh.f32 %v2708_v41  ;;  %v2705_v44 = vadd.f32 %v2701_v22, %v2683_v28  ;;  %v5885_v28 = vpack.c.bf16 %v4917_v23, %v4914_v21  ;;  %v5891_v41 = vpack.c.bf16 %v4922_v39, %v4919_v38  ;;  %v4936_v21 = vld [vmem:[%s8068_s13 + $0x268] sm:$0xff]  ;;  %v4939_v30 = vld [vmem:[%s8068_s13 + $0x280] sm:$0xff]  ;;  %v4942_v31 = vld [vmem:[%s8068_s13 + $0x298] sm:$0xff] }
0x11a7   : > { %v2706_v46 = vadd.f32 %v2702_v43, %v2685_v42  ;;  %v4909_v42 = vld [vmem:[%s8068_s13 + $0x190] sm:$0xff] }
0x11a8   : > { %v2709_v49 = vmul.f32 0.7978846, %v2705_v44  ;;  %v5913_v35 = vpack.c.bf16 %v4912_v29, %v4909_v42  ;;  %v4946_v42 = vld [vmem:[%s8068_s13 + $0x2b8] sm:$0xff]  ;;  %v4949_v39 = vld [vmem:[%s8068_s13 + $0x2d0] sm:$0xff] }
0x11a9   : > { %v2710_v51 = vmul.f32 0.7978846, %v2706_v46  ;;  %v5907_v29 = vpack.c.bf16 %v4946_v42, %v4943_v15 }
0x11aa   : > { %6282 = vtanh.f32 %v2709_v49  ;;  %5914 = vmatprep.subr.bf16.mxu0 %v5913_v35 }
0x11ab   : > { %6284 = vtanh.f32 %v2710_v51 }
0x11af   : > { %v6279_v52 = vpop.eup %6278 }
0x11b0   : > { %v6281_v53 = vpop.eup %6280  ;;  %v2715_v54 = vadd.f32 1.0, %v6279_v52 }
0x11b1   : > { %v2716_v36 = vadd.f32 1.0, %v6281_v53 }
0x11b2   : > { %v2719_v45 = vmul.f32 %v2715_v54, %v2687_v57  ;;  %v4915_v57 = vld [vmem:[%s8068_s13 + $0x1c0] sm:$0xff] }
0x11b3   : > { %v2720_v58 = vmul.f32 %v2716_v36, %v2688_v55 }
0x11b4   : > { %v6283_v59 = vpop.eup %6282 }
0x11b5   : > { %v6285_v60 = vpop.eup %6284  ;;  %2826 = vmatprep.mubr.f32.mxu0 %v2720_v58  ;;  %v2717_v61 = vadd.f32 1.0, %v6283_v59  ;;  %v4918_v58 = vld [vmem:[%s8068_s13 + $0x1d8] sm:$0xff] }
0x11b6   : > { %2827 = vmatmul.mubr.f32.vlgmr.msra.gmra.mrb[12].mxu0 %v2719_v45  ;;  %v2718_v63 = vadd.f32 1.0, %v6285_v60  ;;  %v5917_v59 = vpack.c.bf16 %v4918_v58, %v4915_v57  ;;  %v4926_v45 = vld [vmem:[%s8068_s13 + $0x218] sm:$0xff]  ;;  %v4929_v60 = vld [vmem:[%s8068_s13 + $0x230] sm:$0xff] }
0x11b7   : > { %v2721_v0 = vmul.f32 %v2717_v61, %v2689_v56  ;;  %5916 = vmatpush3.bf16.msra.mxu0 %v5913_v35  ;;  %v5893_v61 = vpack.c.bf16 %v4929_v60, %v4926_v45  ;;  %v4950_v35 = vld [vmem:[%s8068_s13 + $0x2d8] sm:$0xff] }
0x11b8   : > { %v2722_v18 = vmul.f32 %v2718_v63, %v2690_v62  ;;  %v4925_v62 = vld [vmem:[%s8068_s13 + $0x210] sm:$0xff]  ;;  %v4928_v63 = vld [vmem:[%s8068_s13 + $0x228] sm:$0xff]  ;;  %5918 = vmatprep.subr.bf16.mxu0 %v5917_v59 }
0x11b9   : > { %v5895_v56 = vpack.c.bf16 %v4928_v63, %v4925_v62  ;;  %v4906_v63 = vld [vmem:[%s8079_s24] ss:$0 sm:$0xff] }
0x11ba   : > { %2831 = vmatprep.mubr.f32.mxu0 %v2722_v18  ;;  %v4921_v18 = vld [vmem:[%s8068_s13 + $0x1f0] sm:$0xff] }
0x11bb   : > { %2832 = vmatmul.mubr.f32.gmra.mrb[14].mxu0 %v2721_v0  ;;  %v4924_v0 = vld [vmem:[%s8068_s13 + $0x208] sm:$0xff] }
0x11bc   : > { %5920 = vmatpush3.bf16.msra.mxu0 %v5917_v59 }
0x1289   : > { %v5197_v1 = vpop.f32.mrb[12].mxu0 }
0x128a   : > { %v5198_v4 = vpop.f32.mrb[13].mxu0 }
0x128b   : > { %v5199_v5 = vadd.f32 %v5198_v4, %v5197_v1  ;;  %v5921_v1 = vpack.c.bf16 %v4924_v0, %v4921_v18  ;;  %v4935_v4 = vld [vmem:[%s8068_s13 + $0x260] sm:$0xff] }
0x128d   : > { %v2829_v6 = vadd.f32 %v5199_v5, %v4904_v2  ;;  %5922 = vmatprep.subr.bf16.mxu0 %v5921_v1 }
0x128e   : > { %v5200_v7 = vpop.f32.mrb[14].mxu0  ;;  %5924 = vmatpush3.bf16.msra.mxu0 %v5921_v1 }
0x128f   : > { %v5201_v8 = vpop.f32.mrb[15].mxu0  ;;  %v2837_v9 = vadd.f32 %v2829_v6, %v7254_v16  ;;  %v4907_v16 = vld [vmem:[%s8068_s13 + $0x180] sm:$0xff] }
0x1290   : > { %v5202_v10 = vadd.f32 %v5201_v8, %v5200_v7  ;;  %v4931_v6 = vld [vmem:[%s8068_s13 + $0x240] sm:$0xff]  ;;  %v4934_v7 = vld [vmem:[%s8068_s13 + $0x258] sm:$0xff] }
0x1291   : > { %2841 = vadd.xlane.f32.xlu1 %v2837_v9  ;;  %v5899_v8 = vpack.c.bf16 %v4934_v7, %v4931_v6 }
0x1292   : > { %v2834_v11 = vadd.f32 %v5202_v10, %v4904_v2  ;;  %v4932_v2 = vld [vmem:[%s8068_s13 + $0x248] sm:$0xff]  ;;  %v4930_v10 = vld [vmem:[%s8068_s13 + $0x238] sm:$0xff] }
0x1293   : > { %v5897_v5 = vpack.c.bf16 %v4935_v4, %v4932_v2 }
0x1294   : > { %v2838_v12 = vadd.f32 %v2834_v11, %v7259_v27  ;;  %v4910_v27 = vld [vmem:[%s8068_s13 + $0x198] sm:$0xff] }
0x1295   : > { %v5883_v20 = vpack.c.bf16 %v4910_v27, %v4907_v16  ;;  %v4940_v16 = vld [vmem:[%s8068_s13 + $0x288] sm:$0xff]  ;;  %v4933_v27 = vld [vmem:[%s8068_s13 + $0x250] sm:$0xff] }
0x1296   : > { %v2843_v13 = vsel %vm1098_vm4, %v2838_v12, 0.0  ;;  %v5903_v19 = vpack.c.bf16 %v4940_v16, %v4937_v17  ;;  %v5929_v23 = vpack.c.bf16 %v4936_v21, %v4933_v27 }
0x1297   : > { %2844 = vadd.xlane.f32.xlu0 %v2843_v13  ;;  %5884 = vmatpush1.bf16.msra.mxu1 %v5883_v20  ;;  %v4941_v13 = vld [vmem:[%s8068_s13 + $0x290] sm:$0xff]  ;;  %v4944_v20 = vld [vmem:[%s8068_s13 + $0x2a8] sm:$0xff] }
0x1298   : > { %5886 = vmatprep.subr.bf16.mxu1 %v5885_v28  ;;  %v4947_v28 = vld [vmem:[%s8068_s13 + $0x2c0] sm:$0xff] }
0x1299   : > { %v5905_v26 = vpack.c.bf16 %v4947_v28, %v4944_v20 }
0x129b   : > { %5888 = vmatpush1.bf16.msra.mxu1 %v5887_v33  ;;  %v5933_v33 = vpack.c.bf16 %v4942_v31, %v4939_v30 }
0x129c   : > { %5890 = vmatprep.subr.bf16.mxu1 %v5889_v37  ;;  %v4953_v37 = vld [vmem:[%s8068_s13 + $0x2f0] sm:$0xff] }
0x129d   : > { %v5909_v38 = vpack.c.bf16 %v4953_v37, %v4950_v35 }
0x129f   : > { %5892 = vmatpush1.bf16.msra.mxu1 %v5891_v41  ;;  %v4952_v41 = vld [vmem:[%s8068_s13 + $0x2e8] sm:$0xff] }
0x12a0   : > { %5894 = vmatprep.subr.bf16.mxu1 %v5893_v61  ;;  %v4905_v61 = vld [vmem:[%s8078_s23] ss:$0 sm:$0xff] }
0x12a3   : > { %5896 = vmatpush1.bf16.msra.mxu1 %v5895_v56 }
0x12a4   : > { %5898 = vmatprep.subr.bf16.mxu1 %v5897_v5 }
0x12a7   : > { %5900 = vmatpush1.bf16.msra.mxu1 %v5899_v8 }
0x131e   : > { %v2842_v22 = vpop.xlane.xlu1 %2841 }
0x131f   : > { %v2846_v43 = vmul.f32 0.020833334, %v2842_v22  ;;  %v4945_v22 = vld [vmem:[%s8068_s13 + $0x2b0] sm:$0xff] }
0x1321   : > { %v2848_v44 = vsub.f32 %v2837_v9, %v2846_v43  ;;  %v4927_v9 = vld [vmem:[%s8068_s13 + $0x220] sm:$0xff]  ;;  %v5911_v43 = vpack.c.bf16 %v4952_v41, %v4949_v39 }
0x1322   : > { %v5925_v11 = vpack.c.bf16 %v4930_v10, %v4927_v9 }
0x1323   : > { %v7401_v46 = vmul.f32 %v6724_v50, %v2848_v44  ;;  %v4948_v44 = vld [vmem:[%s8068_s13 + $0x2c8] sm:$0xff] }
0x1324   : > { %v2845_v49 = vpop.xlane.xlu0 %2844  ;;  %5926 = vmatprep.subr.bf16.mxu0 %v5925_v11 }
0x1325   : > { %v2847_v51 = vmul.f32 0.020833334, %v2845_v49  ;;  %v2852_v52 = vmul.f32 %v7401_v46, %v7401_v46  ;;  %5928 = vmatpush3.bf16.msra.mxu0 %v5925_v11  ;;  %v5937_v49 = vpack.c.bf16 %v4948_v44, %v4945_v22 }
0x1326   : > { %5930 = vmatprep.subr.bf16.mxu0 %v5929_v23 }
0x1327   : > { %v2849_v53 = vsub.f32 %v2838_v12, %v2847_v51  ;;  %2854 = vadd.xlane.f32.xlu0 %v2852_v52  ;;  %v4938_v12 = vld [vmem:[%s8068_s13 + $0x278] sm:$0xff]  ;;  %v4951_v51 = vld [vmem:[%s8068_s13 + $0x2e0] sm:$0xff] }
0x1328   : > { %v5901_v14 = vpack.c.bf16 %v4941_v13, %v4938_v12  ;;  %v4954_v52 = vld [vmem:[%s8068_s13 + $0x2f8] sm:$0xff] }
0x1329   : > { %v7406_v54 = vmul.f32 %v6724_v50, %v2849_v53  ;;  %5932 = vmatpush3.bf16.msra.mxu0 %v5929_v23  ;;  %v5941_v53 = vpack.c.bf16 %v4954_v52, %v4951_v51 }
0x132a   : > { %5902 = vmatprep.subr.bf16.mxu1 %v5901_v14  ;;  %5934 = vmatprep.subr.bf16.mxu0 %v5933_v33 }
0x132b   : > { %v2853_v55 = vmul.f32 %v7406_v54, %v7406_v54  ;;  %5904 = vmatpush1.bf16.msra.mxu1 %v5903_v19 }
0x132c   : > { %5906 = vmatprep.subr.bf16.mxu1 %v5905_v26 }
0x132d   : > { %v2856_v36 = vsel %vm1098_vm4, %v2853_v55, 0.0  ;;  %5936 = vmatpush3.bf16.msra.mxu0 %v5933_v33 }
0x132e   : > { %2857 = vadd.xlane.f32.xlu0 %v2856_v36  ;;  %5938 = vmatprep.subr.bf16.mxu0 %v5937_v49 }
0x132f   : > { %5908 = vmatpush1.bf16.msra.mxu1 %v5907_v29 }
0x1330   : > { %5910 = vmatprep.subr.bf16.mxu1 %v5909_v38 }
0x1331   : > { %5940 = vmatpush3.bf16.msra.mxu0 %v5937_v49  ;;  %v6340_v49 = vld [vmem:[%s6971_s9 + $0x28] sm:$0x1f] }
0x1332   : > { %5942 = vmatprep.subr.bf16.mxu0 %v5941_v53 }
0x1333   : > { %5912 = vmatpush1.bf16.msra.mxu1 %v5911_v43 }
0x1335   : > { %5944 = vmatpush3.bf16.msra.mxu0 %v5941_v53  ;;  %v6341_v53 = vld [vmem:[%s6971_s9 + $0x20] sm:$0xff] }
0x13b4   : > { %v2855_v55 = vpop.xlane.xlu0 %2854 }
0x13b5   : > { %v2859_v36 = vmul.f32 0.020833334, %v2855_v55 }
0x13b7   : > { %v2861_v57 = vadd.f32 1e-05, %v2859_v36 }
0x13b9   : > { %6286 = vrsqrt.f32 %v2861_v57 }
0x13bb   : > { %v2858_v58 = vpop.xlane.xlu0 %2857 }
0x13bc   : > { %v2860_v59 = vmul.f32 0.020833334, %v2858_v58  ;;  %v6342_v58 = vld [vmem:[%s6971_s9 + $0x8] sm:$0x1f] }
0x13be   : > { %v2862_v45 = vadd.f32 1e-05, %v2860_v59 }
0x13c0   : > { %6288 = vrsqrt.f32 %v2862_v45 }
0x13c3   : > { %v6287_v60 = vpop.eup %6286 }
0x13c4   : > { %v2865_v62 = vmul.f32 %v6287_v60, %v7401_v46  ;;  %v4955_v46 = vld [vmem:[%s8069_s14 + $0x3] sm:$0x7] }
0x13c5   : > { %v2938_v5 = vrot.slane %v4955_v46, %v6783_v48  ;;  %v2942_v9 = vrot.slane %v4955_v46, %v6934_v24 }
0x13c6   : > { %v2873_v56 = vmul.f32 %v4905_v61, %v2865_v62 }
0x13c8   : > { %v7520_v18 = vadd.f32 %v4906_v63, %v2873_v56 }
0x13ca   : > { %v6289_v0 = vpop.eup %6288  ;;  %3015 = vmatmul.mubr.f32.vlgmr.msra.gmra.mrb[18].mxu1 %v7520_v18  ;;  %5499 = vmatprep.mubr.f32.mxu0 %v7520_v18 }
0x13cb   : > { %3020 = vmatprep.mubr.f32.mxu1 %v6413_v34  ;;  %v2866_v1 = vmul.f32 %v6289_v0, %v7406_v54  ;;  %v2946_v54 = vrot.slane %v4955_v46, %v1199_v25 }
0x13cd   : > { %v2874_v2 = vmul.f32 %v4905_v61, %v2866_v1 }
0x13cf   : > { %v7526_v4 = vadd.f32 %v4906_v63, %v2874_v2 }
0x13d1   : > { %3021 = vmatmul.mubr.f32.gmra.mrb[20].mxu1 %v7526_v4  ;;  %5500 = vmatmul.mubr.f32.vlgmr.msra.gmra.mrb[16].mxu0 %v7526_v4 }
0x149d   : > { %v3016_v6 = vpop.f32.mrb[18].mxu1 }
0x149e   : > { %v7534_v7 = vadd.f32 %v3016_v6, %v2938_v5  ;;  %v3018_v8 = vpop.f32.mrb[19].mxu1 }
0x149f   : > { %v3019_v17 = vadd.f32 %v3018_v8, %v2942_v9 }
0x14a0   : > { %5506 = vmatprep.mubr.msk.f32.mxu1 %vm1358_vm5, %v7534_v7 }
0x14a4   : > { %v3022_v10 = vpop.f32.mrb[20].mxu1  ;;  %v5501_v11 = vpop.f32.mrb[16].mxu0 }
0x14a5   : > { %v3099_v12 = vadd.f32 %v5501_v11, %v2946_v54  ;;  %v3024_v13 = vpop.f32.mrb[21].mxu1  ;;  %v3093_v14 = vpop.f32.mrb[17].mxu0  ;;  %v3023_v47 = vadd.f32 %v3022_v10, %v2938_v5  ;;  %v6344_v11 = vld [vmem:[%s6971_s9 + $0x10] sm:$0xff] }
0x14a6   : > { %v3025_v16 = vadd.f32 %v3024_v13, %v2942_v9  ;;  %v3094_v19 = vadd.f32 %v3093_v14, %v2946_v54  ;;  %v6343_v9 = vld [vmem:[%s6971_s9] sm:$0xff]  ;;  %v6345_v14 = vld [vmem:[%s6971_s9 + $0x18] sm:$0x1f] }
0x14a8   : > { %v5951_v27 = vpack.c.bf16 %v3099_v12, %v3094_v19  ;;  %v7541_v21 = vpack.i.bf16 %v3025_v16, %v3019_v17  ;;  %v5945_v23 = vpack.c.bf16 %v3025_v16, %v3019_v17  ;;  %v7543_v20 = vpack.i.bf16 %v3099_v12, %v3094_v19 }
0x14aa   : > { %5953 = vmatprep.subr.msk.bf16.mxu0 %vm6951_vm8, %v5951_v27  ;;  %6207 = vrot.lane.b32.xlu1 %v7541_v21, %s6416_s1 }
0x14ab   : > { %6202 = vrot.lane.b32.xlu0 %v7541_v21, %s6415_s10  ;;  %5947 = vmatprep.subr.msk.bf16.mxu1 %vm6942_vm6, %v5945_v23 }
0x14ac   : > { %5950 = vmatpush3.bf16.xpose.msk.msra.mxu1 %vm6942_vm6, %v5945_v23  ;;  %5956 = vmatpush3.bf16.msk.msra.mxu0 %vm6951_vm8, %v5951_v27 }
0x14af   : > { %3300 = vrot.lane.b32.xlu0 %v7534_v7, %s6415_s10 }
0x14b3   : > { %3302 = vrot.lane.b32.xlu0 %v3023_v47, %s6415_s10  ;;  %5507 = vmatmul.mubr.msk.f32.vlgmr.msra.gmra.mrb[22].mxu1 %vm1358_vm5, %v3023_v47 }
0x14b7   : > { %3668 = vrot.lane.b32.xlu0 %v7534_v7, %s6416_s1 }
0x14bb   : > { %3670 = vrot.lane.b32.xlu0 %v3023_v47, %s6416_s1 }
0x151c   : > { %v6208_v25 = vpop.permute.xlu1 %6207 }
0x151d   : > { %v6203_v28 = vpop.permute.xlu0 %6202  ;;  %v6210_v26 = vunpack.i.h.bf16 %v6208_v25  ;;  %v6209_v15 = vunpack.i.l.bf16 %v6208_v25 }
0x151e   : > { %v6205_v42 = vunpack.i.h.bf16 %v6203_v28  ;;  %v6204_v29 = vunpack.i.l.bf16 %v6203_v28 }
0x151f   : > { %v5985_v33 = vpack.c.bf16 %v6210_v26, %v6209_v15 }
0x1520   : > { %v5957_v30 = vpack.c.bf16 %v6205_v42, %v6204_v29 }
0x1521   : > { %v3301_v31 = vpop.permute.xlu0 %3300 }
0x1522   : > { %5959 = vmatprep.subr.msk.bf16.mxu1 %vm6942_vm6, %v5957_v30  ;;  %5520 = vmatprep.mubr.msk.f32.mxu1 %vm1358_vm5, %v3301_v31 }
0x1523   : > { %5962 = vmatpush3.bf16.xpose.msk.msra.mxu1 %vm6942_vm6, %v5957_v30 }
0x1524   : > { %5987 = vmatprep.subr.msk.bf16.mxu1 %vm6942_vm6, %v5985_v33 }
0x1525   : > { %v3303_v35 = vpop.permute.xlu0 %3302 }
0x1529   : > { %v3669_v37 = vpop.permute.xlu0 %3668 }
0x152a   : > { %5521 = vmatmul.mubr.msk.f32.vlgmr.msra.gmra.mrb[24].mxu1 %vm1358_vm5, %v3303_v35 }
0x152b   : > { %5990 = vmatpush3.bf16.xpose.msk.msra.mxu1 %vm6942_vm6, %v5985_v33  ;;  %5556 = vmatprep.mubr.msk.f32.mxu1 %vm1358_vm5, %v3669_v37 }
0x152d   : > { %v3671_v38 = vpop.permute.xlu0 %3670 }
0x1532   : > { %5557 = vmatmul.mubr.msk.f32.vlgmr.msra.gmra.mrb[26].mxu1 %vm1358_vm5, %v3671_v38 }
0x1586   : > { %v5508_v39 = vpop.f32.mrb[22].mxu1 }
0x1587   : > { %v3180_v41 = vpop.f32.mrb[23].mxu1  ;;  %v3186_v59 = vadd.f32 %v6342_v58, %v5508_v39 }
0x1588   : > { %v3181_v10 = vadd.f32 %v6343_v9, %v3180_v41 }
0x1589   : > { %v3192_v45 = vsel %vm1450_vm9, %v3186_v59, -inf }
0x158a   : > { %v3189_v13 = vsel %vm1446_vm10, %v3181_v10, -inf }
0x15fd   : > { %v5522_v22 = vpop.f32.mrb[24].mxu1 }
0x15fe   : > { %v3382_v43 = vpop.f32.mrb[25].mxu1  ;;  %v3388_v17 = vadd.f32 %v6345_v14, %v5522_v22 }
0x15ff   : > { %v3383_v12 = vadd.f32 %v6344_v11, %v3382_v43 }
0x1600   : > { %v3394_v19 = vsel %vm1450_vm9, %v3388_v17, -inf }
0x1601   : > { %v3391_v16 = vsel %vm1446_vm10, %v3383_v12, -inf }
0x1605   : > { %v5558_v44 = vpop.f32.mrb[26].mxu1 }
0x1606   : > { %v3756_v51 = vadd.f32 %v6340_v49, %v5558_v44  ;;  %v3750_v52 = vpop.f32.mrb[27].mxu1 }
0x1607   : > { %v3751_v55 = vadd.f32 %v6341_v53, %v3750_v52 }
0x1608   : > { %v3762_v36 = vsel %vm1450_vm9, %v3756_v51, -inf }
0x1609   : > { %3763 = vmax.xlane.f32.xlu1 %v3762_v36  ;;  %v3759_v57 = vsel %vm1446_vm10, %v3751_v55, -inf  ;;  %v6346_v36 = vld [vmem:[%s6971_s9 + $0x38] sm:$0x1f] }
0x160a   : > { %3760 = vmax.xlane.f32.xlu0 %v3759_v57 }
0x161a   : > { %6212 = vrot.lane.b32.xlu1 %v7543_v20, %s6416_s1 }
0x161e   : > { %3956 = vrot.lane.b32.xlu1 %v7534_v7, %s6417_s27 }
0x1622   : > { %3958 = vrot.lane.b32.xlu1 %v3023_v47, %s6417_s27 }
0x1646   : > { %3193 = vmax.xlane.f32.xlu1 %v3192_v45 }
0x1696   : > { %v3764_v60 = vpop.xlane.xlu1 %3763 }
0x1697   : > { %v3766_v61 = vsub.f32 %v3756_v51, %v3764_v60  ;;  %v3761_v62 = vpop.xlane.xlu0 %3760 }
0x1698   : > { %v3765_v63 = vsub.f32 %v3751_v55, %v3761_v62 }
0x1699   : > { %v3769_v56 = vmul.f32 1.442695, %v3766_v61 }
0x169a   : > { %v3767_v0 = vmul.f32 1.442695, %v3765_v63  ;;  %v6213_v1 = vpop.permute.xlu1 %6212 }
0x169b   : > { %6290 = vpow2.f32 %v3769_v56  ;;  %v6215_v2 = vunpack.i.h.bf16 %v6213_v1  ;;  %v6214_v46 = vunpack.i.l.bf16 %v6213_v1 }
0x169c   : > { %6292 = vpow2.f32 %v3767_v0 }
0x169d   : > { %v5991_v5 = vpack.c.bf16 %v6215_v2, %v6214_v46 }
0x169e   : > { %v3957_v30 = vpop.permute.xlu1 %3956 }
0x169f   : > { %5993 = vmatprep.subr.msk.bf16.mxu1 %vm6951_vm8, %v5991_v5 }
0x16a0   : > { %5996 = vmatpush3.bf16.msk.msra.mxu1 %vm6951_vm8, %v5991_v5 }
0x16a2   : > { %v3959_v31 = vpop.permute.xlu1 %3958 }
0x16a5   : > { %v6291_v6 = vpop.eup %6290 }
0x16a6   : > { %v3774_v7 = vsel %vm1450_vm9, %v6291_v6, 0.0  ;;  %v6293_v8 = vpop.eup %6292 }
0x16a7   : > { %3775 = vadd.xlane.f32.xlu0 %v3774_v7  ;;  %v3771_v54 = vsel %vm1446_vm10, %v6293_v8, 0.0 }
0x16ab   : > { %3772 = vadd.xlane.f32.xlu0 %v3771_v54 }
0x16c1   : > { %6217 = vrot.lane.b32.xlu0 %v7541_v21, %s6417_s27 }
0x16d3   : > { %v3194_v37 = vpop.xlane.xlu1 %3193 }
0x16d4   : > { %v3196_v38 = vsub.f32 %v3186_v59, %v3194_v37  ;;  %v6347_v59 = vld [vmem:[%s6971_s9 + $0x30] sm:$0xff]  ;;  %v4975_v37 = vld [vmem:[%s8070_s15 + $0xa8] sm:$0xff]  ;;  %s8139_s9 = sld [smem:[#allocation9_spill]] }
0x16d6   : > { %v3199_v22 = vmul.f32 1.442695, %v3196_v38 }
0x16da   : > { %s5085_s11 = sshll.u32 %s8139_s9, 4  ;;  %s6419_s9 = smov [#allocation3]  }
0x16db   : > { %s8013_s30 = scalar_lea.hbm %s8142_s28, %s5085_s11 }
0x16e0   : > { %3190 = vmax.xlane.f32.xlu0 %v3189_v13 }
0x16e4   : > { %3392 = vmax.xlane.f32.xlu0 %v3391_v16 }
0x16e8   : > { %3395 = vmax.xlane.f32.xlu0 %v3394_v19 }
0x1734   : > { %v3776_v27 = vpop.xlane.xlu0 %3775 }
0x1735   : > { %6294 = vrcp.f32 %v3776_v27 }
0x1738   : > { %v3773_v23 = vpop.xlane.xlu0 %3772 }
0x1739   : > { %6296 = vrcp.f32 %v3773_v23 }
0x173a   : > { %6298 = vpow2.f32 %v3199_v22  ;;  %v4963_v22 = vld [vmem:[%s8070_s15 + $0x80] sm:$0xff] }
0x173c   : > { %v6218_v21 = vpop.permute.xlu0 %6217 }
0x173d   : > { %v6220_v47 = vunpack.i.h.bf16 %v6218_v21  ;;  %v6219_v25 = vunpack.i.l.bf16 %v6218_v21 }
0x173f   : > { %v6005_v28 = vpack.c.bf16 %v6220_v47, %v6219_v25  ;;  %v6295_v26 = vpop.eup %6294 }
0x1740   : > { %v3780_v29 = vmul.f32 %v6295_v26, %v6291_v6 }
0x1741   : > { %6007 = vmatprep.subr.msk.bf16.mxu1 %vm6942_vm6, %v6005_v28 }
0x1743   : > { %v6297_v15 = vpop.eup %6296 }
0x1744   : > { %v3779_v42 = vmul.f32 %v6297_v15, %v6293_v8  ;;  %v6299_v61 = vpop.eup %6298 }
0x1745   : > { %v3204_v56 = vsel %vm1450_vm9, %v6299_v61, 0.0 }
0x1746   : > { %5563 = vmatprep.mubr.msk.f32.mxu1 %vm1446_vm10, %v3779_v42 }
0x1747   : > { %5564 = vmatmul.mubr.msk.f32.vlgmr.msra.gmra.mrb[28].mxu1 %vm1446_vm10, %v3780_v29 }
0x1748   : > { %6010 = vmatpush3.bf16.xpose.msk.msra.mxu1 %vm6942_vm6, %v6005_v28  ;;  %5581 = vmatprep.mubr.msk.f32.mxu1 %vm1358_vm5, %v3957_v30 }
0x174f   : > { %5582 = vmatmul.mubr.msk.f32.vlgmr.msra.gmra.mrb[30].mxu1 %vm1358_vm5, %v3959_v31 }
0x176d   : > { %v3191_v33 = vpop.xlane.xlu0 %3190 }
0x176e   : > { %v3195_v39 = vsub.f32 %v3181_v10, %v3191_v33 }
0x1770   : > { %v3197_v44 = vmul.f32 1.442695, %v3195_v39  ;;  %v4976_v39 = vld [vmem:[%s8070_s15 + $0xb0] sm:$0xff] }
0x1771   : > { %v3393_v35 = vpop.xlane.xlu0 %3392 }
0x1772   : > { %v3397_v49 = vsub.f32 %v3383_v12, %v3393_v35  ;;  %6300 = vpow2.f32 %v3197_v44  ;;  %v4974_v35 = vld [vmem:[%s8070_s15 + $0xa0] sm:$0xff] }
0x1773   : > { %v5969_v38 = vpack.c.bf16 %v4975_v37, %v4974_v35  ;;  %v5023_v35 = vld [vmem:[%s8074_s19 + $0x148] sm:$0xff]  ;;  %v5025_v37 = vld [vmem:[%s8074_s19 + $0x158] sm:$0xff] }
0x1774   : > { %v3399_v53 = vmul.f32 1.442695, %v3397_v49 }
0x1775   : > { %v3396_v41 = vpop.xlane.xlu0 %3395 }
0x1776   : > { %v3398_v43 = vsub.f32 %v3388_v17, %v3396_v41  ;;  %v4977_v41 = vld [vmem:[%s8070_s15 + $0xb8] sm:$0xff] }
0x1778   : > { %v3401_v52 = vmul.f32 1.442695, %v3398_v43  ;;  %v4964_v43 = vld [vmem:[%s8070_s15 + $0x88] sm:$0xff] }
0x1779   : > { %v5977_v44 = vpack.c.bf16 %v4964_v43, %v4963_v22 }
0x177a   : > { %6302 = vpow2.f32 %v3401_v52 }
0x177b   : > { %6304 = vpow2.f32 %v3399_v53 }
0x177c   : > { %v6301_v63 = vpop.eup %6300 }
0x177d   : > { %v3201_v1 = vsel %vm1446_vm10, %v6301_v63, 0.0 }
0x1784   : > { %v6303_v0 = vpop.eup %6302 }
0x1785   : > { %v6305_v2 = vpop.eup %6304  ;;  %v3406_v46 = vsel %vm1450_vm9, %v6303_v0, 0.0 }
0x1786   : > { %v3403_v5 = vsel %vm1446_vm10, %v6305_v2, 0.0 }
0x181a   : > { %v7609_v51 = vpop.f32.mrb[28].mxu1 }
0x181b   : > { %v7611_v32 = vpop.f32.mrb[29].mxu1 }
0x1822   : > { %v5583_v55 = vpop.f32.mrb[30].mxu1 }
0x1823   : > { %v4044_v57 = vadd.f32 %v6346_v36, %v5583_v55  ;;  %v4038_v58 = vpop.f32.mrb[31].mxu1 }
0x1824   : > { %v4039_v45 = vadd.f32 %v6347_v59, %v4038_v58 }
0x1825   : > { %v4050_v60 = vsel %vm1450_vm9, %v4044_v57, -inf }
0x1826   : > { %4051 = vmax.xlane.f32.xlu0 %v4050_v60  ;;  %v4047_v62 = vsel %vm1446_vm10, %v4039_v45, -inf }
0x1827   : > { %4048 = vmax.xlane.f32.xlu1 %v4047_v62 }
0x182a   : > { %3205 = vadd.xlane.f32.xlu0 %v3204_v56 }
0x182b   : > { %3202 = vadd.xlane.f32.xlu1 %v3201_v1 }
0x182e   : > { %3407 = vadd.xlane.f32.xlu0 %v3406_v46  ;;  %v4990_v46 = vld [vmem:[%s8070_s15 + $0xc8] sm:$0xff] }
0x182f   : > { %3404 = vadd.xlane.f32.xlu1 %v3403_v5 }
0x1840   : > { %6222 = vrot.lane.b32.xlu1 %v7543_v20, %s6415_s10  ;;  %s892_s10 = scalar_lea.vmem %s8138_s26, %s5090_s8 }
0x18b3   : > { %v4052_v6 = vpop.xlane.xlu0 %4051 }
0x18b4   : > { %v4054_v7 = vsub.f32 %v4044_v57, %v4052_v6  ;;  %v4049_v8 = vpop.xlane.xlu1 %4048  ;;  %v4991_v6 = vld [vmem:[%s8070_s15 + $0xd0] sm:$0xff] }
0x18b5   : > { %v4053_v54 = vsub.f32 %v4039_v45, %v4049_v8 }
0x18b6   : > { %v4057_v9 = vmul.f32 1.442695, %v4054_v7  ;;  %v4992_v7 = vld [vmem:[%s8070_s15 + $0xd8] sm:$0xff] }
0x18b7   : > { %v4055_v10 = vmul.f32 1.442695, %v4053_v54  ;;  %v3206_v11 = vpop.xlane.xlu0 %3205  ;;  %v6001_v8 = vpack.c.bf16 %v4992_v7, %v4991_v6  ;;  %v5002_v54 = vld [vmem:[%s8070_s15 + $0xe0] sm:$0xff]  ;;  %v5035_v7 = vld [vmem:[%s8074_s19 + $0x1a8] sm:$0xff] }
0x18b8   : > { %6306 = vpow2.f32 %v4057_v9  ;;  %v3203_v12 = vpop.xlane.xlu1 %3202  ;;  %v5003_v9 = vld [vmem:[%s8070_s15 + $0xe8] sm:$0xff] }
0x18b9   : > { %6308 = vpow2.f32 %v4055_v10  ;;  %v6017_v10 = vpack.c.bf16 %v5003_v9, %v5002_v54  ;;  %v5034_v54 = vld [vmem:[%s8074_s19 + $0x1a0] sm:$0xff] }
0x18ba   : > { %6310 = vrcp.f32 %v3206_v11  ;;  %v5004_v11 = vld [vmem:[%s8070_s15 + $0xf0] sm:$0xff] }
0x18bb   : > { %6312 = vrcp.f32 %v3203_v12  ;;  %v3408_v13 = vpop.xlane.xlu0 %3407  ;;  %v5005_v12 = vld [vmem:[%s8070_s15 + $0xf8] sm:$0xff] }
0x18bc   : > { %v3405_v14 = vpop.xlane.xlu1 %3404 }
0x18bd   : > { %6314 = vrcp.f32 %v3405_v14 }
0x18be   : > { %6316 = vrcp.f32 %v3408_v13  ;;  %v6021_v13 = vpack.c.bf16 %v5005_v12, %v5004_v11  ;;  %v5039_v11 = vld [vmem:[%s8074_s19 + $0x1c8] sm:$0xff]  ;;  %v5041_v12 = vld [vmem:[%s8074_s19 + $0x1d8] sm:$0xff] }
0x18c0   : > { %v6223_v17 = vpop.permute.xlu1 %6222 }
0x18c1   : > { %v6225_v16 = vunpack.i.h.bf16 %v6223_v17  ;;  %v6224_v19 = vunpack.i.l.bf16 %v6223_v17  ;;  %v5009_v17 = vld [vmem:[%s8071_s16 + $0x1] ss:$0 sm:$0xff] }
0x18c2   : > { %v6307_v27 = vpop.eup %6306 }
0x18c3   : > { %v6309_v23 = vpop.eup %6308  ;;  %v5963_v21 = vpack.c.bf16 %v6225_v16, %v6224_v19  ;;  %v4062_v47 = vsel %vm1450_vm9, %v6307_v27, 0.0 }
0x18c4   : > { %v6311_v25 = vpop.eup %6310  ;;  %4063 = vadd.xlane.f32.xlu0 %v4062_v47  ;;  %v4059_v29 = vsel %vm1446_vm10, %v6309_v23, 0.0 }
0x18c5   : > { %v6313_v28 = vpop.eup %6312  ;;  %5965 = vmatprep.subr.msk.bf16.mxu0 %vm6951_vm8, %v5963_v21  ;;  %v3210_v42 = vmul.f32 %v6311_v25, %v6299_v61  ;;  %v5015_v25 = vld [vmem:[%s8074_s19 + $0x108] sm:$0xff] }
0x18c6   : > { %v3209_v26 = vmul.f32 %v6313_v28, %v6301_v63  ;;  %v4965_v63 = vld [vmem:[%s8070_s15 + $0x90] sm:$0xff]  ;;  %v5017_v28 = vld [vmem:[%s8074_s19 + $0x118] sm:$0xff] }
0x18c7   : > { %v6315_v15 = vpop.eup %6314  ;;  %v5981_v1 = vpack.c.bf16 %v4966_v40, %v4965_v63  ;;  %v5026_v63 = vld [vmem:[%s8074_s19 + $0x160] sm:$0xff]  ;;  %v5028_v40 = vld [vmem:[%s8074_s19 + $0x170] sm:$0xff] }
0x18c8   : > { %v6317_v30 = vpop.eup %6316  ;;  %5513 = vmatprep.mubr.msk.f32.mxu0 %vm1446_vm10, %v3209_v26  ;;  %4060 = vadd.xlane.f32.xlu0 %v4059_v29  ;;  %v3411_v31 = vmul.f32 %v6315_v15, %v6305_v2  ;;  %v4989_v2 = vld [vmem:[%s8070_s15 + $0xc0] sm:$0xff]  ;;  %v6025_v15 = vpack.c.bf16 %v5017_v28, %v5015_v25  ;;  %v5064_v28 = vld [vmem:[%s8076_s21 + $0x188] sm:$0xff] }
0x18c9   : > { %5514 = vmatmul.mubr.msk.f32.vlgmr.msra.gmra.mrb[18].mxu0 %vm1446_vm10, %v3210_v42  ;;  %v3412_v33 = vmul.f32 %v6317_v30, %v6303_v0  ;;  %v5997_v5 = vpack.c.bf16 %v4990_v46, %v4989_v2  ;;  %v5014_v26 = vld [vmem:[%s8074_s19 + $0x100] sm:$0xff]  ;;  %v5021_v42 = vld [vmem:[%s8074_s19 + $0x138] sm:$0xff] }
0x18ca   : > { %5968 = vmatpush3.bf16.msk.msra.mxu0 %vm6951_vm8, %v5963_v21  ;;  %5527 = vmatprep.mubr.msk.f32.mxu0 %vm1446_vm10, %v3411_v31  ;;  %v5018_v31 = vld [vmem:[%s8074_s19 + $0x120] sm:$0xff] }
0x18cb   : > { %5970 = vmatprep.subr.bf16.mxu0 %v5969_v38  ;;  %v5030_v46 = vld [vmem:[%s8074_s19 + $0x180] sm:$0xff] }
0x18cc   : > { %v5063_v25 = vld [vmem:[%s8076_s21 + $0x180] sm:$0xff] }
0x18cd   : > { %5528 = vmatmul.mubr.msk.f32.vlgmr.msra.gmra.mrb[20].mxu0 %vm1446_vm10, %v3412_v33  ;;  %v5020_v33 = vld [vmem:[%s8074_s19 + $0x130] sm:$0xff] }
0x18ce   : > { %5972 = vmatpush3.bf16.msra.mxu0 %v5969_v38  ;;  %v6031_v38 = vpack.c.bf16 %v5020_v33, %v5018_v31 }
0x18de   : > { %6227 = vrot.lane.b32.xlu0 %v7543_v20, %s6417_s27  ;;  %v5973_v20 = vpack.c.bf16 %v4977_v41, %v4976_v39  ;;  %v6033_v39 = vpack.c.bf16 %v5025_v37, %v5023_v35  ;;  %v5022_v41 = vld [vmem:[%s8074_s19 + $0x140] sm:$0xff]  ;;  %s4737_s27 = sshll.u32 %s873_s6, 4  ;;  %s8015_s27 = int_to_ptr.vmem [resolvable:$true] %s4737_s27 }
0x18df   : > { %s6348_s26 = scalar_lea.vmem %s8015_s27, 16 }
0x18e0   : > { %5974 = vmatprep.subr.bf16.mxu0 %v5973_v20  ;;  %p6349_p11 = scmp.ne.s32.totalorder %s8015_s27, %s6348_s26 }
0x18e1   : > { %5976 = vmatpush3.bf16.msra.mxu0 %v5973_v20  ;;  %v5024_v20 = vld [vmem:[%s8074_s19 + $0x150] sm:$0xff] }
0x18e2   : > { %5978 = vmatprep.subr.bf16.mxu0 %v5977_v44  ;;  %v6035_v22 = vpack.c.bf16 %v5024_v20, %v5022_v41  ;;  %v5013_v41 = vld [vmem:[%s8073_s18 + $0x1] ss:$0 sm:$0xff]  ;;  %p6350_p12 = pnand %p6349_p11, %p6603_p5 }
0x18e4   : > { %p6351_p13 = pneg %p6350_p12 }
0x1951   : > { %v4064_v49 = vpop.xlane.xlu0 %4063 }
0x1952   : > { %6318 = vrcp.f32 %v4064_v49 }
0x1955   : > { %v4061_v52 = vpop.xlane.xlu0 %4060 }
0x1956   : > { %6320 = vrcp.f32 %v4061_v52 }
0x1959   : > { %v6228_v53 = vpop.permute.xlu0 %6227 }
0x195a   : > { %v6230_v55 = vunpack.i.h.bf16 %v6228_v53  ;;  %v6229_v36 = vunpack.i.l.bf16 %v6228_v53 }
0x195c   : > { %v6011_v57 = vpack.c.bf16 %v6230_v55, %v6229_v36  ;;  %v6319_v58 = vpop.eup %6318 }
0x195d   : > { %v4068_v60 = vmul.f32 %v6319_v58, %v6307_v27 }
0x195e   : > { %6013 = vmatprep.subr.msk.bf16.mxu1 %vm6951_vm8, %v6011_v57 }
0x195f   : > { %6016 = vmatpush3.bf16.msk.msra.mxu1 %vm6951_vm8, %v6011_v57 }
0x1960   : > { %v6321_v59 = vpop.eup %6320  ;;  %6026 = vmatprep.subr.bf16.mxu1 %v6025_v15  ;;  %v6057_v15 = vpack.c.bf16 %v5064_v28, %v5063_v25 }
0x1961   : > { %v4067_v45 = vmul.f32 %v6321_v59, %v6309_v23 }
0x1963   : > { %5588 = vmatprep.mubr.msk.f32.mxu1 %vm1446_vm10, %v4067_v45 }
0x1964   : > { %5589 = vmatmul.mubr.msk.f32.vlgmr.msra.gmra.mrb[32].mxu1 %vm1446_vm10, %v4068_v60  ;;  %v5027_v60 = vld [vmem:[%s8074_s19 + $0x168] sm:$0xff] }
0x1965   : > { %4412 = vmatprep.mubr.f32.mxu1 %v6413_v34 }
0x199c   : > { %v5515_v61 = vpop.f32.mrb[18].mxu0 }
0x199d   : > { %v3286_v62 = vpop.f32.mrb[19].mxu0 }
0x19a0   : > { %v5529_v56 = vpop.f32.mrb[20].mxu0 }
0x19a1   : > { %v3493_v0 = vpop.f32.mrb[21].mxu0 }
0x19a2   : > { %5538 = vmatprep.mubr.msk.f32.mxu0 %vm1358_vm5, %v3493_v0  ;;  %v5031_v0 = vld [vmem:[%s8074_s19 + $0x188] sm:$0xff] }
0x19a3   : > { %5539 = vmatmul.mubr.msk.f32.vlgmr.msra.gmra.mrb[22].mxu0 %vm1358_vm5, %v5529_v56  ;;  %v6039_v56 = vpack.c.bf16 %v5028_v40, %v5026_v63  ;;  %v5052_v63 = vld [vmem:[%s8076_s21 + $0x128] sm:$0xff] }
0x19a4   : > { %5980 = vmatpush3.bf16.msra.mxu0 %v5977_v44  ;;  %5549 = vmatprep.mubr.msk.f32.mxu0 %vm1358_vm5, %v3286_v62 }
0x19a5   : > { %5982 = vmatprep.subr.bf16.mxu0 %v5981_v1 }
0x19a8   : > { %5984 = vmatpush3.bf16.msra.mxu0 %v5981_v1  ;;  %v5033_v1 = vld [vmem:[%s8074_s19 + $0x198] sm:$0xff] }
0x19a9   : > { %5998 = vmatprep.subr.bf16.mxu0 %v5997_v5  ;;  %v6041_v2 = vpack.c.bf16 %v5033_v1, %v5031_v0  ;;  %v5070_v0 = vld [vmem:[%s8076_s21 + $0x1b8] sm:$0xff] }
0x19ab   : > { %5550 = vmatmul.mubr.msk.f32.vlgmr.msra.gmra.mrb[22].mxu0 %vm1358_vm5, %v5515_v61  ;;  %v5029_v61 = vld [vmem:[%s8074_s19 + $0x178] sm:$0xff] }
0x19ac   : > { %6000 = vmatpush3.bf16.msra.mxu0 %v5997_v5  ;;  %5574 = vmatprep.mubr.msk.f32.mxu0 %vm1358_vm5, %v7611_v32  ;;  %v6037_v62 = vpack.c.bf16 %v5029_v61, %v5027_v60  ;;  %v5032_v5 = vld [vmem:[%s8074_s19 + $0x190] sm:$0xff]  ;;  %v5068_v60 = vld [vmem:[%s8076_s21 + $0x1a8] sm:$0xff] }
0x19ad   : > { %6002 = vmatprep.subr.bf16.mxu0 %v6001_v8  ;;  %v6043_v6 = vpack.c.bf16 %v5032_v5, %v5030_v46  ;;  %v5054_v46 = vld [vmem:[%s8076_s21 + $0x138] sm:$0xff]  ;;  %v5071_v5 = vld [vmem:[%s8076_s21 + $0x1c0] sm:$0xff] }
0x19b0   : > { %6004 = vmatpush3.bf16.msra.mxu0 %v6001_v8  ;;  %v5037_v8 = vld [vmem:[%s8074_s19 + $0x1b8] sm:$0xff] }
0x19b1   : > { %6018 = vmatprep.subr.bf16.mxu0 %v6017_v10  ;;  %v6045_v9 = vpack.c.bf16 %v5037_v8, %v5035_v7  ;;  %v5072_v7 = vld [vmem:[%s8076_s21 + $0x1c8] sm:$0xff]  ;;  %v5055_v8 = vld [vmem:[%s8076_s21 + $0x140] sm:$0xff] }
0x19b3   : > { %5575 = vmatmul.mubr.msk.f32.vlgmr.msra.gmra.mrb[22].mxu0 %vm1358_vm5, %v7609_v51 }
0x19b4   : > { %6020 = vmatpush3.bf16.msra.mxu0 %v6017_v10  ;;  %v5036_v10 = vld [vmem:[%s8074_s19 + $0x1b0] sm:$0xff] }
0x19b5   : > { %6022 = vmatprep.subr.bf16.mxu0 %v6021_v13 }
0x19b8   : > { %6024 = vmatpush3.bf16.msra.mxu0 %v6021_v13  ;;  %v6047_v13 = vpack.c.bf16 %v5036_v10, %v5034_v54  ;;  %v5056_v54 = vld [vmem:[%s8076_s21 + $0x148] sm:$0xff]  ;;  %v5073_v10 = vld [vmem:[%s8076_s21 + $0x1d0] sm:$0xff] }
0x19b9   : > { %6058 = vmatprep.subr.bf16.mxu0 %v6057_v15  ;;  %v5062_v15 = vld [vmem:[%s8076_s21 + $0x178] sm:$0xff] }
0x1a37   : > { %v5590_v32 = vpop.f32.mrb[32].mxu1 }
0x1a38   : > { %v4148_v14 = vpop.f32.mrb[33].mxu1 }
0x1a39   : > { %5599 = vmatprep.mubr.msk.f32.mxu0 %vm1358_vm5, %v4148_v14  ;;  %v5038_v14 = vld [vmem:[%s8074_s19 + $0x1c0] sm:$0xff] }
0x1a3a   : > { %5600 = vmatmul.mubr.msk.f32.vlgmr.msra.gmra.mrb[22].mxu0 %vm1358_vm5, %v5590_v32  ;;  %v6049_v32 = vpack.c.bf16 %v5041_v12, %v5039_v11  ;;  %v5074_v11 = vld [vmem:[%s8076_s21 + $0x1d8] sm:$0xff]  ;;  %v6075_v12 = vpack.c.bf16 %v5056_v54, %v5055_v8 }
0x1b0d   : > { %v5601_v16 = vpop.f32.mrb[22].mxu0 }
0x1b0e   : > { %v4253_v19 = vadd.f32 %v5601_v16, %v5009_v17  ;;  %v4233_v27 = vpop.f32.mrb[23].mxu0  ;;  %v5043_v16 = vld [vmem:[%s8074_s19 + $0x1e8] sm:$0xff] }
0x1b0f   : > { %v4252_v23 = vadd.f32 %v5009_v17, %v4233_v27  ;;  %v5040_v17 = vld [vmem:[%s8074_s19 + $0x1d0] sm:$0xff] }
0x1b10   : > { %v4255_v51 = vadd.f32 %v4253_v19, %v7526_v4  ;;  %v5019_v4 = vld [vmem:[%s8074_s19 + $0x128] sm:$0xff]  ;;  %v5045_v19 = vld [vmem:[%s8074_s19 + $0x1f8] sm:$0xff]  ;;  %v6051_v27 = vpack.c.bf16 %v5040_v17, %v5038_v14  ;;  %v5075_v17 = vld [vmem:[%s8076_s21 + $0x1e0] sm:$0xff] }
0x1b11   : > { %v4254_v21 = vadd.f32 %v4252_v23, %v7520_v18  ;;  %v5016_v18 = vld [vmem:[%s8074_s19 + $0x110] sm:$0xff]  ;;  %v6029_v30 = vpack.c.bf16 %v5021_v42, %v5019_v4  ;;  %v6053_v23 = vpack.c.bf16 %v5045_v19, %v5043_v16  ;;  %v5058_v14 = vld [vmem:[%s8076_s21 + $0x158] sm:$0xff]  ;;  %v5076_v16 = vld [vmem:[%s8076_s21 + $0x1e8] sm:$0xff] }
0x1b12   : > { %v4262_v47 = vsel %vm1098_vm4, %v4255_v51, 0.0  ;;  %v6027_v29 = vpack.c.bf16 %v5016_v18, %v5014_v26  ;;  %v5047_v26 = vld [vmem:[%s8076_s21 + $0x100] sm:$0xff]  ;;  %v5048_v18 = vld [vmem:[%s8076_s21 + $0x108] sm:$0xff] }
0x1b13   : > { %4260 = vadd.xlane.f32.xlu1 %v4254_v21  ;;  %v6059_v4 = vpack.c.bf16 %v5048_v18, %v5047_v26  ;;  %v5061_v26 = vld [vmem:[%s8076_s21 + $0x170] sm:$0xff] }
0x1b14   : > { %6028 = vmatpush1.bf16.msra.mxu1 %v6027_v29  ;;  %v6087_v18 = vpack.c.bf16 %v5062_v15, %v5061_v26 }
0x1b15   : > { %6030 = vmatprep.subr.bf16.mxu1 %v6029_v30  ;;  %6060 = vmatpush3.bf16.msra.mxu0 %v6059_v4  ;;  %v5046_v4 = vld [vmem:[%s8075_s20 + $0x2] sm:$0x3] }
0x1b17   : > { %4263 = vadd.xlane.f32.xlu1 %v4262_v47 }
0x1b18   : > { %6032 = vmatpush1.bf16.msra.mxu1 %v6031_v38  ;;  %v5012_v38 = vld [vmem:[%s8072_s17 + $0x1] ss:$0 sm:$0xff] }
0x1b19   : > { %6034 = vmatprep.subr.bf16.mxu1 %v6033_v39 }
0x1b1c   : > { %6036 = vmatpush1.bf16.msra.mxu1 %v6035_v22 }
0x1b1d   : > { %6038 = vmatprep.subr.bf16.mxu1 %v6037_v62  ;;  %v5051_v62 = vld [vmem:[%s8076_s21 + $0x120] sm:$0xff] }
0x1b1e   : > { %v6067_v40 = vpack.c.bf16 %v5052_v63, %v5051_v62 }
0x1b20   : > { %6040 = vmatpush1.bf16.msra.mxu1 %v6039_v56  ;;  %v5069_v56 = vld [vmem:[%s8076_s21 + $0x1b0] sm:$0xff] }
0x1b21   : > { %6042 = vmatprep.subr.bf16.mxu1 %v6041_v2  ;;  %v6069_v1 = vpack.c.bf16 %v5070_v0, %v5069_v56  ;;  %v5053_v2 = vld [vmem:[%s8076_s21 + $0x130] sm:$0xff] }
0x1b24   : > { %6044 = vmatpush1.bf16.msra.mxu1 %v6043_v6  ;;  %v6071_v6 = vpack.c.bf16 %v5054_v46, %v5053_v2 }
0x1b25   : > { %6046 = vmatprep.subr.bf16.mxu1 %v6045_v9  ;;  %v6073_v9 = vpack.c.bf16 %v5072_v7, %v5071_v5 }
0x1b28   : > { %6048 = vmatpush1.bf16.msra.mxu1 %v6047_v13  ;;  %v6077_v13 = vpack.c.bf16 %v5074_v11, %v5073_v10 }
0x1b29   : > { %6050 = vmatprep.subr.bf16.mxu1 %v6049_v32  ;;  %v5057_v32 = vld [vmem:[%s8076_s21 + $0x150] sm:$0xff] }
0x1b2a   : > { %v6079_v19 = vpack.c.bf16 %v5058_v14, %v5057_v32 }
0x1b2c   : > { %6052 = vmatpush1.bf16.msra.mxu1 %v6051_v27  ;;  %v6081_v27 = vpack.c.bf16 %v5076_v16, %v5075_v17 }
0x1b2d   : > { %6054 = vmatprep.subr.bf16.mxu1 %v6053_v23  ;;  %v5059_v23 = vld [vmem:[%s8076_s21 + $0x160] sm:$0xff] }
0x1ba0   : > { %v4261_v43 = vpop.xlane.xlu1 %4260 }
0x1ba1   : > { %v4265_v44 = vmul.f32 0.020833334, %v4261_v43 }
0x1ba3   : > { %v4267_v49 = vsub.f32 %v4254_v21, %v4265_v44  ;;  %v5042_v21 = vld [vmem:[%s8074_s19 + $0x1e0] sm:$0xff] }
0x1ba4   : > { %v4264_v52 = vpop.xlane.xlu1 %4263 }
0x1ba5   : > { %v4266_v53 = vmul.f32 0.020833334, %v4264_v52  ;;  %v7743_v55 = vmul.f32 %v6724_v50, %v4267_v49 }
0x1ba7   : > { %v4268_v36 = vsub.f32 %v4255_v51, %v4266_v53  ;;  %v4271_v57 = vmul.f32 %v7743_v55, %v7743_v55  ;;  %v5044_v51 = vld [vmem:[%s8074_s19 + $0x1f0] sm:$0xff] }
0x1ba8   : > { %v6055_v47 = vpack.c.bf16 %v5044_v51, %v5042_v21  ;;  %v5065_v53 = vld [vmem:[%s8076_s21 + $0x190] sm:$0xff]  ;;  %v5060_v21 = vld [vmem:[%s8076_s21 + $0x168] sm:$0xff] }
0x1ba9   : > { %4273 = vadd.xlane.f32.xlu0 %v4271_v57  ;;  %v7748_v58 = vmul.f32 %v6724_v50, %v4268_v36  ;;  %v5049_v57 = vld [vmem:[%s8076_s21 + $0x110] sm:$0xff]  ;;  %v6083_v25 = vpack.c.bf16 %v5060_v21, %v5059_v23 }
0x1baa   : > { %6056 = vmatpush1.bf16.msra.mxu1 %v6055_v47  ;;  %v5077_v51 = vld [vmem:[%s8076_s21 + $0x1f0] sm:$0xff]  ;;  %v5078_v47 = vld [vmem:[%s8076_s21 + $0x1f8] sm:$0xff] }
0x1bab   : > { %v4272_v59 = vmul.f32 %v7748_v58, %v7748_v58  ;;  %6089 = vmatprep.subr.bf16.mxu1 %v6412_v3  ;;  %v6085_v28 = vpack.c.bf16 %v5078_v47, %v5077_v51 }
0x1bad   : > { %v4275_v45 = vsel %vm1098_vm4, %v4272_v59, 0.0 }
0x1bae   : > { %4276 = vadd.xlane.f32.xlu1 %v4275_v45  ;;  %v5067_v45 = vld [vmem:[%s8076_s21 + $0x1a0] sm:$0xff] }
0x1baf   : > { %v6065_v61 = vpack.c.bf16 %v5068_v60, %v5067_v45 }
0x1c36   : > { %v4274_v42 = vpop.xlane.xlu0 %4273 }
0x1c37   : > { %v4278_v29 = vmul.f32 0.020833334, %v4274_v42  ;;  %v4341_v42 = vrot.slane %v5046_v4, %v6783_v48 }
0x1c39   : > { %v4280_v30 = vadd.f32 1e-05, %v4278_v29  ;;  %v4345_v29 = vrot.slane %v5046_v4, %v6934_v24  ;;  %v4627_v4 = vld [vmem:[%s8080_s25] sm:$0xff] }
0x1c3b   : > { %6322 = vrsqrt.f32 %v4280_v30  ;;  %v4277_v31 = vpop.xlane.xlu1 %4276 }
0x1c3c   : > { %v4279_v33 = vmul.f32 0.020833334, %v4277_v31 }
0x1c3e   : > { %v4281_v35 = vadd.f32 1e-05, %v4279_v33 }
0x1c40   : > { %6324 = vrsqrt.f32 %v4281_v35 }
0x1c45   : > { %v6323_v37 = vpop.eup %6322 }
0x1c46   : > { %v4284_v39 = vmul.f32 %v6323_v37, %v7743_v55  ;;  %v5066_v55 = vld [vmem:[%s8076_s21 + $0x198] sm:$0xff] }
0x1c47   : > { %v6061_v36 = vpack.c.bf16 %v5066_v55, %v5065_v53 }
0x1c48   : > { %v4292_v20 = vmul.f32 %v5012_v38, %v4284_v39 }
0x1c49   : > { %6062 = vmatprep.subr.bf16.mxu0 %v6061_v36 }
0x1c4a   : > { %v6325_v22 = vpop.eup %6324  ;;  %v7833_v43 = vadd.f32 %v5013_v41, %v4292_v20 }
0x1c4b   : > { %v4285_v44 = vmul.f32 %v6325_v22, %v7748_v58  ;;  %v5050_v58 = vld [vmem:[%s8076_s21 + $0x118] sm:$0xff] }
0x1c4c   : > { %4413 = vmatmul.mubr.f32.vlgmr.msra.gmra.mrb[34].mxu1 %v7833_v43  ;;  %v6063_v59 = vpack.c.bf16 %v5050_v58, %v5049_v57 }
0x1c4d   : > { %4418 = vmatprep.mubr.f32.mxu1 %v6413_v34  ;;  %v4293_v49 = vmul.f32 %v5012_v38, %v4285_v44 }
0x1c4e   : > { %6064 = vmatpush3.bf16.msra.mxu0 %v6063_v59 }
0x1c4f   : > { %v7838_v52 = vadd.f32 %v5013_v41, %v4293_v49  ;;  %6066 = vmatprep.subr.bf16.mxu0 %v6065_v61 }
0x1c51   : > { %4419 = vmatmul.mubr.f32.gmra.mrb[36].mxu1 %v7838_v52 }
0x1c52   : > { %6068 = vmatpush3.bf16.msra.mxu0 %v6067_v40  ;;  %5634 = vmatprep.mubr.msk.f32.mxu1 %vm6418_vm11, %v6413_v34 }
0x1c53   : > { %6070 = vmatprep.subr.bf16.mxu0 %v6069_v1 }
0x1c56   : > { %6072 = vmatpush3.bf16.msra.mxu0 %v6071_v6 }
0x1c57   : > { %6074 = vmatprep.subr.bf16.mxu0 %v6073_v9 }
0x1c5a   : > { %6076 = vmatpush3.bf16.msra.mxu0 %v6075_v12 }
0x1c5b   : > { %6078 = vmatprep.subr.bf16.mxu0 %v6077_v13 }
0x1c5e   : > { %6080 = vmatpush3.bf16.msra.mxu0 %v6079_v19  ;;  %v5080_v19 = vld [vmem:[%s8077_s22 + $0x1] ss:$0 sm:$0xff] }
0x1c5f   : > { %6082 = vmatprep.subr.bf16.mxu0 %v6081_v27 }
0x1c62   : > { %6084 = vmatpush3.bf16.msra.mxu0 %v6083_v25 }
0x1c63   : > { %6086 = vmatprep.subr.bf16.mxu0 %v6085_v28 }
0x1c66   : > { %6088 = vmatpush3.bf16.msra.mxu0 %v6087_v18 }
0x1d1f   : > { %v4414_v30 = vpop.f32.mrb[34].mxu1 }
0x1d20   : > { %v4415_v31 = vadd.f32 %v4414_v30, %v4341_v42  ;;  %v4416_v33 = vpop.f32.mrb[35].mxu1 }
0x1d21   : > { %v4417_v35 = vadd.f32 %v4416_v33, %v4345_v29  ;;  %v4632_v33 = vld [vmem:[%s8080_s25 + $0x28] sm:$0xff] }
0x1d22   : > { %v4429_v37 = vmul.f32 0.044715, %v4415_v31  ;;  %v4425_v7 = vmul.f32 0.5, %v4415_v31 }
0x1d23   : > { %v4430_v38 = vmul.f32 0.044715, %v4417_v35  ;;  %v4426_v5 = vmul.f32 0.5, %v4417_v35 }
0x1d24   : > { %v4433_v39 = vmul.f32 %v4429_v37, %v4415_v31  ;;  %v4420_v41 = vpop.f32.mrb[36].mxu1 }
0x1d25   : > { %v4434_v20 = vmul.f32 %v4430_v38, %v4417_v35  ;;  %v4421_v22 = vadd.f32 %v4420_v41, %v4341_v42  ;;  %v4422_v44 = vpop.f32.mrb[37].mxu1  ;;  %v4628_v42 = vld [vmem:[%s8080_s25 + $0x8] sm:$0xff] }
0x1d26   : > { %v4437_v49 = vmul.f32 %v4433_v39, %v4415_v31  ;;  %v4423_v53 = vadd.f32 %v4422_v44, %v4345_v29  ;;  %v6090_v29 = vpack.c.bf16 %v4628_v42, %v4627_v4 }
0x1d27   : > { %v4431_v55 = vmul.f32 0.044715, %v4421_v22  ;;  %v4438_v36 = vmul.f32 %v4434_v20, %v4417_v35  ;;  %v4427_v32 = vmul.f32 0.5, %v4421_v22 }
0x1d28   : > { %v4441_v57 = vadd.f32 %v4437_v49, %v4415_v31  ;;  %v4432_v58 = vmul.f32 0.044715, %v4423_v53  ;;  %v4428_v12 = vmul.f32 0.5, %v4423_v53  ;;  %6091 = vmatpush3.bf16.msra.mxu1 %v6090_v29  ;;  %v4631_v31 = vld [vmem:[%s8080_s25 + $0x20] sm:$0xff] }
0x1d29   : > { %v4435_v48 = vmul.f32 %v4431_v55, %v4421_v22  ;;  %v4442_v59 = vadd.f32 %v4438_v36, %v4417_v35  ;;  %6092 = vmatprep.subr.bf16.mxu1 %v6412_v3  ;;  %v6096_v35 = vpack.c.bf16 %v4632_v33, %v4631_v31 }
0x1d2a   : > { %v4436_v24 = vmul.f32 %v4432_v58, %v4423_v53  ;;  %v4445_v45 = vmul.f32 0.7978846, %v4441_v57  ;;  %v4633_v57 = vld [vmem:[%s8080_s25 + $0x30] sm:$0xff]  ;;  %v4634_v58 = vld [vmem:[%s8080_s25 + $0x38] sm:$0xff] }
0x1d2b   : > { %v4446_v60 = vmul.f32 0.7978846, %v4442_v59  ;;  %v4439_v61 = vmul.f32 %v4435_v48, %v4421_v22  ;;  %v6099_v48 = vpack.c.bf16 %v4634_v58, %v4633_v57  ;;  %v4636_v59 = vld [vmem:[%s8080_s25 + $0x48] sm:$0xff] }
0x1d2c   : > { %6326 = vtanh.f32 %v4445_v45  ;;  %v4440_v62 = vmul.f32 %v4436_v24, %v4423_v53  ;;  %v4637_v45 = vld [vmem:[%s8080_s25 + $0x50] sm:$0xff] }
0x1d2d   : > { %6328 = vtanh.f32 %v4446_v60  ;;  %v4443_v63 = vadd.f32 %v4439_v61, %v4421_v22  ;;  %v4638_v60 = vld [vmem:[%s8080_s25 + $0x58] sm:$0xff] }
0x1d2e   : > { %v4444_v40 = vadd.f32 %v4440_v62, %v4423_v53  ;;  %v6105_v61 = vpack.c.bf16 %v4638_v60, %v4637_v45  ;;  %v4639_v62 = vld [vmem:[%s8080_s25 + $0x60] sm:$0xff] }
0x1d2f   : > { %v4447_v56 = vmul.f32 0.7978846, %v4443_v63  ;;  %v4640_v63 = vld [vmem:[%s8080_s25 + $0x68] sm:$0xff] }
0x1d30   : > { %v4448_v0 = vmul.f32 0.7978846, %v4444_v40  ;;  %v6108_v40 = vpack.c.bf16 %v4640_v63, %v4639_v62 }
0x1d31   : > { %6330 = vtanh.f32 %v4447_v56  ;;  %v4641_v56 = vld [vmem:[%s8080_s25 + $0x70] sm:$0xff] }
0x1d32   : > { %6332 = vtanh.f32 %v4448_v0  ;;  %v4642_v0 = vld [vmem:[%s8080_s25 + $0x78] sm:$0xff] }
0x1d36   : > { %v6327_v1 = vpop.eup %6326 }
0x1d37   : > { %v6329_v2 = vpop.eup %6328  ;;  %v4453_v46 = vadd.f32 1.0, %v6327_v1  ;;  %v6111_v1 = vpack.c.bf16 %v4642_v0, %v4641_v56 }
0x1d38   : > { %v4454_v6 = vadd.f32 1.0, %v6329_v2 }
0x1d39   : > { %v4457_v9 = vmul.f32 %v4453_v46, %v4425_v7 }
0x1d3a   : > { %v4458_v8 = vmul.f32 %v4454_v6, %v4426_v5 }
0x1d3b   : > { %v6331_v54 = vpop.eup %6330 }
0x1d3c   : > { %v6333_v10 = vpop.eup %6332  ;;  %4566 = vmatprep.mubr.f32.mxu0 %v4458_v8  ;;  %v4455_v11 = vadd.f32 1.0, %v6331_v54  ;;  %v5083_v54 = vld [vmem:[%s8078_s23 + $0x1] ss:$0 sm:$0xff] }
0x1d3d   : > { %4567 = vmatmul.mubr.f32.vlgmr.msra.gmra.mrb[24].mxu0 %v4457_v9  ;;  %v4456_v13 = vadd.f32 1.0, %v6333_v10  ;;  %v5084_v10 = vld [vmem:[%s8079_s24 + $0x1] ss:$0 sm:$0xff] }
0x1d3e   : > { %v4459_v17 = vmul.f32 %v4455_v11, %v4427_v32 }
0x1d3f   : > { %v4460_v14 = vmul.f32 %v4456_v13, %v4428_v12 }
0x1d41   : > { %4571 = vmatprep.mubr.f32.mxu0 %v4460_v14 }
0x1d42   : > { %4572 = vmatmul.mubr.f32.gmra.mrb[26].mxu0 %v4459_v17  ;;  %v4643_v17 = vld [vmem:[%s8140_s2] sm:$0x1] }
0x1e10   : > { %v5309_v16 = vpop.f32.mrb[24].mxu0 }
0x1e11   : > { %v5310_v27 = vpop.f32.mrb[25].mxu0 }
0x1e12   : > { %v5311_v23 = vadd.f32 %v5310_v27, %v5309_v16 }
0x1e14   : > { %v4569_v21 = vadd.f32 %v5311_v23, %v5080_v19 }
0x1e15   : > { %v5312_v51 = vpop.f32.mrb[26].mxu0 }
0x1e16   : > { %v5313_v47 = vpop.f32.mrb[27].mxu0  ;;  %v4577_v25 = vadd.f32 %v4569_v21, %v7833_v43  ;;  %v4629_v43 = vld [vmem:[%s8080_s25 + $0x10] sm:$0xff] }
0x1e17   : > { %v5314_v28 = vadd.f32 %v5313_v47, %v5312_v51 }
0x1e18   : > { %4583 = vadd.xlane.f32.xlu1 %v4577_v25 }
0x1e19   : > { %v4574_v26 = vadd.f32 %v5314_v28, %v5080_v19 }
0x1e1b   : > { %v4578_v15 = vadd.f32 %v4574_v26, %v7838_v52  ;;  %v4630_v52 = vld [vmem:[%s8080_s25 + $0x18] sm:$0xff] }
0x1e1c   : > { %v6093_v30 = vpack.c.bf16 %v4630_v52, %v4629_v43 }
0x1e1d   : > { %v4585_v18 = vsel %vm1098_vm4, %v4578_v15, 0.0 }
0x1e1e   : > { %4586 = vadd.xlane.f32.xlu1 %v4585_v18  ;;  %6094 = vmatpush3.bf16.msra.mxu1 %v6093_v30 }
0x1e1f   : > { %6095 = vmatprep.subr.bf16.mxu1 %v6412_v3 }
0x1e22   : > { %6097 = vmatpush3.bf16.msra.mxu1 %v6096_v35 }
0x1e23   : > { %6098 = vmatprep.subr.bf16.mxu1 %v6412_v3 }
0x1e26   : > { %6100 = vmatpush3.bf16.msra.mxu1 %v6099_v48 }
0x1e27   : > { %6101 = vmatprep.subr.bf16.mxu1 %v6412_v3 }
0x1ea5   : > { %v4584_v37 = vpop.xlane.xlu1 %4583 }
0x1ea6   : > { %v4588_v38 = vmul.f32 0.020833334, %v4584_v37 }
0x1ea8   : > { %v4590_v39 = vsub.f32 %v4577_v25, %v4588_v38 }
0x1eaa   : > { %v4592_v41 = vmul.f32 %v6724_v50, %v4590_v39 }
0x1eab   : > { %v4587_v20 = vpop.xlane.xlu1 %4586 }
0x1eac   : > { %v4589_v22 = vmul.f32 0.020833334, %v4587_v20  ;;  %v4594_v44 = vmul.f32 %v4592_v41, %v4592_v41 }
0x1eae   : > { %v4591_v49 = vsub.f32 %v4578_v15, %v4589_v22  ;;  %4596 = vadd.xlane.f32.xlu0 %v4594_v44 }
0x1eb0   : > { %v4593_v53 = vmul.f32 %v6724_v50, %v4591_v49  ;;  %v4635_v50 = vld [vmem:[%s8080_s25 + $0x40] sm:$0xff] }
0x1eb1   : > { %v6102_v24 = vpack.c.bf16 %v4636_v59, %v4635_v50 }
0x1eb2   : > { %v4595_v55 = vmul.f32 %v4593_v53, %v4593_v53 }
0x1eb3   : > { %6103 = vmatpush3.bf16.msra.mxu1 %v6102_v24 }
0x1eb4   : > { %v4598_v36 = vsel %vm1098_vm4, %v4595_v55, 0.0  ;;  %6104 = vmatprep.subr.bf16.mxu1 %v6412_v3 }
0x1eb5   : > { %4599 = vadd.xlane.f32.xlu0 %v4598_v36 }
0x1eb7   : > { %6106 = vmatpush3.bf16.msra.mxu1 %v6105_v61 }
0x1eb8   : > { %6107 = vmatprep.subr.bf16.mxu1 %v6412_v3 }
0x1ebb   : > { %6109 = vmatpush3.bf16.msra.mxu1 %v6108_v40 }
0x1ebc   : > { %6110 = vmatprep.subr.bf16.mxu1 %v6412_v3 }
0x1ebf   : > { %6112 = vmatpush3.bf16.msra.mxu1 %v6111_v1 }
0x1f3b   : > { %v4597_v2 = vpop.xlane.xlu0 %4596 }
0x1f3c   : > { %v4601_v46 = vmul.f32 0.020833334, %v4597_v2 }
0x1f3e   : > { %v4603_v5 = vadd.f32 1e-05, %v4601_v46 }
0x1f40   : > { %6334 = vrsqrt.f32 %v4603_v5 }
0x1f42   : > { %v4600_v6 = vpop.xlane.xlu0 %4599 }
0x1f43   : > { %v4602_v3 = vmul.f32 0.020833334, %v4600_v6 }
0x1f45   : > { %v4604_v7 = vadd.f32 1e-05, %v4602_v3 }
0x1f47   : > { %6336 = vrsqrt.f32 %v4604_v7 }
0x1f4a   : > { %v6335_v8 = vpop.eup %6334 }
0x1f4b   : > { %v4607_v9 = vmul.f32 %v6335_v8, %v4592_v41 }
0x1f4d   : > { %v4615_v34 = vmul.f32 %v5083_v54, %v4607_v9 }
0x1f4f   : > { %v4623_v11 = vadd.f32 %v5084_v10, %v4615_v34 }
0x1f51   : > { %v6337_v12 = vpop.eup %6336  ;;  %4625 = vst [vmem:[%s892_s10] sm:$0xff] %v4623_v11  ;;  %5635 = vmatmul.mubr.f32.vlgmr.msra.gmra.mrb[38].mxu1 %v4623_v11 }
0x1f52   : > { %v4608_v13 = vmul.f32 %v6337_v12, %v4593_v53 }
0x1f54   : > { %v4616_v32 = vmul.f32 %v5083_v54, %v4608_v13 }
0x1f56   : > { %v4624_v14 = vadd.f32 %v5084_v10, %v4616_v32 }
0x1f58   : > { %4626 = vst [vmem:[%s892_s10 + $0x8] sm:$0x1f] %v4624_v14  ;;  %s6352_s10 = sshll.u32 %s6419_s9, 4  ;;  %s6353_s10 = int_to_ptr.vmem [resolvable:$false] %s6352_s10 }
0x1f59   : > { %s6354_s12 = scalar_lea.vmem %s6353_s10, 32  ;;  %p6355_p0 = scmp.lt.s32.totalorder %s8015_s27, %s6353_s10 }
0x1f5a   : > { %p6356_p1 = scmp.lt.s32.totalorder %s6354_s12, %s6348_s26 }
0x1f5c   : > { %p6357_p2 = por %p6356_p1, %p6355_p0 }
0x1f5e   : > { %p6358_p3 = pnand %p6357_p2, %p6351_p13 }
0x2024   : > { %v4710_v16 = vpop.f32.mrb[38].mxu1 }
0x2025   : > { %v4711_v19 = vadd.f32 %v4710_v16, %v4643_v17  ;;  %v5636_v27 = vpop.f32.mrb[39].mxu1 }
0x2027   : > { %6338 = vtanh.f32 %v4711_v19 }
0x2031   : > { %v6339_v23 = vpop.eup %6338 }
0x2032   : > { %4715 = vst [vmem:[%s873_s6] sm:$0x1] %v6339_v23 }
0x2033   : > { %6361 = shalt.err (!%p6358_p3)
}
0x2034   : > { %s6362_s1 = scalar_lea.hbm %s8013_s30, 16  ;;  %s6366_s11 = scalar_lea.hbm %s8142_s28, 32 }
0x2035   : > { %p6363_p4 = scmp.ne.s32.totalorder %s8013_s30, %s6362_s1  ;;  %p6367_p9 = scmp.lt.u32.totalorder %s8013_s30, %s8142_s28 }
0x2036   : > { %p6368_p10 = scmp.lt.u32.totalorder %s6366_s11, %s6362_s1  ;;  %p6370_p12 = scmp.lt.u32.totalorder %s6362_s1, %s8013_s30 }
0x2037   : > { %p6364_p7 = pnand %p6363_p4, %p6603_p5 }
0x2038   : > { %p6369_p11 = por %p6368_p10, %p6367_p9 }
0x2039   : > { %p6365_p8 = pneg %p6364_p7 }
0x203a   : > { %p6371_p13 = por %p6370_p12, %p6369_p11 }
0x203c   : > { %p6372_p0 = pnand %p6371_p13, %p6365_p8 }
0x203e   : > { %6375 = shalt.err (!%p6372_p0)
}
0x203f   : > { %6125 = dma.vmem_to_hbm [thread:$0]  (%p6603_p5), %s8015_s27, 16, %s8013_s30, %s4722_s3  }
0x2040 PF: > { %s8143_s7 = sld [smem:[#allocation8_spill]]  ;;  %s8144_s26 = sld [smem:[#allocation6_spill]] }
0x2046   : > { %p6131_p1 = scmp.ge.s32.totalorder %s8143_s7, 2  ;;  %s4757_s10 = sand.u32 1, %s8144_s26  }
0x2047   : > { %s4758_s12 = scalar_lea.sflag [#allocation4], %s4757_s10 }
0x2048   : > { %p6128_p2 = pnand %p6131_p1, %p6607_p6 }
0x204a   : > { %6393 = dma.done.wait (!%p6128_p2), %s4758_s12, 16  }
0x204b   : > { %6395 = vsyncadd (!%p6128_p2), %s4758_s12, 4294967280  ;;  %s8146_s30 = sld [smem:[#allocation10_spill]]  ;;  %s8147_s1 = sld [smem:[#allocation7_spill]] }
0x204c   : > { %s8148_s9 = sld [smem:[#allocation11_spill]]  ;;  %s8149_s8 = smov %s6402_s5 }
0x2051   : > { %p39_p3 = scmp.ge.s32.totalorder %s8146_s30, 4   ;;  %s8150_s5 = smov %s8147_s1 }
0x2053   :  { %41 = sbr.rel (!%p39_p3) target bundleno = 20 (0x14), region = 196 }
0x205a   :  { %4762 = vsyncpa [#allocation4], 1 }
0x205b   :  { %4764 = vsyncpa [#allocation4 + $0x1], 1 }

</bundles_post_ra>
